<compile_context>
chip_gen: v7x
topology: tpu7x:2x2x1
jax: 0.10.0
libtpu: 0.0.40
codegen_flags: <defaults>
</compile_context>

<pallas_src>
import functools

import numpy as np
import jax
import jax.numpy as jnp
from jax import lax
from jax.experimental import pallas as pl
from jax.experimental.pallas import tpu as pltpu


LATENT_DIM = 2
IMG_C = 1
IMG_H = 16
IMG_W = 16
N_SIZE = 64 * 2 * 2       # encoder flattened feature size (64 ch x 2 x 2)

_BN_EPS = 1e-5
_BN_BCAST_W = 49 * 32     # widest grouped-BN layer (encoder conv1: 49 pixels x 32 ch)


# ----------------------------------------------------------------------------
# The single fused forward kernel
# ----------------------------------------------------------------------------
def _vae_kernel(x_ref, eps_ref, w1_ref, bn1_ref, w2_ref, bn2_ref, fcw_ref, fcb_ref,
                wd1_ref, bnd1_ref, wd2_ref, bnd2_ref, wd3_ref,
                mu_ref, logvar_ref, dec_ref,
                bn_bcast_ref, d1r_ref, *, B: int, latent: int):
    f32 = jnp.float32

    def bn_relu(y, ab_ref, groups: int, count: int, relu: bool = True):
        """BatchNorm (batch stats, biased var, eps=1e-5) + optional ReLU.

        `y` has `groups` column-groups of C channels each (channel = col mod C);
        statistics are taken over all rows and all groups (exact sample count)."""
        C = ab_ref.shape[1]
        width = groups * C
        s = jnp.sum(y, axis=0, keepdims=True)
        q = jnp.sum(y * y, axis=0, keepdims=True)
        ch_s = s[:, 0:C]
        ch_q = q[:, 0:C]
        for g in range(1, groups):
            ch_s = ch_s + s[:, g * C:(g + 1) * C]
            ch_q = ch_q + q[:, g * C:(g + 1) * C]
        inv_n = 1.0 / float(count)
        mean = ch_s * inv_n
        var = ch_q * inv_n - mean * mean
        gamma = ab_ref[0:1, :]
        beta = ab_ref[1:2, :]
        scale = gamma * lax.rsqrt(var + _BN_EPS)
        shift = beta - mean * scale
        if groups == 1:
            yn = y * scale + shift
        else:
            blk = jnp.concatenate([scale, shift], axis=0)          # (2, C)
            for g in range(groups):                                # broadcast back per group
                bn_bcast_ref[:, g * C:(g + 1) * C] = blk
            yn = y * bn_bcast_ref[0:1, 0:width] + bn_bcast_ref[1:2, 0:width]
        return jnp.maximum(yn, 0.0) if relu else yn

    # ---------------- encoder ----------------
    x = x_ref[...]                                                 # (B, C*16*16)
    y1 = jnp.dot(x.astype(jnp.bfloat16), w1_ref[...],
                 preferred_element_type=f32)                       # (B, 49*32) cols=(pix, ch)
    h1 = bn_relu(y1, bn1_ref, groups=49, count=49 * B)

    y2 = jnp.dot(h1.astype(jnp.bfloat16), w2_ref[...],
                 preferred_element_type=f32)                       # (B, 4*64) cols=(pix, ch)
    h2 = bn_relu(y2, bn2_ref, groups=4, count=4 * B)

    enc = jnp.dot(h2, fcw_ref[...], preferred_element_type=f32) + fcb_ref[...]
    mu = enc[:, 0:latent]
    logvar = enc[:, latent:2 * latent]
    mu_ref[...] = mu
    logvar_ref[...] = logvar

    # -------- reparameterize (log_flag=True => std = exp(0.5 * logvar)) --------
    z = mu + jnp.exp(0.5 * logvar) * eps_ref[...]

    # ---------------- decoder ----------------
    # dec_lin composed with ConvT1 (1x1 spatial input): one matmul, cols = (p1, o), p1=i*4+j.
    yd1 = jnp.dot(z, wd1_ref[...], preferred_element_type=f32)     # (B, 16*64)
    for p in range(16):   # row-expand to (pixel, batch) rows so ConvT2 is one matmul
        d1r_ref[p * B:(p + 1) * B, :] = yd1[:, p * 64:(p + 1) * 64]
    d1 = bn_relu(d1r_ref[...], bnd1_ref, groups=1, count=16 * B)   # (16B, 64)

    # ConvT2 (k=2, s=2, non-overlapping): one matmul, cols = (di, dj, o).
    yd2 = jnp.dot(d1, wd2_ref[...], preferred_element_type=f32)    # (16B, 128)
    d2 = bn_relu(yd2, bnd2_ref, groups=4, count=64 * B)

    # ConvT3 (k=2, s=2): block-diagonal weight over the 4 (di, dj) groups, no BN / no act.
    dec_ref[...] = jnp.dot(d2, wd3_ref[...], preferred_element_type=f32)  # (16B, 16*C)


# ----------------------------------------------------------------------------
# Parameters (raw PyTorch layouts) + one-time weight preprocessing
# ----------------------------------------------------------------------------
def init_params(key):
    ks = jax.random.split(key, 7)
    nrm = lambda k, s: 0.1 * jax.random.normal(k, s, jnp.float32)
    p = {}
    # Encoder (Conv2d (O, C, k, k); Linear weight stored pre-transposed (in, out))
    p["enc_w1"] = nrm(ks[0], (32, IMG_C, 4, 4))
    p["enc_g1"], p["enc_b1"] = jnp.ones(32), jnp.zeros(32)
    p["enc_w2"] = nrm(ks[1], (64, 32, 4, 4))
    p["enc_g2"], p["enc_b2"] = jnp.ones(64), jnp.zeros(64)
    p["fc_w"] = nrm(ks[2], (N_SIZE, 2 * LATENT_DIM))   # [fc_mu | fc_logvar]
    p["fc_b"] = jnp.zeros(2 * LATENT_DIM)
    # Decoder (ConvTranspose2d (Cin, Cout, k, k), no biases)
    p["dec_lin_w"] = nrm(ks[3], (LATENT_DIM, N_SIZE))  # Linear(latent, n_size, bias=False)
    p["dec_w1"] = nrm(ks[4], (N_SIZE, 64, 4, 4))
    p["dec_g1"], p["dec_b1"] = jnp.ones(64), jnp.zeros(64)
    p["dec_w2"] = nrm(ks[5], (64, 32, 2, 2))
    p["dec_g2"], p["dec_b2"] = jnp.ones(32), jnp.zeros(32)
    p["dec_w3"] = nrm(ks[6], (32, IMG_C, 2, 2))
    return p


def _conv_as_dense(w, H, W, stride, *, in_chw):
    """Fold a no-bias strided conv into a dense matrix (done once at init).

    Rows index the flattened input (CHW order if in_chw else HWC order); columns are
    ordered (out_pixel row-major, out_channel)."""
    w = np.asarray(w, np.float32)
    O, C, k, _ = w.shape
    Ho = (H - k) // stride + 1
    Wo = (W - k) // stride + 1
    dense = np.zeros((C * H * W, Ho * Wo * O), np.float32)
    for ho in range(Ho):
        for wo in range(Wo):
            p = ho * Wo + wo
            for i in range(k):
                for j in range(k):
                    h = stride * ho + i
                    ww = stride * wo + j
                    for c in range(C):
                        r = c * H * W + h * W + ww if in_chw else (h * W + ww) * C + c
                        dense[r, p * O:(p + 1) * O] = w[:, c, i, j]
    return dense


def prepare_params(p):
    """One-time weight folding / composition / permutation (kept out of the forward path)."""
    f32 = np.float32
    out_dim = 2 * LATENT_DIM
    prep = {}
    # Encoder convs folded into dense matrices; fed to the MXU as bf16 (f32 accumulate).
    prep["w1"] = jnp.asarray(
        _conv_as_dense(p["enc_w1"], IMG_H, IMG_W, 2, in_chw=True), jnp.bfloat16)
    prep["bn1"] = jnp.stack([p["enc_g1"], p["enc_b1"]]).astype(jnp.float32)
    prep["w2"] = jnp.asarray(
        _conv_as_dense(p["enc_w2"], 7, 7, 2, in_chw=False), jnp.bfloat16)
    prep["bn2"] = jnp.stack([p["enc_g2"], p["enc_b2"]]).astype(jnp.float32)
    # fc with rows permuted from NCHW-flatten order to the kernel's (pixel, channel) order.
    fcw = np.asarray(p["fc_w"], f32).reshape(64, 4, out_dim)
    prep["fcw"] = jnp.asarray(fcw.transpose(1, 0, 2).reshape(N_SIZE, out_dim))
    prep["fcb"] = jnp.asarray(np.asarray(p["fc_b"], f32).reshape(1, out_dim))
    # Decoder: dec_lin composed with ConvT1 (1x1 spatial input) -> (latent, 16*64).
    wt1 = np.asarray(p["dec_w1"], f32).transpose(0, 2, 3, 1).reshape(N_SIZE, 16 * 64)
    prep["wd1"] = jnp.asarray(np.asarray(p["dec_lin_w"], f32) @ wt1)
    prep["bnd1"] = jnp.stack([p["dec_g1"], p["dec_b1"]]).astype(jnp.float32)
    # ConvT2 (k=s=2): weight reshaped to (64, 4*32), cols (di, dj, o).
    prep["wd2"] = jnp.asarray(
        np.asarray(p["dec_w2"], f32).transpose(0, 2, 3, 1).reshape(64, 4 * 32))
    prep["bnd2"] = jnp.stack([p["dec_g2"], p["dec_b2"]]).astype(jnp.float32)
    # ConvT3 (k=s=2): block-diagonal over the 4 (di, dj) groups of ConvT2's output.
    w3r = np.asarray(p["dec_w3"], f32).transpose(0, 2, 3, 1).reshape(32, 4 * IMG_C)
    prep["wd3"] = jnp.asarray(np.kron(np.eye(4, dtype=f32), w3r))
    return prep


# ----------------------------------------------------------------------------
# Forward
# ----------------------------------------------------------------------------
@jax.jit
def _forward_impl(prep, img, eps):
    lead = img.shape[:-3]
    C, H, W = img.shape[-3:]
    x = img.reshape((-1, C * H * W)).astype(jnp.float32)
    B = x.shape[0]

    kernel = functools.partial(_vae_kernel, B=B, latent=LATENT_DIM)
    mu, logvar, dec_raw = pl.pallas_call(
        kernel,
        out_shape=(
            jax.ShapeDtypeStruct((B, LATENT_DIM), jnp.float32),
            jax.ShapeDtypeStruct((B, LATENT_DIM), jnp.float32),
            jax.ShapeDtypeStruct((16 * B, 16 * C), jnp.float32),
        ),
        scratch_shapes=[
            pltpu.VMEM((2, _BN_BCAST_W), jnp.float32),  # BN scale/shift broadcast buffer
            pltpu.VMEM((16 * B, 64), jnp.float32),      # decoder stage-1 (pixel, batch) rows
        ],
    )(x, eps, prep["w1"], prep["bn1"], prep["w2"], prep["bn2"],
      prep["fcw"], prep["fcb"], prep["wd1"], prep["bnd1"],
      prep["wd2"], prep["bnd2"], prep["wd3"])

    # Single layout fix-up at the very end: rows (i, j, b) x cols (di, dj, e, f, c) -> NCHW.
    log_dsd = dec_raw.reshape(4, 4, B, 2, 2, 2, 2, C)
    log_dsd = log_dsd.transpose(2, 7, 0, 3, 5, 1, 4, 6).reshape(B, C, IMG_H, IMG_W)

    mu = mu.reshape(lead + (LATENT_DIM,))
    logvar = logvar.reshape(lead + (LATENT_DIM,))
    log_dsd = log_dsd.reshape(lead + (C, IMG_H, IMG_W))
    return mu, logvar, log_dsd


def gray_image_vae_forward(prep, img, eps_key):
    """Returns (mu_e, log_var_e, log_dsd), matching GrayImageVAE.forward."""
    lead = img.shape[:-3]
    B = 1
    for d in lead:
        B *= int(d)
    eps = jax.random.normal(eps_key, (B, LATENT_DIM), jnp.float32)
    return _forward_impl(prep, img, eps)


if __name__ == "__main__":
    key = jax.random.PRNGKey(0)
    pkey, xkey, ekey = jax.random.split(key, 3)

    params = init_params(pkey)
    prep = prepare_params(params)
    img = jax.random.uniform(xkey, (2, IMG_C, IMG_H, IMG_W), jnp.float32)  # (B, C, H, W)

    mu_e, log_var_e, log_dsd = gray_image_vae_forward(prep, img, ekey)
    jax.block_until_ready((mu_e, log_var_e, log_dsd))

    assert mu_e.shape == (2, LATENT_DIM)
    assert log_var_e.shape == (2, LATENT_DIM)
    assert log_dsd.shape == (2, IMG_C, IMG_H, IMG_W)
    assert bool(jnp.all(jnp.isfinite(mu_e))) and bool(jnp.all(jnp.isfinite(log_dsd)))
    print("KERNEL_OK")
</pallas_src>

<mosaic_0001>
module attributes {stable_mosaic.version = 11 : i64} {
  func.func @_vae_kernel(%arg0: memref<2x256xf32, #tpu.memory_space<vmem>>, %arg1: memref<2x2xf32, #tpu.memory_space<vmem>>, %arg2: memref<256x1568xbf16, #tpu.memory_space<vmem>>, %arg3: memref<2x32xf32, #tpu.memory_space<vmem>>, %arg4: memref<1568x256xbf16, #tpu.memory_space<vmem>>, %arg5: memref<2x64xf32, #tpu.memory_space<vmem>>, %arg6: memref<256x4xf32, #tpu.memory_space<vmem>>, %arg7: memref<1x4xf32, #tpu.memory_space<vmem>>, %arg8: memref<2x1024xf32, #tpu.memory_space<vmem>>, %arg9: memref<2x64xf32, #tpu.memory_space<vmem>>, %arg10: memref<64x128xf32, #tpu.memory_space<vmem>>, %arg11: memref<2x32xf32, #tpu.memory_space<vmem>>, %arg12: memref<128x16xf32, #tpu.memory_space<vmem>>, %arg13: memref<2x2xf32, #tpu.memory_space<vmem>>, %arg14: memref<2x2xf32, #tpu.memory_space<vmem>>, %arg15: memref<32x16xf32, #tpu.memory_space<vmem>>, %arg16: memref<2x1568xf32, #tpu.memory_space<vmem>>, %arg17: memref<32x64xf32, #tpu.memory_space<vmem>>) attributes {dimension_semantics = [], scalar_prefetch = 0 : i64, scratch_operands = 2 : i64, tpu.core_type = #tpu.core_type<tc>} {
    %c0 = arith.constant 0 : index
    %c0_0 = arith.constant 0 : index
    %0 = vector.load %arg0[%c0, %c0_0] : memref<2x256xf32, #tpu.memory_space<vmem>>, vector<2x256xf32>
    %1 = arith.truncf %0 : vector<2x256xf32> to vector<2x256xbf16>
    %c0_1 = arith.constant 0 : index
    %c0_2 = arith.constant 0 : index
    %2 = vector.load %arg2[%c0_1, %c0_2] : memref<256x1568xbf16, #tpu.memory_space<vmem>>, vector<256x1568xbf16>
    %cst = arith.constant dense<0.000000e+00> : vector<2x1568xf32>
    %3 = tpu.matmul %1, %2, %cst {dimension_numbers = #tpu.dot_dimension_numbers<[1], [0], [0], [1], [0, 0, 1, 1], [], []>} : vector<2x256xbf16>, vector<256x1568xbf16>, vector<2x1568xf32> -> vector<2x1568xf32>
    %cst_3 = arith.constant dense<0.000000e+00> : vector<1568xf32>
    %4 = vector.multi_reduction <add>, %3, %cst_3 [0] : vector<2x1568xf32> to vector<1568xf32>
    %5 = vector.shape_cast %4 : vector<1568xf32> to vector<1x1568xf32>
    %6 = arith.mulf %3, %3 : vector<2x1568xf32>
    %cst_4 = arith.constant dense<0.000000e+00> : vector<1568xf32>
    %7 = vector.multi_reduction <add>, %6, %cst_4 [0] : vector<2x1568xf32> to vector<1568xf32>
    %8 = vector.shape_cast %7 : vector<1568xf32> to vector<1x1568xf32>
    %9 = vector.extract_strided_slice %5 {offsets = [0, 0], sizes = [1, 32], strides = [1, 1]} : vector<1x1568xf32> to vector<1x32xf32>
    %10 = vector.extract_strided_slice %8 {offsets = [0, 0], sizes = [1, 32], strides = [1, 1]} : vector<1x1568xf32> to vector<1x32xf32>
    %11 = vector.extract_strided_slice %5 {offsets = [0, 32], sizes = [1, 32], strides = [1, 1]} : vector<1x1568xf32> to vector<1x32xf32>
    %12 = arith.addf %9, %11 : vector<1x32xf32>
    %13 = vector.extract_strided_slice %8 {offsets = [0, 32], sizes = [1, 32], strides = [1, 1]} : vector<1x1568xf32> to vector<1x32xf32>
    %14 = arith.addf %10, %13 : vector<1x32xf32>
    %15 = vector.extract_strided_slice %5 {offsets = [0, 64], sizes = [1, 32], strides = [1, 1]} : vector<1x1568xf32> to vector<1x32xf32>
    %16 = arith.addf %12, %15 : vector<1x32xf32>
    %17 = vector.extract_strided_slice %8 {offsets = [0, 64], sizes = [1, 32], strides = [1, 1]} : vector<1x1568xf32> to vector<1x32xf32>
    %18 = arith.addf %14, %17 : vector<1x32xf32>
    %19 = vector.extract_strided_slice %5 {offsets = [0, 96], sizes = [1, 32], strides = [1, 1]} : vector<1x1568xf32> to vector<1x32xf32>
    %20 = arith.addf %16, %19 : vector<1x32xf32>
    %21 = vector.extract_strided_slice %8 {offsets = [0, 96], sizes = [1, 32], strides = [1, 1]} : vector<1x1568xf32> to vector<1x32xf32>
    %22 = arith.addf %18, %21 : vector<1x32xf32>
    %23 = vector.extract_strided_slice %5 {offsets = [0, 128], sizes = [1, 32], strides = [1, 1]} : vector<1x1568xf32> to vector<1x32xf32>
    %24 = arith.addf %20, %23 : vector<1x32xf32>
    %25 = vector.extract_strided_slice %8 {offsets = [0, 128], sizes = [1, 32], strides = [1, 1]} : vector<1x1568xf32> to vector<1x32xf32>
    %26 = arith.addf %22, %25 : vector<1x32xf32>
    %27 = vector.extract_strided_slice %5 {offsets = [0, 160], sizes = [1, 32], strides = [1, 1]} : vector<1x1568xf32> to vector<1x32xf32>
    %28 = arith.addf %24, %27 : vector<1x32xf32>
    %29 = vector.extract_strided_slice %8 {offsets = [0, 160], sizes = [1, 32], strides = [1, 1]} : vector<1x1568xf32> to vector<1x32xf32>
    %30 = arith.addf %26, %29 : vector<1x32xf32>
    %31 = vector.extract_strided_slice %5 {offsets = [0, 192], sizes = [1, 32], strides = [1, 1]} : vector<1x1568xf32> to vector<1x32xf32>
    %32 = arith.addf %28, %31 : vector<1x32xf32>
    %33 = vector.extract_strided_slice %8 {offsets = [0, 192], sizes = [1, 32], strides = [1, 1]} : vector<1x1568xf32> to vector<1x32xf32>
    %34 = arith.addf %30, %33 : vector<1x32xf32>
    %35 = vector.extract_strided_slice %5 {offsets = [0, 224], sizes = [1, 32], strides = [1, 1]} : vector<1x1568xf32> to vector<1x32xf32>
    %36 = arith.addf %32, %35 : vector<1x32xf32>
    %37 = vector.extract_strided_slice %8 {offsets = [0, 224], sizes = [1, 32], strides = [1, 1]} : vector<1x1568xf32> to vector<1x32xf32>
    %38 = arith.addf %34, %37 : vector<1x32xf32>
    %39 = vector.extract_strided_slice %5 {offsets = [0, 256], sizes = [1, 32], strides = [1, 1]} : vector<1x1568xf32> to vector<1x32xf32>
    %40 = arith.addf %36, %39 : vector<1x32xf32>
    %41 = vector.extract_strided_slice %8 {offsets = [0, 256], sizes = [1, 32], strides = [1, 1]} : vector<1x1568xf32> to vector<1x32xf32>
    %42 = arith.addf %38, %41 : vector<1x32xf32>
    %43 = vector.extract_strided_slice %5 {offsets = [0, 288], sizes = [1, 32], strides = [1, 1]} : vector<1x1568xf32> to vector<1x32xf32>
    %44 = arith.addf %40, %43 : vector<1x32xf32>
    %45 = vector.extract_strided_slice %8 {offsets = [0, 288], sizes = [1, 32], strides = [1, 1]} : vector<1x1568xf32> to vector<1x32xf32>
    %46 = arith.addf %42, %45 : vector<1x32xf32>
    %47 = vector.extract_strided_slice %5 {offsets = [0, 320], sizes = [1, 32], strides = [1, 1]} : vector<1x1568xf32> to vector<1x32xf32>
    %48 = arith.addf %44, %47 : vector<1x32xf32>
    %49 = vector.extract_strided_slice %8 {offsets = [0, 320], sizes = [1, 32], strides = [1, 1]} : vector<1x1568xf32> to vector<1x32xf32>
    %50 = arith.addf %46, %49 : vector<1x32xf32>
    %51 = vector.extract_strided_slice %5 {offsets = [0, 352], sizes = [1, 32], strides = [1, 1]} : vector<1x1568xf32> to vector<1x32xf32>
    %52 = arith.addf %48, %51 : vector<1x32xf32>
    %53 = vector.extract_strided_slice %8 {offsets = [0, 352], sizes = [1, 32], strides = [1, 1]} : vector<1x1568xf32> to vector<1x32xf32>
    %54 = arith.addf %50, %53 : vector<1x32xf32>
    %55 = vector.extract_strided_slice %5 {offsets = [0, 384], sizes = [1, 32], strides = [1, 1]} : vector<1x1568xf32> to vector<1x32xf32>
    %56 = arith.addf %52, %55 : vector<1x32xf32>
    %57 = vector.extract_strided_slice %8 {offsets = [0, 384], sizes = [1, 32], strides = [1, 1]} : vector<1x1568xf32> to vector<1x32xf32>
    %58 = arith.addf %54, %57 : vector<1x32xf32>
    %59 = vector.extract_strided_slice %5 {offsets = [0, 416], sizes = [1, 32], strides = [1, 1]} : vector<1x1568xf32> to vector<1x32xf32>
    %60 = arith.addf %56, %59 : vector<1x32xf32>
    %61 = vector.extract_strided_slice %8 {offsets = [0, 416], sizes = [1, 32], strides = [1, 1]} : vector<1x1568xf32> to vector<1x32xf32>
    %62 = arith.addf %58, %61 : vector<1x32xf32>
    %63 = vector.extract_strided_slice %5 {offsets = [0, 448], sizes = [1, 32], strides = [1, 1]} : vector<1x1568xf32> to vector<1x32xf32>
    %64 = arith.addf %60, %63 : vector<1x32xf32>
    %65 = vector.extract_strided_slice %8 {offsets = [0, 448], sizes = [1, 32], strides = [1, 1]} : vector<1x1568xf32> to vector<1x32xf32>
    %66 = arith.addf %62, %65 : vector<1x32xf32>
    %67 = vector.extract_strided_slice %5 {offsets = [0, 480], sizes = [1, 32], strides = [1, 1]} : vector<1x1568xf32> to vector<1x32xf32>
    %68 = arith.addf %64, %67 : vector<1x32xf32>
    %69 = vector.extract_strided_slice %8 {offsets = [0, 480], sizes = [1, 32], strides = [1, 1]} : vector<1x1568xf32> to vector<1x32xf32>
    %70 = arith.addf %66, %69 : vector<1x32xf32>
    %71 = vector.extract_strided_slice %5 {offsets = [0, 512], sizes = [1, 32], strides = [1, 1]} : vector<1x1568xf32> to vector<1x32xf32>
    %72 = arith.addf %68, %71 : vector<1x32xf32>
    %73 = vector.extract_strided_slice %8 {offsets = [0, 512], sizes = [1, 32], strides = [1, 1]} : vector<1x1568xf32> to vector<1x32xf32>
    %74 = arith.addf %70, %73 : vector<1x32xf32>
    %75 = vector.extract_strided_slice %5 {offsets = [0, 544], sizes = [1, 32], strides = [1, 1]} : vector<1x1568xf32> to vector<1x32xf32>
    %76 = arith.addf %72, %75 : vector<1x32xf32>
    %77 = vector.extract_strided_slice %8 {offsets = [0, 544], sizes = [1, 32], strides = [1, 1]} : vector<1x1568xf32> to vector<1x32xf32>
    %78 = arith.addf %74, %77 : vector<1x32xf32>
    %79 = vector.extract_strided_slice %5 {offsets = [0, 576], sizes = [1, 32], strides = [1, 1]} : vector<1x1568xf32> to vector<1x32xf32>
    %80 = arith.addf %76, %79 : vector<1x32xf32>
    %81 = vector.extract_strided_slice %8 {offsets = [0, 576], sizes = [1, 32], strides = [1, 1]} : vector<1x1568xf32> to vector<1x32xf32>
    %82 = arith.addf %78, %81 : vector<1x32xf32>
    %83 = vector.extract_strided_slice %5 {offsets = [0, 608], sizes = [1, 32], strides = [1, 1]} : vector<1x1568xf32> to vector<1x32xf32>
    %84 = arith.addf %80, %83 : vector<1x32xf32>
    %85 = vector.extract_strided_slice %8 {offsets = [0, 608], sizes = [1, 32], strides = [1, 1]} : vector<1x1568xf32> to vector<1x32xf32>
    %86 = arith.addf %82, %85 : vector<1x32xf32>
    %87 = vector.extract_strided_slice %5 {offsets = [0, 640], sizes = [1, 32], strides = [1, 1]} : vector<1x1568xf32> to vector<1x32xf32>
    %88 = arith.addf %84, %87 : vector<1x32xf32>
    %89 = vector.extract_strided_slice %8 {offsets = [0, 640], sizes = [1, 32], strides = [1, 1]} : vector<1x1568xf32> to vector<1x32xf32>
    %90 = arith.addf %86, %89 : vector<1x32xf32>
    %91 = vector.extract_strided_slice %5 {offsets = [0, 672], sizes = [1, 32], strides = [1, 1]} : vector<1x1568xf32> to vector<1x32xf32>
    %92 = arith.addf %88, %91 : vector<1x32xf32>
    %93 = vector.extract_strided_slice %8 {offsets = [0, 672], sizes = [1, 32], strides = [1, 1]} : vector<1x1568xf32> to vector<1x32xf32>
    %94 = arith.addf %90, %93 : vector<1x32xf32>
    %95 = vector.extract_strided_slice %5 {offsets = [0, 704], sizes = [1, 32], strides = [1, 1]} : vector<1x1568xf32> to vector<1x32xf32>
    %96 = arith.addf %92, %95 : vector<1x32xf32>
    %97 = vector.extract_strided_slice %8 {offsets = [0, 704], sizes = [1, 32], strides = [1, 1]} : vector<1x1568xf32> to vector<1x32xf32>
    %98 = arith.addf %94, %97 : vector<1x32xf32>
    %99 = vector.extract_strided_slice %5 {offsets = [0, 736], sizes = [1, 32], strides = [1, 1]} : vector<1x1568xf32> to vector<1x32xf32>
    %100 = arith.addf %96, %99 : vector<1x32xf32>
    %101 = vector.extract_strided_slice %8 {offsets = [0, 736], sizes = [1, 32], strides = [1, 1]} : vector<1x1568xf32> to vector<1x32xf32>
    %102 = arith.addf %98, %101 : vector<1x32xf32>
    %103 = vector.extract_strided_slice %5 {offsets = [0, 768], sizes = [1, 32], strides = [1, 1]} : vector<1x1568xf32> to vector<1x32xf32>
    %104 = arith.addf %100, %103 : vector<1x32xf32>
    %105 = vector.extract_strided_slice %8 {offsets = [0, 768], sizes = [1, 32], strides = [1, 1]} : vector<1x1568xf32> to vector<1x32xf32>
    %106 = arith.addf %102, %105 : vector<1x32xf32>
    %107 = vector.extract_strided_slice %5 {offsets = [0, 800], sizes = [1, 32], strides = [1, 1]} : vector<1x1568xf32> to vector<1x32xf32>
    %108 = arith.addf %104, %107 : vector<1x32xf32>
    %109 = vector.extract_strided_slice %8 {offsets = [0, 800], sizes = [1, 32], strides = [1, 1]} : vector<1x1568xf32> to vector<1x32xf32>
    %110 = arith.addf %106, %109 : vector<1x32xf32>
    %111 = vector.extract_strided_slice %5 {offsets = [0, 832], sizes = [1, 32], strides = [1, 1]} : vector<1x1568xf32> to vector<1x32xf32>
    %112 = arith.addf %108, %111 : vector<1x32xf32>
    %113 = vector.extract_strided_slice %8 {offsets = [0, 832], sizes = [1, 32], strides = [1, 1]} : vector<1x1568xf32> to vector<1x32xf32>
    %114 = arith.addf %110, %113 : vector<1x32xf32>
    %115 = vector.extract_strided_slice %5 {offsets = [0, 864], sizes = [1, 32], strides = [1, 1]} : vector<1x1568xf32> to vector<1x32xf32>
    %116 = arith.addf %112, %115 : vector<1x32xf32>
    %117 = vector.extract_strided_slice %8 {offsets = [0, 864], sizes = [1, 32], strides = [1, 1]} : vector<1x1568xf32> to vector<1x32xf32>
    %118 = arith.addf %114, %117 : vector<1x32xf32>
    %119 = vector.extract_strided_slice %5 {offsets = [0, 896], sizes = [1, 32], strides = [1, 1]} : vector<1x1568xf32> to vector<1x32xf32>
    %120 = arith.addf %116, %119 : vector<1x32xf32>
    %121 = vector.extract_strided_slice %8 {offsets = [0, 896], sizes = [1, 32], strides = [1, 1]} : vector<1x1568xf32> to vector<1x32xf32>
    %122 = arith.addf %118, %121 : vector<1x32xf32>
    %123 = vector.extract_strided_slice %5 {offsets = [0, 928], sizes = [1, 32], strides = [1, 1]} : vector<1x1568xf32> to vector<1x32xf32>
    %124 = arith.addf %120, %123 : vector<1x32xf32>
    %125 = vector.extract_strided_slice %8 {offsets = [0, 928], sizes = [1, 32], strides = [1, 1]} : vector<1x1568xf32> to vector<1x32xf32>
    %126 = arith.addf %122, %125 : vector<1x32xf32>
    %127 = vector.extract_strided_slice %5 {offsets = [0, 960], sizes = [1, 32], strides = [1, 1]} : vector<1x1568xf32> to vector<1x32xf32>
    %128 = arith.addf %124, %127 : vector<1x32xf32>
    %129 = vector.extract_strided_slice %8 {offsets = [0, 960], sizes = [1, 32], strides = [1, 1]} : vector<1x1568xf32> to vector<1x32xf32>
    %130 = arith.addf %126, %129 : vector<1x32xf32>
    %131 = vector.extract_strided_slice %5 {offsets = [0, 992], sizes = [1, 32], strides = [1, 1]} : vector<1x1568xf32> to vector<1x32xf32>
    %132 = arith.addf %128, %131 : vector<1x32xf32>
    %133 = vector.extract_strided_slice %8 {offsets = [0, 992], sizes = [1, 32], strides = [1, 1]} : vector<1x1568xf32> to vector<1x32xf32>
    %134 = arith.addf %130, %133 : vector<1x32xf32>
    %135 = vector.extract_strided_slice %5 {offsets = [0, 1024], sizes = [1, 32], strides = [1, 1]} : vector<1x1568xf32> to vector<1x32xf32>
    %136 = arith.addf %132, %135 : vector<1x32xf32>
    %137 = vector.extract_strided_slice %8 {offsets = [0, 1024], sizes = [1, 32], strides = [1, 1]} : vector<1x1568xf32> to vector<1x32xf32>
    %138 = arith.addf %134, %137 : vector<1x32xf32>
    %139 = vector.extract_strided_slice %5 {offsets = [0, 1056], sizes = [1, 32], strides = [1, 1]} : vector<1x1568xf32> to vector<1x32xf32>
    %140 = arith.addf %136, %139 : vector<1x32xf32>
    %141 = vector.extract_strided_slice %8 {offsets = [0, 1056], sizes = [1, 32], strides = [1, 1]} : vector<1x1568xf32> to vector<1x32xf32>
    %142 = arith.addf %138, %141 : vector<1x32xf32>
    %143 = vector.extract_strided_slice %5 {offsets = [0, 1088], sizes = [1, 32], strides = [1, 1]} : vector<1x1568xf32> to vector<1x32xf32>
    %144 = arith.addf %140, %143 : vector<1x32xf32>
    %145 = vector.extract_strided_slice %8 {offsets = [0, 1088], sizes = [1, 32], strides = [1, 1]} : vector<1x1568xf32> to vector<1x32xf32>
    %146 = arith.addf %142, %145 : vector<1x32xf32>
    %147 = vector.extract_strided_slice %5 {offsets = [0, 1120], sizes = [1, 32], strides = [1, 1]} : vector<1x1568xf32> to vector<1x32xf32>
    %148 = arith.addf %144, %147 : vector<1x32xf32>
    %149 = vector.extract_strided_slice %8 {offsets = [0, 1120], sizes = [1, 32], strides = [1, 1]} : vector<1x1568xf32> to vector<1x32xf32>
    %150 = arith.addf %146, %149 : vector<1x32xf32>
    %151 = vector.extract_strided_slice %5 {offsets = [0, 1152], sizes = [1, 32], strides = [1, 1]} : vector<1x1568xf32> to vector<1x32xf32>
    %152 = arith.addf %148, %151 : vector<1x32xf32>
    %153 = vector.extract_strided_slice %8 {offsets = [0, 1152], sizes = [1, 32], strides = [1, 1]} : vector<1x1568xf32> to vector<1x32xf32>
    %154 = arith.addf %150, %153 : vector<1x32xf32>
    %155 = vector.extract_strided_slice %5 {offsets = [0, 1184], sizes = [1, 32], strides = [1, 1]} : vector<1x1568xf32> to vector<1x32xf32>
    %156 = arith.addf %152, %155 : vector<1x32xf32>
    %157 = vector.extract_strided_slice %8 {offsets = [0, 1184], sizes = [1, 32], strides = [1, 1]} : vector<1x1568xf32> to vector<1x32xf32>
    %158 = arith.addf %154, %157 : vector<1x32xf32>
    %159 = vector.extract_strided_slice %5 {offsets = [0, 1216], sizes = [1, 32], strides = [1, 1]} : vector<1x1568xf32> to vector<1x32xf32>
    %160 = arith.addf %156, %159 : vector<1x32xf32>
    %161 = vector.extract_strided_slice %8 {offsets = [0, 1216], sizes = [1, 32], strides = [1, 1]} : vector<1x1568xf32> to vector<1x32xf32>
    %162 = arith.addf %158, %161 : vector<1x32xf32>
    %163 = vector.extract_strided_slice %5 {offsets = [0, 1248], sizes = [1, 32], strides = [1, 1]} : vector<1x1568xf32> to vector<1x32xf32>
    %164 = arith.addf %160, %163 : vector<1x32xf32>
    %165 = vector.extract_strided_slice %8 {offsets = [0, 1248], sizes = [1, 32], strides = [1, 1]} : vector<1x1568xf32> to vector<1x32xf32>
    %166 = arith.addf %162, %165 : vector<1x32xf32>
    %167 = vector.extract_strided_slice %5 {offsets = [0, 1280], sizes = [1, 32], strides = [1, 1]} : vector<1x1568xf32> to vector<1x32xf32>
    %168 = arith.addf %164, %167 : vector<1x32xf32>
    %169 = vector.extract_strided_slice %8 {offsets = [0, 1280], sizes = [1, 32], strides = [1, 1]} : vector<1x1568xf32> to vector<1x32xf32>
    %170 = arith.addf %166, %169 : vector<1x32xf32>
    %171 = vector.extract_strided_slice %5 {offsets = [0, 1312], sizes = [1, 32], strides = [1, 1]} : vector<1x1568xf32> to vector<1x32xf32>
    %172 = arith.addf %168, %171 : vector<1x32xf32>
    %173 = vector.extract_strided_slice %8 {offsets = [0, 1312], sizes = [1, 32], strides = [1, 1]} : vector<1x1568xf32> to vector<1x32xf32>
    %174 = arith.addf %170, %173 : vector<1x32xf32>
    %175 = vector.extract_strided_slice %5 {offsets = [0, 1344], sizes = [1, 32], strides = [1, 1]} : vector<1x1568xf32> to vector<1x32xf32>
    %176 = arith.addf %172, %175 : vector<1x32xf32>
    %177 = vector.extract_strided_slice %8 {offsets = [0, 1344], sizes = [1, 32], strides = [1, 1]} : vector<1x1568xf32> to vector<1x32xf32>
    %178 = arith.addf %174, %177 : vector<1x32xf32>
    %179 = vector.extract_strided_slice %5 {offsets = [0, 1376], sizes = [1, 32], strides = [1, 1]} : vector<1x1568xf32> to vector<1x32xf32>
    %180 = arith.addf %176, %179 : vector<1x32xf32>
    %181 = vector.extract_strided_slice %8 {offsets = [0, 1376], sizes = [1, 32], strides = [1, 1]} : vector<1x1568xf32> to vector<1x32xf32>
    %182 = arith.addf %178, %181 : vector<1x32xf32>
    %183 = vector.extract_strided_slice %5 {offsets = [0, 1408], sizes = [1, 32], strides = [1, 1]} : vector<1x1568xf32> to vector<1x32xf32>
    %184 = arith.addf %180, %183 : vector<1x32xf32>
    %185 = vector.extract_strided_slice %8 {offsets = [0, 1408], sizes = [1, 32], strides = [1, 1]} : vector<1x1568xf32> to vector<1x32xf32>
    %186 = arith.addf %182, %185 : vector<1x32xf32>
    %187 = vector.extract_strided_slice %5 {offsets = [0, 1440], sizes = [1, 32], strides = [1, 1]} : vector<1x1568xf32> to vector<1x32xf32>
    %188 = arith.addf %184, %187 : vector<1x32xf32>
    %189 = vector.extract_strided_slice %8 {offsets = [0, 1440], sizes = [1, 32], strides = [1, 1]} : vector<1x1568xf32> to vector<1x32xf32>
    %190 = arith.addf %186, %189 : vector<1x32xf32>
    %191 = vector.extract_strided_slice %5 {offsets = [0, 1472], sizes = [1, 32], strides = [1, 1]} : vector<1x1568xf32> to vector<1x32xf32>
    %192 = arith.addf %188, %191 : vector<1x32xf32>
    %193 = vector.extract_strided_slice %8 {offsets = [0, 1472], sizes = [1, 32], strides = [1, 1]} : vector<1x1568xf32> to vector<1x32xf32>
    %194 = arith.addf %190, %193 : vector<1x32xf32>
    %195 = vector.extract_strided_slice %5 {offsets = [0, 1504], sizes = [1, 32], strides = [1, 1]} : vector<1x1568xf32> to vector<1x32xf32>
    %196 = arith.addf %192, %195 : vector<1x32xf32>
    %197 = vector.extract_strided_slice %8 {offsets = [0, 1504], sizes = [1, 32], strides = [1, 1]} : vector<1x1568xf32> to vector<1x32xf32>
    %198 = arith.addf %194, %197 : vector<1x32xf32>
    %199 = vector.extract_strided_slice %5 {offsets = [0, 1536], sizes = [1, 32], strides = [1, 1]} : vector<1x1568xf32> to vector<1x32xf32>
    %200 = arith.addf %196, %199 : vector<1x32xf32>
    %201 = vector.extract_strided_slice %8 {offsets = [0, 1536], sizes = [1, 32], strides = [1, 1]} : vector<1x1568xf32> to vector<1x32xf32>
    %202 = arith.addf %198, %201 : vector<1x32xf32>
    %cst_5 = arith.constant 0.0102040814 : f32
    %203 = vector.broadcast %cst_5 : f32 to vector<1x32xf32>
    %204 = arith.mulf %200, %203 : vector<1x32xf32>
    %cst_6 = arith.constant 0.0102040814 : f32
    %205 = vector.broadcast %cst_6 : f32 to vector<1x32xf32>
    %206 = arith.mulf %202, %205 : vector<1x32xf32>
    %207 = arith.mulf %204, %204 : vector<1x32xf32>
    %208 = arith.subf %206, %207 : vector<1x32xf32>
    %c0_7 = arith.constant 0 : index
    %c0_8 = arith.constant 0 : index
    %209 = vector.load %arg3[%c0_7, %c0_8] : memref<2x32xf32, #tpu.memory_space<vmem>>, vector<1x32xf32>
    %c1 = arith.constant 1 : index
    %c0_9 = arith.constant 0 : index
    %210 = vector.load %arg3[%c1, %c0_9] : memref<2x32xf32, #tpu.memory_space<vmem>>, vector<1x32xf32>
    %cst_10 = arith.constant 9.99999974E-6 : f32
    %211 = vector.broadcast %cst_10 : f32 to vector<1x32xf32>
    %212 = arith.addf %208, %211 : vector<1x32xf32>
    %213 = math.rsqrt %212 : vector<1x32xf32>
    %214 = arith.mulf %209, %213 : vector<1x32xf32>
    %215 = arith.mulf %204, %214 : vector<1x32xf32>
    %216 = arith.subf %210, %215 : vector<1x32xf32>
    %217 = tpu.concatenate %214, %216 in 0 : vector<1x32xf32>, vector<1x32xf32> -> vector<2x32xf32>
    %c0_11 = arith.constant 0 : index
    %c0_12 = arith.constant 0 : index
    %218 = vector.load %arg16[%c0_11, %c0_12] : memref<2x1568xf32, #tpu.memory_space<vmem>>, vector<2x32xf32>
    tpu.vector_store %arg16[%c0_11, %c0_12], %217 {strides = array<i32>} : memref<2x1568xf32, #tpu.memory_space<vmem>>, vector<2x32xf32>,
    %c0_13 = arith.constant 0 : index
    %c32 = arith.constant 32 : index
    %219 = vector.load %arg16[%c0_13, %c32] : memref<2x1568xf32, #tpu.memory_space<vmem>>, vector<2x32xf32>
    tpu.vector_store %arg16[%c0_13, %c32], %217 {strides = array<i32>} : memref<2x1568xf32, #tpu.memory_space<vmem>>, vector<2x32xf32>,
    %c0_14 = arith.constant 0 : index
    %c64 = arith.constant 64 : index
    %220 = vector.load %arg16[%c0_14, %c64] : memref<2x1568xf32, #tpu.memory_space<vmem>>, vector<2x32xf32>
    tpu.vector_store %arg16[%c0_14, %c64], %217 {strides = array<i32>} : memref<2x1568xf32, #tpu.memory_space<vmem>>, vector<2x32xf32>,
    %c0_15 = arith.constant 0 : index
    %c96 = arith.constant 96 : index
    %221 = vector.load %arg16[%c0_15, %c96] : memref<2x1568xf32, #tpu.memory_space<vmem>>, vector<2x32xf32>
    tpu.vector_store %arg16[%c0_15, %c96], %217 {strides = array<i32>} : memref<2x1568xf32, #tpu.memory_space<vmem>>, vector<2x32xf32>,
    %c0_16 = arith.constant 0 : index
    %c128 = arith.constant 128 : index
    %222 = vector.load %arg16[%c0_16, %c128] : memref<2x1568xf32, #tpu.memory_space<vmem>>, vector<2x32xf32>
    tpu.vector_store %arg16[%c0_16, %c128], %217 {strides = array<i32>} : memref<2x1568xf32, #tpu.memory_space<vmem>>, vector<2x32xf32>,
    %c0_17 = arith.constant 0 : index
    %c160 = arith.constant 160 : index
    %223 = vector.load %arg16[%c0_17, %c160] : memref<2x1568xf32, #tpu.memory_space<vmem>>, vector<2x32xf32>
    tpu.vector_store %arg16[%c0_17, %c160], %217 {strides = array<i32>} : memref<2x1568xf32, #tpu.memory_space<vmem>>, vector<2x32xf32>,
    %c0_18 = arith.constant 0 : index
    %c192 = arith.constant 192 : index
    %224 = vector.load %arg16[%c0_18, %c192] : memref<2x1568xf32, #tpu.memory_space<vmem>>, vector<2x32xf32>
    tpu.vector_store %arg16[%c0_18, %c192], %217 {strides = array<i32>} : memref<2x1568xf32, #tpu.memory_space<vmem>>, vector<2x32xf32>,
    %c0_19 = arith.constant 0 : index
    %c224 = arith.constant 224 : index
    %225 = vector.load %arg16[%c0_19, %c224] : memref<2x1568xf32, #tpu.memory_space<vmem>>, vector<2x32xf32>
    tpu.vector_store %arg16[%c0_19, %c224], %217 {strides = array<i32>} : memref<2x1568xf32, #tpu.memory_space<vmem>>, vector<2x32xf32>,
    %c0_20 = arith.constant 0 : index
    %c256 = arith.constant 256 : index
    %226 = vector.load %arg16[%c0_20, %c256] : memref<2x1568xf32, #tpu.memory_space<vmem>>, vector<2x32xf32>
    tpu.vector_store %arg16[%c0_20, %c256], %217 {strides = array<i32>} : memref<2x1568xf32, #tpu.memory_space<vmem>>, vector<2x32xf32>,
    %c0_21 = arith.constant 0 : index
    %c288 = arith.constant 288 : index
    %227 = vector.load %arg16[%c0_21, %c288] : memref<2x1568xf32, #tpu.memory_space<vmem>>, vector<2x32xf32>
    tpu.vector_store %arg16[%c0_21, %c288], %217 {strides = array<i32>} : memref<2x1568xf32, #tpu.memory_space<vmem>>, vector<2x32xf32>,
    %c0_22 = arith.constant 0 : index
    %c320 = arith.constant 320 : index
    %228 = vector.load %arg16[%c0_22, %c320] : memref<2x1568xf32, #tpu.memory_space<vmem>>, vector<2x32xf32>
    tpu.vector_store %arg16[%c0_22, %c320], %217 {strides = array<i32>} : memref<2x1568xf32, #tpu.memory_space<vmem>>, vector<2x32xf32>,
    %c0_23 = arith.constant 0 : index
    %c352 = arith.constant 352 : index
    %229 = vector.load %arg16[%c0_23, %c352] : memref<2x1568xf32, #tpu.memory_space<vmem>>, vector<2x32xf32>
    tpu.vector_store %arg16[%c0_23, %c352], %217 {strides = array<i32>} : memref<2x1568xf32, #tpu.memory_space<vmem>>, vector<2x32xf32>,
    %c0_24 = arith.constant 0 : index
    %c384 = arith.constant 384 : index
    %230 = vector.load %arg16[%c0_24, %c384] : memref<2x1568xf32, #tpu.memory_space<vmem>>, vector<2x32xf32>
    tpu.vector_store %arg16[%c0_24, %c384], %217 {strides = array<i32>} : memref<2x1568xf32, #tpu.memory_space<vmem>>, vector<2x32xf32>,
    %c0_25 = arith.constant 0 : index
    %c416 = arith.constant 416 : index
    %231 = vector.load %arg16[%c0_25, %c416] : memref<2x1568xf32, #tpu.memory_space<vmem>>, vector<2x32xf32>
    tpu.vector_store %arg16[%c0_25, %c416], %217 {strides = array<i32>} : memref<2x1568xf32, #tpu.memory_space<vmem>>, vector<2x32xf32>,
    %c0_26 = arith.constant 0 : index
    %c448 = arith.constant 448 : index
    %232 = vector.load %arg16[%c0_26, %c448] : memref<2x1568xf32, #tpu.memory_space<vmem>>, vector<2x32xf32>
    tpu.vector_store %arg16[%c0_26, %c448], %217 {strides = array<i32>} : memref<2x1568xf32, #tpu.memory_space<vmem>>, vector<2x32xf32>,
    %c0_27 = arith.constant 0 : index
    %c480 = arith.constant 480 : index
    %233 = vector.load %arg16[%c0_27, %c480] : memref<2x1568xf32, #tpu.memory_space<vmem>>, vector<2x32xf32>
    tpu.vector_store %arg16[%c0_27, %c480], %217 {strides = array<i32>} : memref<2x1568xf32, #tpu.memory_space<vmem>>, vector<2x32xf32>,
    %c0_28 = arith.constant 0 : index
    %c512 = arith.constant 512 : index
    %234 = vector.load %arg16[%c0_28, %c512] : memref<2x1568xf32, #tpu.memory_space<vmem>>, vector<2x32xf32>
    tpu.vector_store %arg16[%c0_28, %c512], %217 {strides = array<i32>} : memref<2x1568xf32, #tpu.memory_space<vmem>>, vector<2x32xf32>,
    %c0_29 = arith.constant 0 : index
    %c544 = arith.constant 544 : index
    %235 = vector.load %arg16[%c0_29, %c544] : memref<2x1568xf32, #tpu.memory_space<vmem>>, vector<2x32xf32>
    tpu.vector_store %arg16[%c0_29, %c544], %217 {strides = array<i32>} : memref<2x1568xf32, #tpu.memory_space<vmem>>, vector<2x32xf32>,
    %c0_30 = arith.constant 0 : index
    %c576 = arith.constant 576 : index
    %236 = vector.load %arg16[%c0_30, %c576] : memref<2x1568xf32, #tpu.memory_space<vmem>>, vector<2x32xf32>
    tpu.vector_store %arg16[%c0_30, %c576], %217 {strides = array<i32>} : memref<2x1568xf32, #tpu.memory_space<vmem>>, vector<2x32xf32>,
    %c0_31 = arith.constant 0 : index
    %c608 = arith.constant 608 : index
    %237 = vector.load %arg16[%c0_31, %c608] : memref<2x1568xf32, #tpu.memory_space<vmem>>, vector<2x32xf32>
    tpu.vector_store %arg16[%c0_31, %c608], %217 {strides = array<i32>} : memref<2x1568xf32, #tpu.memory_space<vmem>>, vector<2x32xf32>,
    %c0_32 = arith.constant 0 : index
    %c640 = arith.constant 640 : index
    %238 = vector.load %arg16[%c0_32, %c640] : memref<2x1568xf32, #tpu.memory_space<vmem>>, vector<2x32xf32>
    tpu.vector_store %arg16[%c0_32, %c640], %217 {strides = array<i32>} : memref<2x1568xf32, #tpu.memory_space<vmem>>, vector<2x32xf32>,
    %c0_33 = arith.constant 0 : index
    %c672 = arith.constant 672 : index
    %239 = vector.load %arg16[%c0_33, %c672] : memref<2x1568xf32, #tpu.memory_space<vmem>>, vector<2x32xf32>
    tpu.vector_store %arg16[%c0_33, %c672], %217 {strides = array<i32>} : memref<2x1568xf32, #tpu.memory_space<vmem>>, vector<2x32xf32>,
    %c0_34 = arith.constant 0 : index
    %c704 = arith.constant 704 : index
    %240 = vector.load %arg16[%c0_34, %c704] : memref<2x1568xf32, #tpu.memory_space<vmem>>, vector<2x32xf32>
    tpu.vector_store %arg16[%c0_34, %c704], %217 {strides = array<i32>} : memref<2x1568xf32, #tpu.memory_space<vmem>>, vector<2x32xf32>,
    %c0_35 = arith.constant 0 : index
    %c736 = arith.constant 736 : index
    %241 = vector.load %arg16[%c0_35, %c736] : memref<2x1568xf32, #tpu.memory_space<vmem>>, vector<2x32xf32>
    tpu.vector_store %arg16[%c0_35, %c736], %217 {strides = array<i32>} : memref<2x1568xf32, #tpu.memory_space<vmem>>, vector<2x32xf32>,
    %c0_36 = arith.constant 0 : index
    %c768 = arith.constant 768 : index
    %242 = vector.load %arg16[%c0_36, %c768] : memref<2x1568xf32, #tpu.memory_space<vmem>>, vector<2x32xf32>
    tpu.vector_store %arg16[%c0_36, %c768], %217 {strides = array<i32>} : memref<2x1568xf32, #tpu.memory_space<vmem>>, vector<2x32xf32>,
    %c0_37 = arith.constant 0 : index
    %c800 = arith.constant 800 : index
    %243 = vector.load %arg16[%c0_37, %c800] : memref<2x1568xf32, #tpu.memory_space<vmem>>, vector<2x32xf32>
    tpu.vector_store %arg16[%c0_37, %c800], %217 {strides = array<i32>} : memref<2x1568xf32, #tpu.memory_space<vmem>>, vector<2x32xf32>,
    %c0_38 = arith.constant 0 : index
    %c832 = arith.constant 832 : index
    %244 = vector.load %arg16[%c0_38, %c832] : memref<2x1568xf32, #tpu.memory_space<vmem>>, vector<2x32xf32>
    tpu.vector_store %arg16[%c0_38, %c832], %217 {strides = array<i32>} : memref<2x1568xf32, #tpu.memory_space<vmem>>, vector<2x32xf32>,
    %c0_39 = arith.constant 0 : index
    %c864 = arith.constant 864 : index
    %245 = vector.load %arg16[%c0_39, %c864] : memref<2x1568xf32, #tpu.memory_space<vmem>>, vector<2x32xf32>
    tpu.vector_store %arg16[%c0_39, %c864], %217 {strides = array<i32>} : memref<2x1568xf32, #tpu.memory_space<vmem>>, vector<2x32xf32>,
    %c0_40 = arith.constant 0 : index
    %c896 = arith.constant 896 : index
    %246 = vector.load %arg16[%c0_40, %c896] : memref<2x1568xf32, #tpu.memory_space<vmem>>, vector<2x32xf32>
    tpu.vector_store %arg16[%c0_40, %c896], %217 {strides = array<i32>} : memref<2x1568xf32, #tpu.memory_space<vmem>>, vector<2x32xf32>,
    %c0_41 = arith.constant 0 : index
    %c928 = arith.constant 928 : index
    %247 = vector.load %arg16[%c0_41, %c928] : memref<2x1568xf32, #tpu.memory_space<vmem>>, vector<2x32xf32>
    tpu.vector_store %arg16[%c0_41, %c928], %217 {strides = array<i32>} : memref<2x1568xf32, #tpu.memory_space<vmem>>, vector<2x32xf32>,
    %c0_42 = arith.constant 0 : index
    %c960 = arith.constant 960 : index
    %248 = vector.load %arg16[%c0_42, %c960] : memref<2x1568xf32, #tpu.memory_space<vmem>>, vector<2x32xf32>
    tpu.vector_store %arg16[%c0_42, %c960], %217 {strides = array<i32>} : memref<2x1568xf32, #tpu.memory_space<vmem>>, vector<2x32xf32>,
    %c0_43 = arith.constant 0 : index
    %c992 = arith.constant 992 : index
    %249 = vector.load %arg16[%c0_43, %c992] : memref<2x1568xf32, #tpu.memory_space<vmem>>, vector<2x32xf32>
    tpu.vector_store %arg16[%c0_43, %c992], %217 {strides = array<i32>} : memref<2x1568xf32, #tpu.memory_space<vmem>>, vector<2x32xf32>,
    %c0_44 = arith.constant 0 : index
    %c1024 = arith.constant 1024 : index
    %250 = vector.load %arg16[%c0_44, %c1024] : memref<2x1568xf32, #tpu.memory_space<vmem>>, vector<2x32xf32>
    tpu.vector_store %arg16[%c0_44, %c1024], %217 {strides = array<i32>} : memref<2x1568xf32, #tpu.memory_space<vmem>>, vector<2x32xf32>,
    %c0_45 = arith.constant 0 : index
    %c1056 = arith.constant 1056 : index
    %251 = vector.load %arg16[%c0_45, %c1056] : memref<2x1568xf32, #tpu.memory_space<vmem>>, vector<2x32xf32>
    tpu.vector_store %arg16[%c0_45, %c1056], %217 {strides = array<i32>} : memref<2x1568xf32, #tpu.memory_space<vmem>>, vector<2x32xf32>,
    %c0_46 = arith.constant 0 : index
    %c1088 = arith.constant 1088 : index
    %252 = vector.load %arg16[%c0_46, %c1088] : memref<2x1568xf32, #tpu.memory_space<vmem>>, vector<2x32xf32>
    tpu.vector_store %arg16[%c0_46, %c1088], %217 {strides = array<i32>} : memref<2x1568xf32, #tpu.memory_space<vmem>>, vector<2x32xf32>,
    %c0_47 = arith.constant 0 : index
    %c1120 = arith.constant 1120 : index
    %253 = vector.load %arg16[%c0_47, %c1120] : memref<2x1568xf32, #tpu.memory_space<vmem>>, vector<2x32xf32>
    tpu.vector_store %arg16[%c0_47, %c1120], %217 {strides = array<i32>} : memref<2x1568xf32, #tpu.memory_space<vmem>>, vector<2x32xf32>,
    %c0_48 = arith.constant 0 : index
    %c1152 = arith.constant 1152 : index
    %254 = vector.load %arg16[%c0_48, %c1152] : memref<2x1568xf32, #tpu.memory_space<vmem>>, vector<2x32xf32>
    tpu.vector_store %arg16[%c0_48, %c1152], %217 {strides = array<i32>} : memref<2x1568xf32, #tpu.memory_space<vmem>>, vector<2x32xf32>,
    %c0_49 = arith.constant 0 : index
    %c1184 = arith.constant 1184 : index
    %255 = vector.load %arg16[%c0_49, %c1184] : memref<2x1568xf32, #tpu.memory_space<vmem>>, vector<2x32xf32>
    tpu.vector_store %arg16[%c0_49, %c1184], %217 {strides = array<i32>} : memref<2x1568xf32, #tpu.memory_space<vmem>>, vector<2x32xf32>,
    %c0_50 = arith.constant 0 : index
    %c1216 = arith.constant 1216 : index
    %256 = vector.load %arg16[%c0_50, %c1216] : memref<2x1568xf32, #tpu.memory_space<vmem>>, vector<2x32xf32>
    tpu.vector_store %arg16[%c0_50, %c1216], %217 {strides = array<i32>} : memref<2x1568xf32, #tpu.memory_space<vmem>>, vector<2x32xf32>,
    %c0_51 = arith.constant 0 : index
    %c1248 = arith.constant 1248 : index
    %257 = vector.load %arg16[%c0_51, %c1248] : memref<2x1568xf32, #tpu.memory_space<vmem>>, vector<2x32xf32>
    tpu.vector_store %arg16[%c0_51, %c1248], %217 {strides = array<i32>} : memref<2x1568xf32, #tpu.memory_space<vmem>>, vector<2x32xf32>,
    %c0_52 = arith.constant 0 : index
    %c1280 = arith.constant 1280 : index
    %258 = vector.load %arg16[%c0_52, %c1280] : memref<2x1568xf32, #tpu.memory_space<vmem>>, vector<2x32xf32>
    tpu.vector_store %arg16[%c0_52, %c1280], %217 {strides = array<i32>} : memref<2x1568xf32, #tpu.memory_space<vmem>>, vector<2x32xf32>,
    %c0_53 = arith.constant 0 : index
    %c1312 = arith.constant 1312 : index
    %259 = vector.load %arg16[%c0_53, %c1312] : memref<2x1568xf32, #tpu.memory_space<vmem>>, vector<2x32xf32>
    tpu.vector_store %arg16[%c0_53, %c1312], %217 {strides = array<i32>} : memref<2x1568xf32, #tpu.memory_space<vmem>>, vector<2x32xf32>,
    %c0_54 = arith.constant 0 : index
    %c1344 = arith.constant 1344 : index
    %260 = vector.load %arg16[%c0_54, %c1344] : memref<2x1568xf32, #tpu.memory_space<vmem>>, vector<2x32xf32>
    tpu.vector_store %arg16[%c0_54, %c1344], %217 {strides = array<i32>} : memref<2x1568xf32, #tpu.memory_space<vmem>>, vector<2x32xf32>,
    %c0_55 = arith.constant 0 : index
    %c1376 = arith.constant 1376 : index
    %261 = vector.load %arg16[%c0_55, %c1376] : memref<2x1568xf32, #tpu.memory_space<vmem>>, vector<2x32xf32>
    tpu.vector_store %arg16[%c0_55, %c1376], %217 {strides = array<i32>} : memref<2x1568xf32, #tpu.memory_space<vmem>>, vector<2x32xf32>,
    %c0_56 = arith.constant 0 : index
    %c1408 = arith.constant 1408 : index
    %262 = vector.load %arg16[%c0_56, %c1408] : memref<2x1568xf32, #tpu.memory_space<vmem>>, vector<2x32xf32>
    tpu.vector_store %arg16[%c0_56, %c1408], %217 {strides = array<i32>} : memref<2x1568xf32, #tpu.memory_space<vmem>>, vector<2x32xf32>,
    %c0_57 = arith.constant 0 : index
    %c1440 = arith.constant 1440 : index
    %263 = vector.load %arg16[%c0_57, %c1440] : memref<2x1568xf32, #tpu.memory_space<vmem>>, vector<2x32xf32>
    tpu.vector_store %arg16[%c0_57, %c1440], %217 {strides = array<i32>} : memref<2x1568xf32, #tpu.memory_space<vmem>>, vector<2x32xf32>,
    %c0_58 = arith.constant 0 : index
    %c1472 = arith.constant 1472 : index
    %264 = vector.load %arg16[%c0_58, %c1472] : memref<2x1568xf32, #tpu.memory_space<vmem>>, vector<2x32xf32>
    tpu.vector_store %arg16[%c0_58, %c1472], %217 {strides = array<i32>} : memref<2x1568xf32, #tpu.memory_space<vmem>>, vector<2x32xf32>,
    %c0_59 = arith.constant 0 : index
    %c1504 = arith.constant 1504 : index
    %265 = vector.load %arg16[%c0_59, %c1504] : memref<2x1568xf32, #tpu.memory_space<vmem>>, vector<2x32xf32>
    tpu.vector_store %arg16[%c0_59, %c1504], %217 {strides = array<i32>} : memref<2x1568xf32, #tpu.memory_space<vmem>>, vector<2x32xf32>,
    %c0_60 = arith.constant 0 : index
    %c1536 = arith.constant 1536 : index
    %266 = vector.load %arg16[%c0_60, %c1536] : memref<2x1568xf32, #tpu.memory_space<vmem>>, vector<2x32xf32>
    tpu.vector_store %arg16[%c0_60, %c1536], %217 {strides = array<i32>} : memref<2x1568xf32, #tpu.memory_space<vmem>>, vector<2x32xf32>,
    %c0_61 = arith.constant 0 : index
    %c0_62 = arith.constant 0 : index
    %267 = vector.load %arg16[%c0_61, %c0_62] : memref<2x1568xf32, #tpu.memory_space<vmem>>, vector<1x1568xf32>
    %268 = vector.broadcast %267 : vector<1x1568xf32> to vector<2x1568xf32>
    %269 = arith.mulf %3, %268 : vector<2x1568xf32>
    %c1_63 = arith.constant 1 : index
    %c0_64 = arith.constant 0 : index
    %270 = vector.load %arg16[%c1_63, %c0_64] : memref<2x1568xf32, #tpu.memory_space<vmem>>, vector<1x1568xf32>
    %271 = vector.broadcast %270 : vector<1x1568xf32> to vector<2x1568xf32>
    %272 = arith.addf %269, %271 : vector<2x1568xf32>
    %cst_65 = arith.constant 0.000000e+00 : f32
    %273 = vector.broadcast %cst_65 : f32 to vector<2x1568xf32>
    %274 = arith.maximumf %272, %273 : vector<2x1568xf32>
    %275 = arith.truncf %274 : vector<2x1568xf32> to vector<2x1568xbf16>
    %c0_66 = arith.constant 0 : index
    %c0_67 = arith.constant 0 : index
    %276 = vector.load %arg4[%c0_66, %c0_67] : memref<1568x256xbf16, #tpu.memory_space<vmem>>, vector<1568x256xbf16>
    %cst_68 = arith.constant dense<0.000000e+00> : vector<2x256xf32>
    %277 = tpu.matmul %275, %276, %cst_68 {dimension_numbers = #tpu.dot_dimension_numbers<[1], [0], [0], [1], [0, 0, 1, 1], [], []>} : vector<2x1568xbf16>, vector<1568x256xbf16>, vector<2x256xf32> -> vector<2x256xf32>
    %cst_69 = arith.constant dense<0.000000e+00> : vector<256xf32>
    %278 = vector.multi_reduction <add>, %277, %cst_69 [0] : vector<2x256xf32> to vector<256xf32>
    %279 = vector.shape_cast %278 : vector<256xf32> to vector<1x256xf32>
    %280 = arith.mulf %277, %277 : vector<2x256xf32>
    %cst_70 = arith.constant dense<0.000000e+00> : vector<256xf32>
    %281 = vector.multi_reduction <add>, %280, %cst_70 [0] : vector<2x256xf32> to vector<256xf32>
    %282 = vector.shape_cast %281 : vector<256xf32> to vector<1x256xf32>
    %283 = vector.extract_strided_slice %279 {offsets = [0, 0], sizes = [1, 64], strides = [1, 1]} : vector<1x256xf32> to vector<1x64xf32>
    %284 = vector.extract_strided_slice %282 {offsets = [0, 0], sizes = [1, 64], strides = [1, 1]} : vector<1x256xf32> to vector<1x64xf32>
    %285 = vector.extract_strided_slice %279 {offsets = [0, 64], sizes = [1, 64], strides = [1, 1]} : vector<1x256xf32> to vector<1x64xf32>
    %286 = arith.addf %283, %285 : vector<1x64xf32>
    %287 = vector.extract_strided_slice %282 {offsets = [0, 64], sizes = [1, 64], strides = [1, 1]} : vector<1x256xf32> to vector<1x64xf32>
    %288 = arith.addf %284, %287 : vector<1x64xf32>
    %289 = vector.extract_strided_slice %279 {offsets = [0, 128], sizes = [1, 64], strides = [1, 1]} : vector<1x256xf32> to vector<1x64xf32>
    %290 = arith.addf %286, %289 : vector<1x64xf32>
    %291 = vector.extract_strided_slice %282 {offsets = [0, 128], sizes = [1, 64], strides = [1, 1]} : vector<1x256xf32> to vector<1x64xf32>
    %292 = arith.addf %288, %291 : vector<1x64xf32>
    %293 = vector.extract_strided_slice %279 {offsets = [0, 192], sizes = [1, 64], strides = [1, 1]} : vector<1x256xf32> to vector<1x64xf32>
    %294 = arith.addf %290, %293 : vector<1x64xf32>
    %295 = vector.extract_strided_slice %282 {offsets = [0, 192], sizes = [1, 64], strides = [1, 1]} : vector<1x256xf32> to vector<1x64xf32>
    %296 = arith.addf %292, %295 : vector<1x64xf32>
    %cst_71 = arith.constant 1.250000e-01 : f32
    %297 = vector.broadcast %cst_71 : f32 to vector<1x64xf32>
    %298 = arith.mulf %294, %297 : vector<1x64xf32>
    %cst_72 = arith.constant 1.250000e-01 : f32
    %299 = vector.broadcast %cst_72 : f32 to vector<1x64xf32>
    %300 = arith.mulf %296, %299 : vector<1x64xf32>
    %301 = arith.mulf %298, %298 : vector<1x64xf32>
    %302 = arith.subf %300, %301 : vector<1x64xf32>
    %c0_73 = arith.constant 0 : index
    %c0_74 = arith.constant 0 : index
    %303 = vector.load %arg5[%c0_73, %c0_74] : memref<2x64xf32, #tpu.memory_space<vmem>>, vector<1x64xf32>
    %c1_75 = arith.constant 1 : index
    %c0_76 = arith.constant 0 : index
    %304 = vector.load %arg5[%c1_75, %c0_76] : memref<2x64xf32, #tpu.memory_space<vmem>>, vector<1x64xf32>
    %cst_77 = arith.constant 9.99999974E-6 : f32
    %305 = vector.broadcast %cst_77 : f32 to vector<1x64xf32>
    %306 = arith.addf %302, %305 : vector<1x64xf32>
    %307 = math.rsqrt %306 : vector<1x64xf32>
    %308 = arith.mulf %303, %307 : vector<1x64xf32>
    %309 = arith.mulf %298, %308 : vector<1x64xf32>
    %310 = arith.subf %304, %309 : vector<1x64xf32>
    %311 = tpu.concatenate %308, %310 in 0 : vector<1x64xf32>, vector<1x64xf32> -> vector<2x64xf32>
    %c0_78 = arith.constant 0 : index
    %c0_79 = arith.constant 0 : index
    %312 = vector.load %arg16[%c0_78, %c0_79] : memref<2x1568xf32, #tpu.memory_space<vmem>>, vector<2x64xf32>
    tpu.vector_store %arg16[%c0_78, %c0_79], %311 {strides = array<i32>} : memref<2x1568xf32, #tpu.memory_space<vmem>>, vector<2x64xf32>,
    %c0_80 = arith.constant 0 : index
    %c64_81 = arith.constant 64 : index
    %313 = vector.load %arg16[%c0_80, %c64_81] : memref<2x1568xf32, #tpu.memory_space<vmem>>, vector<2x64xf32>
    tpu.vector_store %arg16[%c0_80, %c64_81], %311 {strides = array<i32>} : memref<2x1568xf32, #tpu.memory_space<vmem>>, vector<2x64xf32>,
    %c0_82 = arith.constant 0 : index
    %c128_83 = arith.constant 128 : index
    %314 = vector.load %arg16[%c0_82, %c128_83] : memref<2x1568xf32, #tpu.memory_space<vmem>>, vector<2x64xf32>
    tpu.vector_store %arg16[%c0_82, %c128_83], %311 {strides = array<i32>} : memref<2x1568xf32, #tpu.memory_space<vmem>>, vector<2x64xf32>,
    %c0_84 = arith.constant 0 : index
    %c192_85 = arith.constant 192 : index
    %315 = vector.load %arg16[%c0_84, %c192_85] : memref<2x1568xf32, #tpu.memory_space<vmem>>, vector<2x64xf32>
    tpu.vector_store %arg16[%c0_84, %c192_85], %311 {strides = array<i32>} : memref<2x1568xf32, #tpu.memory_space<vmem>>, vector<2x64xf32>,
    %c0_86 = arith.constant 0 : index
    %c0_87 = arith.constant 0 : index
    %316 = vector.load %arg16[%c0_86, %c0_87] : memref<2x1568xf32, #tpu.memory_space<vmem>>, vector<1x256xf32>
    %317 = vector.broadcast %316 : vector<1x256xf32> to vector<2x256xf32>
    %318 = arith.mulf %277, %317 : vector<2x256xf32>
    %c1_88 = arith.constant 1 : index
    %c0_89 = arith.constant 0 : index
    %319 = vector.load %arg16[%c1_88, %c0_89] : memref<2x1568xf32, #tpu.memory_space<vmem>>, vector<1x256xf32>
    %320 = vector.broadcast %319 : vector<1x256xf32> to vector<2x256xf32>
    %321 = arith.addf %318, %320 : vector<2x256xf32>
    %cst_90 = arith.constant 0.000000e+00 : f32
    %322 = vector.broadcast %cst_90 : f32 to vector<2x256xf32>
    %323 = arith.maximumf %321, %322 : vector<2x256xf32>
    %c0_91 = arith.constant 0 : index
    %c0_92 = arith.constant 0 : index
    %324 = vector.load %arg6[%c0_91, %c0_92] : memref<256x4xf32, #tpu.memory_space<vmem>>, vector<256x4xf32>
    %cst_93 = arith.constant dense<0.000000e+00> : vector<2x4xf32>
    %325 = tpu.matmul %323, %324, %cst_93 {dimension_numbers = #tpu.dot_dimension_numbers<[1], [0], [0], [1], [0, 0, 1, 1], [], []>} : vector<2x256xf32>, vector<256x4xf32>, vector<2x4xf32> -> vector<2x4xf32>
    %c0_94 = arith.constant 0 : index
    %c0_95 = arith.constant 0 : index
    %326 = vector.load %arg7[%c0_94, %c0_95] : memref<1x4xf32, #tpu.memory_space<vmem>>, vector<1x4xf32>
    %327 = vector.broadcast %326 : vector<1x4xf32> to vector<2x4xf32>
    %328 = arith.addf %325, %327 : vector<2x4xf32>
    %329 = vector.extract_strided_slice %328 {offsets = [0, 0], sizes = [2, 2], strides = [1, 1]} : vector<2x4xf32> to vector<2x2xf32>
    %330 = vector.extract_strided_slice %328 {offsets = [0, 2], sizes = [2, 2], strides = [1, 1]} : vector<2x4xf32> to vector<2x2xf32>
    %c0_96 = arith.constant 0 : index
    %c0_97 = arith.constant 0 : index
    %331 = vector.load %arg13[%c0_96, %c0_97] : memref<2x2xf32, #tpu.memory_space<vmem>>, vector<2x2xf32>
    tpu.vector_store %arg13[%c0_96, %c0_97], %329 {strides = array<i32>} : memref<2x2xf32, #tpu.memory_space<vmem>>, vector<2x2xf32>,
    %c0_98 = arith.constant 0 : index
    %c0_99 = arith.constant 0 : index
    %332 = vector.load %arg14[%c0_98, %c0_99] : memref<2x2xf32, #tpu.memory_space<vmem>>, vector<2x2xf32>
    tpu.vector_store %arg14[%c0_98, %c0_99], %330 {strides = array<i32>} : memref<2x2xf32, #tpu.memory_space<vmem>>, vector<2x2xf32>,
    %cst_100 = arith.constant 5.000000e-01 : f32
    %333 = vector.broadcast %cst_100 : f32 to vector<2x2xf32>
    %334 = arith.mulf %333, %330 : vector<2x2xf32>
    %335 = math.exp %334 : vector<2x2xf32>
    %c0_101 = arith.constant 0 : index
    %c0_102 = arith.constant 0 : index
    %336 = vector.load %arg1[%c0_101, %c0_102] : memref<2x2xf32, #tpu.memory_space<vmem>>, vector<2x2xf32>
    %337 = arith.mulf %335, %336 : vector<2x2xf32>
    %338 = arith.addf %329, %337 : vector<2x2xf32>
    %c0_103 = arith.constant 0 : index
    %c0_104 = arith.constant 0 : index
    %339 = vector.load %arg8[%c0_103, %c0_104] : memref<2x1024xf32, #tpu.memory_space<vmem>>, vector<2x1024xf32>
    %cst_105 = arith.constant dense<0.000000e+00> : vector<2x1024xf32>
    %340 = tpu.matmul %338, %339, %cst_105 {dimension_numbers = #tpu.dot_dimension_numbers<[1], [0], [0], [1], [0, 0, 1, 1], [], []>} : vector<2x2xf32>, vector<2x1024xf32>, vector<2x1024xf32> -> vector<2x1024xf32>
    %341 = vector.extract_strided_slice %340 {offsets = [0, 0], sizes = [2, 64], strides = [1, 1]} : vector<2x1024xf32> to vector<2x64xf32>
    %c0_106 = arith.constant 0 : index
    %c0_107 = arith.constant 0 : index
    %342 = vector.load %arg17[%c0_106, %c0_107] : memref<32x64xf32, #tpu.memory_space<vmem>>, vector<2x64xf32>
    tpu.vector_store %arg17[%c0_106, %c0_107], %341 {strides = array<i32>} : memref<32x64xf32, #tpu.memory_space<vmem>>, vector<2x64xf32>,
    %343 = vector.extract_strided_slice %340 {offsets = [0, 64], sizes = [2, 64], strides = [1, 1]} : vector<2x1024xf32> to vector<2x64xf32>
    %c2 = arith.constant 2 : index
    %c0_108 = arith.constant 0 : index
    %344 = vector.load %arg17[%c2, %c0_108] : memref<32x64xf32, #tpu.memory_space<vmem>>, vector<2x64xf32>
    tpu.vector_store %arg17[%c2, %c0_108], %343 {strides = array<i32>} : memref<32x64xf32, #tpu.memory_space<vmem>>, vector<2x64xf32>,
    %345 = vector.extract_strided_slice %340 {offsets = [0, 128], sizes = [2, 64], strides = [1, 1]} : vector<2x1024xf32> to vector<2x64xf32>
    %c4 = arith.constant 4 : index
    %c0_109 = arith.constant 0 : index
    %346 = vector.load %arg17[%c4, %c0_109] : memref<32x64xf32, #tpu.memory_space<vmem>>, vector<2x64xf32>
    tpu.vector_store %arg17[%c4, %c0_109], %345 {strides = array<i32>} : memref<32x64xf32, #tpu.memory_space<vmem>>, vector<2x64xf32>,
    %347 = vector.extract_strided_slice %340 {offsets = [0, 192], sizes = [2, 64], strides = [1, 1]} : vector<2x1024xf32> to vector<2x64xf32>
    %c6 = arith.constant 6 : index
    %c0_110 = arith.constant 0 : index
    %348 = vector.load %arg17[%c6, %c0_110] : memref<32x64xf32, #tpu.memory_space<vmem>>, vector<2x64xf32>
    tpu.vector_store %arg17[%c6, %c0_110], %347 {strides = array<i32>} : memref<32x64xf32, #tpu.memory_space<vmem>>, vector<2x64xf32>,
    %349 = vector.extract_strided_slice %340 {offsets = [0, 256], sizes = [2, 64], strides = [1, 1]} : vector<2x1024xf32> to vector<2x64xf32>
    %c8 = arith.constant 8 : index
    %c0_111 = arith.constant 0 : index
    %350 = vector.load %arg17[%c8, %c0_111] : memref<32x64xf32, #tpu.memory_space<vmem>>, vector<2x64xf32>
    tpu.vector_store %arg17[%c8, %c0_111], %349 {strides = array<i32>} : memref<32x64xf32, #tpu.memory_space<vmem>>, vector<2x64xf32>,
    %351 = vector.extract_strided_slice %340 {offsets = [0, 320], sizes = [2, 64], strides = [1, 1]} : vector<2x1024xf32> to vector<2x64xf32>
    %c10 = arith.constant 10 : index
    %c0_112 = arith.constant 0 : index
    %352 = vector.load %arg17[%c10, %c0_112] : memref<32x64xf32, #tpu.memory_space<vmem>>, vector<2x64xf32>
    tpu.vector_store %arg17[%c10, %c0_112], %351 {strides = array<i32>} : memref<32x64xf32, #tpu.memory_space<vmem>>, vector<2x64xf32>,
    %353 = vector.extract_strided_slice %340 {offsets = [0, 384], sizes = [2, 64], strides = [1, 1]} : vector<2x1024xf32> to vector<2x64xf32>
    %c12 = arith.constant 12 : index
    %c0_113 = arith.constant 0 : index
    %354 = vector.load %arg17[%c12, %c0_113] : memref<32x64xf32, #tpu.memory_space<vmem>>, vector<2x64xf32>
    tpu.vector_store %arg17[%c12, %c0_113], %353 {strides = array<i32>} : memref<32x64xf32, #tpu.memory_space<vmem>>, vector<2x64xf32>,
    %355 = vector.extract_strided_slice %340 {offsets = [0, 448], sizes = [2, 64], strides = [1, 1]} : vector<2x1024xf32> to vector<2x64xf32>
    %c14 = arith.constant 14 : index
    %c0_114 = arith.constant 0 : index
    %356 = vector.load %arg17[%c14, %c0_114] : memref<32x64xf32, #tpu.memory_space<vmem>>, vector<2x64xf32>
    tpu.vector_store %arg17[%c14, %c0_114], %355 {strides = array<i32>} : memref<32x64xf32, #tpu.memory_space<vmem>>, vector<2x64xf32>,
    %357 = vector.extract_strided_slice %340 {offsets = [0, 512], sizes = [2, 64], strides = [1, 1]} : vector<2x1024xf32> to vector<2x64xf32>
    %c16 = arith.constant 16 : index
    %c0_115 = arith.constant 0 : index
    %358 = vector.load %arg17[%c16, %c0_115] : memref<32x64xf32, #tpu.memory_space<vmem>>, vector<2x64xf32>
    tpu.vector_store %arg17[%c16, %c0_115], %357 {strides = array<i32>} : memref<32x64xf32, #tpu.memory_space<vmem>>, vector<2x64xf32>,
    %359 = vector.extract_strided_slice %340 {offsets = [0, 576], sizes = [2, 64], strides = [1, 1]} : vector<2x1024xf32> to vector<2x64xf32>
    %c18 = arith.constant 18 : index
    %c0_116 = arith.constant 0 : index
    %360 = vector.load %arg17[%c18, %c0_116] : memref<32x64xf32, #tpu.memory_space<vmem>>, vector<2x64xf32>
    tpu.vector_store %arg17[%c18, %c0_116], %359 {strides = array<i32>} : memref<32x64xf32, #tpu.memory_space<vmem>>, vector<2x64xf32>,
    %361 = vector.extract_strided_slice %340 {offsets = [0, 640], sizes = [2, 64], strides = [1, 1]} : vector<2x1024xf32> to vector<2x64xf32>
    %c20 = arith.constant 20 : index
    %c0_117 = arith.constant 0 : index
    %362 = vector.load %arg17[%c20, %c0_117] : memref<32x64xf32, #tpu.memory_space<vmem>>, vector<2x64xf32>
    tpu.vector_store %arg17[%c20, %c0_117], %361 {strides = array<i32>} : memref<32x64xf32, #tpu.memory_space<vmem>>, vector<2x64xf32>,
    %363 = vector.extract_strided_slice %340 {offsets = [0, 704], sizes = [2, 64], strides = [1, 1]} : vector<2x1024xf32> to vector<2x64xf32>
    %c22 = arith.constant 22 : index
    %c0_118 = arith.constant 0 : index
    %364 = vector.load %arg17[%c22, %c0_118] : memref<32x64xf32, #tpu.memory_space<vmem>>, vector<2x64xf32>
    tpu.vector_store %arg17[%c22, %c0_118], %363 {strides = array<i32>} : memref<32x64xf32, #tpu.memory_space<vmem>>, vector<2x64xf32>,
    %365 = vector.extract_strided_slice %340 {offsets = [0, 768], sizes = [2, 64], strides = [1, 1]} : vector<2x1024xf32> to vector<2x64xf32>
    %c24 = arith.constant 24 : index
    %c0_119 = arith.constant 0 : index
    %366 = vector.load %arg17[%c24, %c0_119] : memref<32x64xf32, #tpu.memory_space<vmem>>, vector<2x64xf32>
    tpu.vector_store %arg17[%c24, %c0_119], %365 {strides = array<i32>} : memref<32x64xf32, #tpu.memory_space<vmem>>, vector<2x64xf32>,
    %367 = vector.extract_strided_slice %340 {offsets = [0, 832], sizes = [2, 64], strides = [1, 1]} : vector<2x1024xf32> to vector<2x64xf32>
    %c26 = arith.constant 26 : index
    %c0_120 = arith.constant 0 : index
    %368 = vector.load %arg17[%c26, %c0_120] : memref<32x64xf32, #tpu.memory_space<vmem>>, vector<2x64xf32>
    tpu.vector_store %arg17[%c26, %c0_120], %367 {strides = array<i32>} : memref<32x64xf32, #tpu.memory_space<vmem>>, vector<2x64xf32>,
    %369 = vector.extract_strided_slice %340 {offsets = [0, 896], sizes = [2, 64], strides = [1, 1]} : vector<2x1024xf32> to vector<2x64xf32>
    %c28 = arith.constant 28 : index
    %c0_121 = arith.constant 0 : index
    %370 = vector.load %arg17[%c28, %c0_121] : memref<32x64xf32, #tpu.memory_space<vmem>>, vector<2x64xf32>
    tpu.vector_store %arg17[%c28, %c0_121], %369 {strides = array<i32>} : memref<32x64xf32, #tpu.memory_space<vmem>>, vector<2x64xf32>,
    %371 = vector.extract_strided_slice %340 {offsets = [0, 960], sizes = [2, 64], strides = [1, 1]} : vector<2x1024xf32> to vector<2x64xf32>
    %c30 = arith.constant 30 : index
    %c0_122 = arith.constant 0 : index
    %372 = vector.load %arg17[%c30, %c0_122] : memref<32x64xf32, #tpu.memory_space<vmem>>, vector<2x64xf32>
    tpu.vector_store %arg17[%c30, %c0_122], %371 {strides = array<i32>} : memref<32x64xf32, #tpu.memory_space<vmem>>, vector<2x64xf32>,
    %c0_123 = arith.constant 0 : index
    %c0_124 = arith.constant 0 : index
    %373 = vector.load %arg17[%c0_123, %c0_124] : memref<32x64xf32, #tpu.memory_space<vmem>>, vector<32x64xf32>
    %cst_125 = arith.constant dense<0.000000e+00> : vector<64xf32>
    %374 = vector.multi_reduction <add>, %373, %cst_125 [0] : vector<32x64xf32> to vector<64xf32>
    %375 = vector.shape_cast %374 : vector<64xf32> to vector<1x64xf32>
    %376 = arith.mulf %373, %373 : vector<32x64xf32>
    %cst_126 = arith.constant dense<0.000000e+00> : vector<64xf32>
    %377 = vector.multi_reduction <add>, %376, %cst_126 [0] : vector<32x64xf32> to vector<64xf32>
    %378 = vector.shape_cast %377 : vector<64xf32> to vector<1x64xf32>
    %cst_127 = arith.constant 3.125000e-02 : f32
    %379 = vector.broadcast %cst_127 : f32 to vector<1x64xf32>
    %380 = arith.mulf %375, %379 : vector<1x64xf32>
    %cst_128 = arith.constant 3.125000e-02 : f32
    %381 = vector.broadcast %cst_128 : f32 to vector<1x64xf32>
    %382 = arith.mulf %378, %381 : vector<1x64xf32>
    %383 = arith.mulf %380, %380 : vector<1x64xf32>
    %384 = arith.subf %382, %383 : vector<1x64xf32>
    %c0_129 = arith.constant 0 : index
    %c0_130 = arith.constant 0 : index
    %385 = vector.load %arg9[%c0_129, %c0_130] : memref<2x64xf32, #tpu.memory_space<vmem>>, vector<1x64xf32>
    %c1_131 = arith.constant 1 : index
    %c0_132 = arith.constant 0 : index
    %386 = vector.load %arg9[%c1_131, %c0_132] : memref<2x64xf32, #tpu.memory_space<vmem>>, vector<1x64xf32>
    %cst_133 = arith.constant 9.99999974E-6 : f32
    %387 = vector.broadcast %cst_133 : f32 to vector<1x64xf32>
    %388 = arith.addf %384, %387 : vector<1x64xf32>
    %389 = math.rsqrt %388 : vector<1x64xf32>
    %390 = arith.mulf %385, %389 : vector<1x64xf32>
    %391 = arith.mulf %380, %390 : vector<1x64xf32>
    %392 = arith.subf %386, %391 : vector<1x64xf32>
    %393 = vector.broadcast %390 : vector<1x64xf32> to vector<32x64xf32>
    %394 = arith.mulf %373, %393 : vector<32x64xf32>
    %395 = vector.broadcast %392 : vector<1x64xf32> to vector<32x64xf32>
    %396 = arith.addf %394, %395 : vector<32x64xf32>
    %cst_134 = arith.constant 0.000000e+00 : f32
    %397 = vector.broadcast %cst_134 : f32 to vector<32x64xf32>
    %398 = arith.maximumf %396, %397 : vector<32x64xf32>
    %c0_135 = arith.constant 0 : index
    %c0_136 = arith.constant 0 : index
    %399 = vector.load %arg10[%c0_135, %c0_136] : memref<64x128xf32, #tpu.memory_space<vmem>>, vector<64x128xf32>
    %cst_137 = arith.constant dense<0.000000e+00> : vector<32x128xf32>
    %400 = tpu.matmul %398, %399, %cst_137 {dimension_numbers = #tpu.dot_dimension_numbers<[1], [0], [0], [1], [0, 0, 1, 1], [], []>} : vector<32x64xf32>, vector<64x128xf32>, vector<32x128xf32> -> vector<32x128xf32>
    %cst_138 = arith.constant dense<0.000000e+00> : vector<128xf32>
    %401 = vector.multi_reduction <add>, %400, %cst_138 [0] : vector<32x128xf32> to vector<128xf32>
    %402 = vector.shape_cast %401 : vector<128xf32> to vector<1x128xf32>
    %403 = arith.mulf %400, %400 : vector<32x128xf32>
    %cst_139 = arith.constant dense<0.000000e+00> : vector<128xf32>
    %404 = vector.multi_reduction <add>, %403, %cst_139 [0] : vector<32x128xf32> to vector<128xf32>
    %405 = vector.shape_cast %404 : vector<128xf32> to vector<1x128xf32>
    %406 = vector.extract_strided_slice %402 {offsets = [0, 0], sizes = [1, 32], strides = [1, 1]} : vector<1x128xf32> to vector<1x32xf32>
    %407 = vector.extract_strided_slice %405 {offsets = [0, 0], sizes = [1, 32], strides = [1, 1]} : vector<1x128xf32> to vector<1x32xf32>
    %408 = vector.extract_strided_slice %402 {offsets = [0, 32], sizes = [1, 32], strides = [1, 1]} : vector<1x128xf32> to vector<1x32xf32>
    %409 = arith.addf %406, %408 : vector<1x32xf32>
    %410 = vector.extract_strided_slice %405 {offsets = [0, 32], sizes = [1, 32], strides = [1, 1]} : vector<1x128xf32> to vector<1x32xf32>
    %411 = arith.addf %407, %410 : vector<1x32xf32>
    %412 = vector.extract_strided_slice %402 {offsets = [0, 64], sizes = [1, 32], strides = [1, 1]} : vector<1x128xf32> to vector<1x32xf32>
    %413 = arith.addf %409, %412 : vector<1x32xf32>
    %414 = vector.extract_strided_slice %405 {offsets = [0, 64], sizes = [1, 32], strides = [1, 1]} : vector<1x128xf32> to vector<1x32xf32>
    %415 = arith.addf %411, %414 : vector<1x32xf32>
    %416 = vector.extract_strided_slice %402 {offsets = [0, 96], sizes = [1, 32], strides = [1, 1]} : vector<1x128xf32> to vector<1x32xf32>
    %417 = arith.addf %413, %416 : vector<1x32xf32>
    %418 = vector.extract_strided_slice %405 {offsets = [0, 96], sizes = [1, 32], strides = [1, 1]} : vector<1x128xf32> to vector<1x32xf32>
    %419 = arith.addf %415, %418 : vector<1x32xf32>
    %cst_140 = arith.constant 7.812500e-03 : f32
    %420 = vector.broadcast %cst_140 : f32 to vector<1x32xf32>
    %421 = arith.mulf %417, %420 : vector<1x32xf32>
    %cst_141 = arith.constant 7.812500e-03 : f32
    %422 = vector.broadcast %cst_141 : f32 to vector<1x32xf32>
    %423 = arith.mulf %419, %422 : vector<1x32xf32>
    %424 = arith.mulf %421, %421 : vector<1x32xf32>
    %425 = arith.subf %423, %424 : vector<1x32xf32>
    %c0_142 = arith.constant 0 : index
    %c0_143 = arith.constant 0 : index
    %426 = vector.load %arg11[%c0_142, %c0_143] : memref<2x32xf32, #tpu.memory_space<vmem>>, vector<1x32xf32>
    %c1_144 = arith.constant 1 : index
    %c0_145 = arith.constant 0 : index
    %427 = vector.load %arg11[%c1_144, %c0_145] : memref<2x32xf32, #tpu.memory_space<vmem>>, vector<1x32xf32>
    %cst_146 = arith.constant 9.99999974E-6 : f32
    %428 = vector.broadcast %cst_146 : f32 to vector<1x32xf32>
    %429 = arith.addf %425, %428 : vector<1x32xf32>
    %430 = math.rsqrt %429 : vector<1x32xf32>
    %431 = arith.mulf %426, %430 : vector<1x32xf32>
    %432 = arith.mulf %421, %431 : vector<1x32xf32>
    %433 = arith.subf %427, %432 : vector<1x32xf32>
    %434 = tpu.concatenate %431, %433 in 0 : vector<1x32xf32>, vector<1x32xf32> -> vector<2x32xf32>
    %c0_147 = arith.constant 0 : index
    %c0_148 = arith.constant 0 : index
    %435 = vector.load %arg16[%c0_147, %c0_148] : memref<2x1568xf32, #tpu.memory_space<vmem>>, vector<2x32xf32>
    tpu.vector_store %arg16[%c0_147, %c0_148], %434 {strides = array<i32>} : memref<2x1568xf32, #tpu.memory_space<vmem>>, vector<2x32xf32>,
    %c0_149 = arith.constant 0 : index
    %c32_150 = arith.constant 32 : index
    %436 = vector.load %arg16[%c0_149, %c32_150] : memref<2x1568xf32, #tpu.memory_space<vmem>>, vector<2x32xf32>
    tpu.vector_store %arg16[%c0_149, %c32_150], %434 {strides = array<i32>} : memref<2x1568xf32, #tpu.memory_space<vmem>>, vector<2x32xf32>,
    %c0_151 = arith.constant 0 : index
    %c64_152 = arith.constant 64 : index
    %437 = vector.load %arg16[%c0_151, %c64_152] : memref<2x1568xf32, #tpu.memory_space<vmem>>, vector<2x32xf32>
    tpu.vector_store %arg16[%c0_151, %c64_152], %434 {strides = array<i32>} : memref<2x1568xf32, #tpu.memory_space<vmem>>, vector<2x32xf32>,
    %c0_153 = arith.constant 0 : index
    %c96_154 = arith.constant 96 : index
    %438 = vector.load %arg16[%c0_153, %c96_154] : memref<2x1568xf32, #tpu.memory_space<vmem>>, vector<2x32xf32>
    tpu.vector_store %arg16[%c0_153, %c96_154], %434 {strides = array<i32>} : memref<2x1568xf32, #tpu.memory_space<vmem>>, vector<2x32xf32>,
    %c0_155 = arith.constant 0 : index
    %c0_156 = arith.constant 0 : index
    %439 = vector.load %arg16[%c0_155, %c0_156] : memref<2x1568xf32, #tpu.memory_space<vmem>>, vector<1x128xf32>
    %440 = vector.broadcast %439 : vector<1x128xf32> to vector<32x128xf32>
    %441 = arith.mulf %400, %440 : vector<32x128xf32>
    %c1_157 = arith.constant 1 : index
    %c0_158 = arith.constant 0 : index
    %442 = vector.load %arg16[%c1_157, %c0_158] : memref<2x1568xf32, #tpu.memory_space<vmem>>, vector<1x128xf32>
    %443 = vector.broadcast %442 : vector<1x128xf32> to vector<32x128xf32>
    %444 = arith.addf %441, %443 : vector<32x128xf32>
    %cst_159 = arith.constant 0.000000e+00 : f32
    %445 = vector.broadcast %cst_159 : f32 to vector<32x128xf32>
    %446 = arith.maximumf %444, %445 : vector<32x128xf32>
    %c0_160 = arith.constant 0 : index
    %c0_161 = arith.constant 0 : index
    %447 = vector.load %arg12[%c0_160, %c0_161] : memref<128x16xf32, #tpu.memory_space<vmem>>, vector<128x16xf32>
    %cst_162 = arith.constant dense<0.000000e+00> : vector<32x16xf32>
    %448 = tpu.matmul %446, %447, %cst_162 {dimension_numbers = #tpu.dot_dimension_numbers<[1], [0], [0], [1], [0, 0, 1, 1], [], []>} : vector<32x128xf32>, vector<128x16xf32>, vector<32x16xf32> -> vector<32x16xf32>
    %c0_163 = arith.constant 0 : index
    %c0_164 = arith.constant 0 : index
    %449 = vector.load %arg15[%c0_163, %c0_164] : memref<32x16xf32, #tpu.memory_space<vmem>>, vector<32x16xf32>
    tpu.vector_store %arg15[%c0_163, %c0_164], %448 {strides = array<i32>} : memref<32x16xf32, #tpu.memory_space<vmem>>, vector<32x16xf32>,
    return
  }
}

</mosaic_0001>

<bundles_post_ra>
// kernel: _forward_impl.1
= control target key start
LH: loop header
LB: loop body
LE: loop exit
PB: predicated region body
PF: predicated region fallthrough
CT: control target
= control target key end

     0   :  { %21 = vsyncpa [#allocation5], 0  ;;  %s8494_s0 = inlined_call_operand.vmem [shape: f32[2,256], index: 0, kind: input, shape index: {}]   ;;  %s8495_s1 = inlined_call_operand.vmem [shape: f32[2,2], index: 1, kind: input, shape index: {}]   ;;  %s8496_s2 = inlined_call_operand.vmem [shape: bf16[256,1568], index: 2, kind: input, shape index: {}]   ;;  %s8497_s3 = inlined_call_operand.vmem [shape: f32[2,32], index: 3, kind: input, shape index: {}]   ;;  %s8498_s4 = inlined_call_operand.vmem [shape: bf16[1568,256], index: 4, kind: input, shape index: {}]   ;;  %s8499_s5 = inlined_call_operand.vmem [shape: f32[2,64], index: 5, kind: input, shape index: {}]   ;;  %s8500_s6 = inlined_call_operand.vmem [shape: f32[256,4], index: 6, kind: input, shape index: {}]   ;;  %s8501_s7 = inlined_call_operand.vmem [shape: f32[1,4], index: 7, kind: input, shape index: {}]   ;;  %s8502_s8 = inlined_call_operand.vmem [shape: f32[2,1024], index: 8, kind: input, shape index: {}]   ;;  %s8503_s9 = inlined_call_operand.vmem [shape: f32[2,64], index: 9, kind: input, shape index: {}]   ;;  %s8504_s10 = inlined_call_operand.vmem [shape: f32[64,128], index: 10, kind: input, shape index: {}]   ;;  %s8505_s11 = inlined_call_operand.vmem [shape: f32[2,32], index: 11, kind: input, shape index: {}]   ;;  %s8506_s12 = inlined_call_operand.vmem [shape: f32[128,16], index: 12, kind: input, shape index: {}]   ;;  %s8507_s13 = inlined_call_operand.hbm [shape: f32[2,2], index: 13, kind: output, shape index: {0}]   ;;  %s8508_s14 = inlined_call_operand.hbm [shape: f32[2,2], index: 14, kind: output, shape index: {1}]   ;;  %s8509_s15 = inlined_call_operand.vmem [shape: f32[32,16], index: 15, kind: output, shape index: {2}]  }
   0x1   :  { %v5645_v0 = vld [vmem:[%s8496_s2 + $0x4] ss:$52 sps:$4 sm:$0xff]   ;;  %v5647_v1 = vld [vmem:[%s8496_s2] ss:$52 sps:$4 sm:$0xff]   ;;  %v5650_v3 = vld [vmem:[%s8496_s2 + $0x68] ss:$52 sps:$4 sm:$0xff]  }
   0x2   :  { %1344 = vmatprep.subr.bf16.mxu0 %v5645_v0  ;;  %v5648_v2 = vld [vmem:[%s8496_s2 + $0x6c] ss:$52 sps:$4 sm:$0xff]   ;;  %v5651_v4 = vld [vmem:[%s8496_s2 + $0xd4] ss:$52 sps:$4 sm:$0xff]   ;;  %v5655_v7 = vld [vmem:[%s8496_s2 + $0xd0] ss:$52 sps:$4 sm:$0xff]  }
   0x3   :  { %1345 = vmatpush1.bf16.msra.mxu0 %v5647_v1  ;;  %v5653_v5 = vld [vmem:[%s8496_s2 + $0x2c] ss:$52 sps:$4 sm:$0xff]   ;;  %v5656_v6 = vld [vmem:[%s8496_s2 + $0x28] ss:$52 sps:$4 sm:$0xff]   ;;  %v5662_v9 = vld [vmem:[%s8496_s2 + $0x90] ss:$52 sps:$4 sm:$0xff]  }
   0x4   :  { %1346 = vmatprep.subr.bf16.mxu0 %v5648_v2  ;;  %1549 = vmatprep.subr.bf16.mxu1 %v5653_v5  ;;  %v5659_v8 = vld [vmem:[%s8496_s2 + $0x94] ss:$52 sps:$4 sm:$0xff]   ;;  %v5657_v10 = vld [vmem:[%s8496_s2 + $0x13c] ss:$52 sps:$4 sm:$0xff]   ;;  %v5661_v12 = vld [vmem:[%s8496_s2 + $0x138] ss:$52 sps:$4 sm:$0xff]  }
   0x5   :  { %1550 = vmatpush1.bf16.msra.mxu1 %v5656_v6  ;;  %v5665_v11 = vld [vmem:[%s8496_s2 + $0xfc] ss:$52 sps:$4 sm:$0xff]   ;;  %v5668_v13 = vld [vmem:[%s8496_s2 + $0xf8] ss:$52 sps:$4 sm:$0xff]   ;;  %v5667_v16 = vld [vmem:[%s8496_s2 + $0x1a0] ss:$52 sps:$4 sm:$0xff]  }
   0x6   :  { %1551 = vmatprep.subr.bf16.mxu1 %v5659_v8  ;;  %v5663_v14 = vld [vmem:[%s8496_s2 + $0x1a4] ss:$52 sps:$4 sm:$0xff]   ;;  %v5669_v17 = vld [vmem:[%s8496_s2 + $0x20c] ss:$52 sps:$4 sm:$0xff]   ;;  %v5673_v20 = vld [vmem:[%s8496_s2 + $0x208] ss:$52 sps:$4 sm:$0xff]  }
   0x7   :  { %1347 = vmatpush1.bf16.msra.mxu0 %v5650_v3  ;;  %v5671_v15 = vld [vmem:[%s8496_s2 + $0x164] ss:$52 sps:$4 sm:$0xff]   ;;  %v5674_v18 = vld [vmem:[%s8496_s2 + $0x160] ss:$52 sps:$4 sm:$0xff]   ;;  %v5680_v21 = vld [vmem:[%s8496_s2 + $0x1c8] ss:$52 sps:$4 sm:$0xff]  }
   0x8   :  { %1348 = vmatprep.subr.bf16.mxu0 %v5651_v4  ;;  %v5677_v19 = vld [vmem:[%s8496_s2 + $0x1cc] ss:$52 sps:$4 sm:$0xff]   ;;  %v5675_v22 = vld [vmem:[%s8496_s2 + $0x274] ss:$52 sps:$4 sm:$0xff]   ;;  %v5679_v24 = vld [vmem:[%s8496_s2 + $0x270] ss:$52 sps:$4 sm:$0xff]  }
   0x9   :  { %1552 = vmatpush1.bf16.msra.mxu1 %v5662_v9  ;;  %v5683_v23 = vld [vmem:[%s8496_s2 + $0x234] ss:$52 sps:$4 sm:$0xff]   ;;  %v5681_v25 = vld [vmem:[%s8496_s2 + $0x2dc] ss:$52 sps:$4 sm:$0xff]   ;;  %v5685_v28 = vld [vmem:[%s8496_s2 + $0x2d8] ss:$52 sps:$4 sm:$0xff]  }
   0xa   :  { %1553 = vmatprep.subr.bf16.mxu1 %v5665_v11  ;;  %v5686_v26 = vld [vmem:[%s8496_s2 + $0x230] ss:$52 sps:$4 sm:$0xff]   ;;  %v5692_v29 = vld [vmem:[%s8496_s2 + $0x298] ss:$52 sps:$4 sm:$0xff]   ;;  %v5691_v32 = vld [vmem:[%s8496_s2 + $0x340] ss:$52 sps:$4 sm:$0xff]  }
   0xb   :  { %1349 = vmatpush1.bf16.msra.mxu0 %v5655_v7  ;;  %v5689_v27 = vld [vmem:[%s8496_s2 + $0x29c] ss:$52 sps:$4 sm:$0xff]   ;;  %v5687_v30 = vld [vmem:[%s8496_s2 + $0x344] ss:$52 sps:$4 sm:$0xff]   ;;  %v5693_v33 = vld [vmem:[%s8496_s2 + $0x3ac] ss:$52 sps:$4 sm:$0xff]  }
   0xc   :  { %1350 = vmatprep.subr.bf16.mxu0 %v5657_v10  ;;  %v5695_v31 = vld [vmem:[%s8496_s2 + $0x304] ss:$52 sps:$4 sm:$0xff]   ;;  %v5698_v34 = vld [vmem:[%s8496_s2 + $0x300] ss:$52 sps:$4 sm:$0xff]   ;;  %v5697_v36 = vld [vmem:[%s8496_s2 + $0x3a8] ss:$52 sps:$4 sm:$0xff]  }
   0xd   :  { %1554 = vmatpush1.bf16.msra.mxu1 %v5668_v13  ;;  %v5701_v35 = vld [vmem:[%s8496_s2 + $0x36c] ss:$52 sps:$4 sm:$0xff]   ;;  %v5704_v37 = vld [vmem:[%s8496_s2 + $0x368] ss:$52 sps:$4 sm:$0xff]   ;;  %v5703_v40 = vld [vmem:[%s8496_s2 + $0x410] ss:$52 sps:$4 sm:$0xff]  }
   0xe   :  { %1555 = vmatprep.subr.bf16.mxu1 %v5671_v15  ;;  %v5699_v38 = vld [vmem:[%s8496_s2 + $0x414] ss:$52 sps:$4 sm:$0xff]   ;;  %v5705_v41 = vld [vmem:[%s8496_s2 + $0x47c] ss:$52 sps:$4 sm:$0xff]   ;;  %v5709_v46 = vld [vmem:[%s8496_s2 + $0x478] ss:$52 sps:$4 sm:$0xff]  }
   0xf   :  { %1351 = vmatpush1.bf16.msra.mxu0 %v5661_v12  ;;  %v5707_v39 = vld [vmem:[%s8496_s2 + $0x3d4] ss:$52 sps:$4 sm:$0xff]   ;;  %v5710_v42 = vld [vmem:[%s8496_s2 + $0x3d0] ss:$52 sps:$4 sm:$0xff]   ;;  %v5716_v48 = vld [vmem:[%s8496_s2 + $0x438] ss:$52 sps:$4 sm:$0xff]  }
  0x10   :  { %1352 = vmatprep.subr.bf16.mxu0 %v5663_v14  ;;  %v5713_v43 = vld [vmem:[%s8496_s2 + $0x43c] ss:$52 sps:$4 sm:$0xff]   ;;  %v4957_v44 = vld.sshfl [vmem:[%s8494_s0] sm:$0x33 pattern:$0x76325410] }
  0x11   :  { %1556 = vmatpush1.bf16.msra.mxu1 %v5674_v18  ;;  %v59_v45 = vcombine.high %v4957_v44, %v4957_v44  ;;  %v5711_v47 = vld [vmem:[%s8496_s2 + $0x4e4] ss:$52 sps:$4 sm:$0xff]   ;;  %v5715_v51 = vld [vmem:[%s8496_s2 + $0x4e0] ss:$52 sps:$4 sm:$0xff]   ;;  %v5721_v55 = vld [vmem:[%s8496_s2 + $0x548] ss:$52 sps:$4 sm:$0xff]   ;;  %v6592_v3 = vpack.c.bf16 %v4957_v44, %v4957_v44 }
  0x12   :  { %1557 = vmatprep.subr.bf16.mxu1 %v5677_v19  ;;  %v5719_v50 = vld [vmem:[%s8496_s2 + $0x4a4] ss:$52 sps:$4 sm:$0xff]   ;;  %v5717_v52 = vld [vmem:[%s8496_s2 + $0x54c] ss:$52 sps:$4 sm:$0xff]   ;;  %v5723_v56 = vld [vmem:[%s8496_s2 + $0x5b4] ss:$52 sps:$4 sm:$0xff]  }
  0x13   :  { %1353 = vmatpush1.bf16.msra.mxu0 %v5667_v16  ;;  %v6537_v49 = vpack.c.bf16 %v59_v45, %v59_v45  ;;  %v5722_v53 = vld [vmem:[%s8496_s2 + $0x4a0] ss:$52 sps:$4 sm:$0xff]   ;;  %v5728_v57 = vld [vmem:[%s8496_s2 + $0x508] ss:$52 sps:$4 sm:$0xff]   ;;  %v5727_v59 = vld [vmem:[%s8496_s2 + $0x5b0] ss:$52 sps:$4 sm:$0xff]  }
  0x14   :  { %1354 = vmatprep.subr.bf16.mxu0 %v5669_v17  ;;  %v5725_v54 = vld [vmem:[%s8496_s2 + $0x50c] ss:$52 sps:$4 sm:$0xff]   ;;  %v5731_v58 = vld [vmem:[%s8496_s2 + $0x574] ss:$52 sps:$4 sm:$0xff]   ;;  %v5729_v60 = vld [vmem:[%s8496_s2 + $0x61c] ss:$52 sps:$4 sm:$0xff]  }
  0x15   :  { %1558 = vmatpush1.bf16.msra.mxu1 %v5680_v21  ;;  %1376 = vmatprep.mubr.bf16.mxu0 %v6537_v49  ;;  %v5734_v61 = vld [vmem:[%s8496_s2 + $0x570] ss:$52 sps:$4 sm:$0xff]   ;;  %v5733_v63 = vld [vmem:[%s8496_s2 + $0x618] ss:$52 sps:$4 sm:$0xff]   ;;  %v5735_v4 = vld [vmem:[%s8496_s2 + $0x8] ss:$52 sps:$4 sm:$0xff]  }
  0x16   :  { %1559 = vmatprep.subr.bf16.mxu1 %v5683_v23  ;;  %1581 = vmatprep.mubr.bf16.mxu1 %v6537_v49  ;;  %v5738_v62 = vld [vmem:[%s8496_s2 + $0x5dc] ss:$52 sps:$4 sm:$0xff]   ;;  %v5737_v0 = vld [vmem:[%s8496_s2 + $0xc] ss:$52 sps:$4 sm:$0xff]   ;;  %v5744_v2 = vld [vmem:[%s8496_s2 + $0x644] ss:$52 sps:$4 sm:$0xff]  }
  0x17   :  { %1355 = vmatpush1.bf16.msra.mxu0 %v5673_v20  ;;  %v5740_v1 = vld [vmem:[%s8496_s2 + $0x5d8] ss:$52 sps:$4 sm:$0xff]   ;;  %v5746_v5 = vld [vmem:[%s8496_s2 + $0x640] ss:$52 sps:$4 sm:$0xff]   ;;  %v5741_v7 = vld [vmem:[%s8496_s2 + $0x70] ss:$52 sps:$4 sm:$0xff]  }
  0x18   :  { %1356 = vmatprep.subr.bf16.mxu0 %v5675_v22  ;;  %v5743_v6 = vld [vmem:[%s8496_s2 + $0x74] ss:$52 sps:$4 sm:$0xff]   ;;  %v5749_v8 = vld [vmem:[%s8496_s2 + $0xdc] ss:$52 sps:$4 sm:$0xff]   ;;  %v5747_v9 = vld [vmem:[%s8496_s2 + $0xd8] ss:$52 sps:$4 sm:$0xff]  }
  0x19   :  { %1560 = vmatpush1.bf16.msra.mxu1 %v5686_v26  ;;  %v5752_v10 = vld [vmem:[%s8496_s2 + $0x144] ss:$52 sps:$4 sm:$0xff]   ;;  %v5750_v11 = vld [vmem:[%s8496_s2 + $0x140] ss:$52 sps:$4 sm:$0xff]   ;;  %v5753_v13 = vld [vmem:[%s8496_s2 + $0x1a8] ss:$52 sps:$4 sm:$0xff]  }
  0x1a   :  { %1561 = vmatprep.subr.bf16.mxu1 %v5689_v27  ;;  %v5755_v12 = vld [vmem:[%s8496_s2 + $0x1ac] ss:$52 sps:$4 sm:$0xff]   ;;  %v5758_v14 = vld [vmem:[%s8496_s2 + $0x214] ss:$52 sps:$4 sm:$0xff]   ;;  %v5756_v15 = vld [vmem:[%s8496_s2 + $0x210] ss:$52 sps:$4 sm:$0xff]  }
  0x1b   :  { %1357 = vmatpush1.bf16.msra.mxu0 %v5679_v24  ;;  %v5761_v16 = vld [vmem:[%s8496_s2 + $0x27c] ss:$52 sps:$4 sm:$0xff]   ;;  %v5759_v17 = vld [vmem:[%s8496_s2 + $0x278] ss:$52 sps:$4 sm:$0xff]   ;;  %v5762_v19 = vld [vmem:[%s8496_s2 + $0x2e0] ss:$52 sps:$4 sm:$0xff]  }
  0x1c   :  { %1358 = vmatprep.subr.bf16.mxu0 %v5681_v25  ;;  %v5764_v18 = vld [vmem:[%s8496_s2 + $0x2e4] ss:$52 sps:$4 sm:$0xff]   ;;  %v5767_v20 = vld [vmem:[%s8496_s2 + $0x34c] ss:$52 sps:$4 sm:$0xff]   ;;  %v5765_v21 = vld [vmem:[%s8496_s2 + $0x348] ss:$52 sps:$4 sm:$0xff]  }
  0x1d   :  { %1562 = vmatpush1.bf16.msra.mxu1 %v5692_v29  ;;  %v5770_v22 = vld [vmem:[%s8496_s2 + $0x3b4] ss:$52 sps:$4 sm:$0xff]   ;;  %v5768_v23 = vld [vmem:[%s8496_s2 + $0x3b0] ss:$52 sps:$4 sm:$0xff]   ;;  %v5771_v25 = vld [vmem:[%s8496_s2 + $0x418] ss:$52 sps:$4 sm:$0xff]  }
  0x1e   :  { %1563 = vmatprep.subr.bf16.mxu1 %v5695_v31  ;;  %v5773_v24 = vld [vmem:[%s8496_s2 + $0x41c] ss:$52 sps:$4 sm:$0xff]   ;;  %v5776_v26 = vld [vmem:[%s8496_s2 + $0x484] ss:$52 sps:$4 sm:$0xff]   ;;  %v5774_v27 = vld [vmem:[%s8496_s2 + $0x480] ss:$52 sps:$4 sm:$0xff]  }
  0x1f   :  { %1359 = vmatpush1.bf16.msra.mxu0 %v5685_v28  ;;  %v5779_v28 = vld [vmem:[%s8496_s2 + $0x4ec] ss:$52 sps:$4 sm:$0xff]   ;;  %v5777_v29 = vld [vmem:[%s8496_s2 + $0x4e8] ss:$52 sps:$4 sm:$0xff]   ;;  %v5780_v31 = vld [vmem:[%s8496_s2 + $0x550] ss:$52 sps:$4 sm:$0xff]  }
  0x20   :  { %1360 = vmatprep.subr.bf16.mxu0 %v5687_v30  ;;  %v5782_v30 = vld [vmem:[%s8496_s2 + $0x554] ss:$52 sps:$4 sm:$0xff]   ;;  %v5801_v45 = vld [vmem:[%s8496_s2 + $0x1b0] ss:$52 sps:$4 sm:$0xff]  }
  0x21   :  { %1564 = vmatpush1.bf16.msra.mxu1 %v5698_v34  ;;  %v5788_v34 = vld [vmem:[%s8496_s2 + $0x624] ss:$52 sps:$4 sm:$0xff]   ;;  %v5803_v44 = vld [vmem:[%s8496_s2 + $0x1b4] ss:$52 sps:$4 sm:$0xff]  }
  0x22   :  { %1565 = vmatprep.subr.bf16.mxu1 %v5701_v35  ;;  %v5786_v35 = vld [vmem:[%s8496_s2 + $0x620] ss:$52 sps:$4 sm:$0xff]  }
  0x23   :  { %1361 = vmatpush1.bf16.msra.mxu0 %v5691_v32  ;;  %v5785_v32 = vld [vmem:[%s8496_s2 + $0x5bc] ss:$52 sps:$4 sm:$0xff]  }
  0x24   :  { %1362 = vmatprep.subr.bf16.mxu0 %v5693_v33  ;;  %v5783_v33 = vld [vmem:[%s8496_s2 + $0x5b8] ss:$52 sps:$4 sm:$0xff]  }
  0x25   :  { %1566 = vmatpush1.bf16.msra.mxu1 %v5704_v37  ;;  %v5789_v37 = vld [vmem:[%s8496_s2 + $0x10] ss:$52 sps:$4 sm:$0xff]  }
  0x26   :  { %1567 = vmatprep.subr.bf16.mxu1 %v5707_v39  ;;  %v5792_v39 = vld [vmem:[%s8496_s2 + $0x78] ss:$52 sps:$4 sm:$0xff]  }
  0x27   :  { %1363 = vmatpush1.bf16.msra.mxu0 %v5697_v36  ;;  %v5791_v36 = vld [vmem:[%s8496_s2 + $0x14] ss:$52 sps:$4 sm:$0xff]  }
  0x28   :  { %1364 = vmatprep.subr.bf16.mxu0 %v5699_v38  ;;  %v5794_v38 = vld [vmem:[%s8496_s2 + $0x7c] ss:$52 sps:$4 sm:$0xff]  }
  0x29   :  { %1568 = vmatpush1.bf16.msra.mxu1 %v5710_v42  ;;  %v5800_v42 = vld [vmem:[%s8496_s2 + $0x14c] ss:$52 sps:$4 sm:$0xff]  }
  0x2a   :  { %1569 = vmatprep.subr.bf16.mxu1 %v5713_v43  ;;  %v5798_v43 = vld [vmem:[%s8496_s2 + $0x148] ss:$52 sps:$4 sm:$0xff]  }
  0x2b   :  { %1365 = vmatpush1.bf16.msra.mxu0 %v5703_v40  ;;  %v5797_v40 = vld [vmem:[%s8496_s2 + $0xe4] ss:$52 sps:$4 sm:$0xff]  }
  0x2c   :  { %1366 = vmatprep.subr.bf16.mxu0 %v5705_v41  ;;  %v5795_v41 = vld [vmem:[%s8496_s2 + $0xe0] ss:$52 sps:$4 sm:$0xff]  }
  0x2d   :  { %1570 = vmatpush1.bf16.msra.mxu1 %v5716_v48  ;;  %v5809_v48 = vld [vmem:[%s8496_s2 + $0x284] ss:$52 sps:$4 sm:$0xff]  }
  0x2e   :  { %1571 = vmatprep.subr.bf16.mxu1 %v5719_v50  ;;  %v5807_v50 = vld [vmem:[%s8496_s2 + $0x280] ss:$52 sps:$4 sm:$0xff]  }
  0x2f   :  { %1367 = vmatpush1.bf16.msra.mxu0 %v5709_v46  ;;  %v5806_v46 = vld [vmem:[%s8496_s2 + $0x21c] ss:$52 sps:$4 sm:$0xff]  }
  0x30   :  { %1368 = vmatprep.subr.bf16.mxu0 %v5711_v47  ;;  %v5804_v47 = vld [vmem:[%s8496_s2 + $0x218] ss:$52 sps:$4 sm:$0xff]  }
  0x31   :  { %1572 = vmatpush1.bf16.msra.mxu1 %v5722_v53  ;;  %v5815_v53 = vld [vmem:[%s8496_s2 + $0x354] ss:$52 sps:$4 sm:$0xff]  }
  0x32   :  { %1573 = vmatprep.subr.bf16.mxu1 %v5725_v54  ;;  %v5813_v54 = vld [vmem:[%s8496_s2 + $0x350] ss:$52 sps:$4 sm:$0xff]  }
  0x33   :  { %1369 = vmatpush1.bf16.msra.mxu0 %v5715_v51  ;;  %v5812_v51 = vld [vmem:[%s8496_s2 + $0x2ec] ss:$52 sps:$4 sm:$0xff]  }
  0x34   :  { %1370 = vmatprep.subr.bf16.mxu0 %v5717_v52  ;;  %v5810_v52 = vld [vmem:[%s8496_s2 + $0x2e8] ss:$52 sps:$4 sm:$0xff]  }
  0x35   :  { %1574 = vmatpush1.bf16.msra.mxu1 %v5728_v57  ;;  %v5821_v57 = vld [vmem:[%s8496_s2 + $0x424] ss:$52 sps:$4 sm:$0xff]  }
  0x36   :  { %1575 = vmatprep.subr.bf16.mxu1 %v5731_v58  ;;  %v5819_v58 = vld [vmem:[%s8496_s2 + $0x420] ss:$52 sps:$4 sm:$0xff]  }
  0x37   :  { %1371 = vmatpush1.bf16.msra.mxu0 %v5721_v55  ;;  %v5818_v55 = vld [vmem:[%s8496_s2 + $0x3bc] ss:$52 sps:$4 sm:$0xff]  }
  0x38   :  { %1372 = vmatprep.subr.bf16.mxu0 %v5723_v56  ;;  %v5816_v56 = vld [vmem:[%s8496_s2 + $0x3b8] ss:$52 sps:$4 sm:$0xff]  }
  0x39   :  { %1576 = vmatpush1.bf16.msra.mxu1 %v5734_v61  ;;  %v5827_v61 = vld [vmem:[%s8496_s2 + $0x4f4] ss:$52 sps:$4 sm:$0xff]  }
  0x3a   :  { %1577 = vmatprep.subr.bf16.mxu1 %v5738_v62  ;;  %v5825_v62 = vld [vmem:[%s8496_s2 + $0x4f0] ss:$52 sps:$4 sm:$0xff]  }
  0x3b   :  { %1373 = vmatpush1.bf16.msra.mxu0 %v5727_v59  ;;  %v5824_v59 = vld [vmem:[%s8496_s2 + $0x48c] ss:$52 sps:$4 sm:$0xff]  }
  0x3c   :  { %1374 = vmatprep.subr.bf16.mxu0 %v5729_v60  ;;  %v5822_v60 = vld [vmem:[%s8496_s2 + $0x488] ss:$52 sps:$4 sm:$0xff]  }
  0x3d   :  { %1578 = vmatpush1.bf16.msra.mxu1 %v5740_v1  ;;  %v5833_v1 = vld [vmem:[%s8496_s2 + $0x5c4] ss:$52 sps:$4 sm:$0xff]  }
  0x3e   :  { %1579 = vmatprep.subr.bf16.mxu1 %v5744_v2  ;;  %v5831_v2 = vld [vmem:[%s8496_s2 + $0x5c0] ss:$52 sps:$4 sm:$0xff]  }
  0x3f   :  { %1375 = vmatpush1.bf16.msra.mxu0 %v5733_v63  ;;  %v5830_v63 = vld [vmem:[%s8496_s2 + $0x55c] ss:$52 sps:$4 sm:$0xff]  }
  0x40   :  { %1385 = vmatprep.subr.bf16.mxu0 %v5737_v0  ;;  %v5828_v0 = vld [vmem:[%s8496_s2 + $0x558] ss:$52 sps:$4 sm:$0xff]  }
  0x41   :  { %1580 = vmatpush1.bf16.msra.mxu1 %v5746_v5  ;;  %v5834_v5 = vld [vmem:[%s8496_s2 + $0x628] ss:$52 sps:$4 sm:$0xff]  }
  0x42   :  { %1377 = vmatmul.mubr.bf16.vlgmr.msra.gmra.mrb[0].mxu0 %v6592_v3 }
  0x43   :  { %1386 = vmatpush1.bf16.msra.mxu0 %v5735_v4  ;;  %1417 = vmatprep.mubr.bf16.mxu0 %v6537_v49  ;;  %v5836_v4 = vld [vmem:[%s8496_s2 + $0x62c] ss:$52 sps:$4 sm:$0xff]  }
  0x44   :  { %1387 = vmatprep.subr.bf16.mxu0 %v5743_v6  ;;  %1582 = vmatmul.mubr.bf16.vlgmr.msra.gmra.mrb[0].mxu1 %v6592_v3  ;;  %v5839_v6 = vld [vmem:[%s8496_s2 + $0x1c] ss:$52 sps:$4 sm:$0xff]  }
  0x47   :  { %1388 = vmatpush1.bf16.msra.mxu0 %v5741_v7  ;;  %v5837_v7 = vld [vmem:[%s8496_s2 + $0x18] ss:$52 sps:$4 sm:$0xff]  }
  0x48   :  { %1389 = vmatprep.subr.bf16.mxu0 %v5749_v8  ;;  %v5842_v8 = vld [vmem:[%s8496_s2 + $0x84] ss:$52 sps:$4 sm:$0xff]  }
  0x4b   :  { %1390 = vmatpush1.bf16.msra.mxu0 %v5747_v9  ;;  %v5840_v9 = vld [vmem:[%s8496_s2 + $0x80] ss:$52 sps:$4 sm:$0xff]  }
  0x4c   :  { %1391 = vmatprep.subr.bf16.mxu0 %v5752_v10  ;;  %v5845_v10 = vld [vmem:[%s8496_s2 + $0xec] ss:$52 sps:$4 sm:$0xff]  }
  0x4f   :  { %1392 = vmatpush1.bf16.msra.mxu0 %v5750_v11  ;;  %v5843_v11 = vld [vmem:[%s8496_s2 + $0xe8] ss:$52 sps:$4 sm:$0xff]  }
  0x50   :  { %1393 = vmatprep.subr.bf16.mxu0 %v5755_v12  ;;  %v5848_v12 = vld [vmem:[%s8496_s2 + $0x154] ss:$52 sps:$4 sm:$0xff]  }
  0x53   :  { %1394 = vmatpush1.bf16.msra.mxu0 %v5753_v13  ;;  %v5846_v13 = vld [vmem:[%s8496_s2 + $0x150] ss:$52 sps:$4 sm:$0xff]  }
  0x54   :  { %1395 = vmatprep.subr.bf16.mxu0 %v5758_v14  ;;  %v5851_v14 = vld [vmem:[%s8496_s2 + $0x1bc] ss:$52 sps:$4 sm:$0xff]  }
  0x57   :  { %1396 = vmatpush1.bf16.msra.mxu0 %v5756_v15 }
  0x58   :  { %1397 = vmatprep.subr.bf16.mxu0 %v5761_v16 }
  0x5b   :  { %1398 = vmatpush1.bf16.msra.mxu0 %v5759_v17 }
  0x5c   :  { %1399 = vmatprep.subr.bf16.mxu0 %v5764_v18 }
  0x5f   :  { %1400 = vmatpush1.bf16.msra.mxu0 %v5762_v19 }
  0x60   :  { %1401 = vmatprep.subr.bf16.mxu0 %v5767_v20 }
  0x63   :  { %1402 = vmatpush1.bf16.msra.mxu0 %v5765_v21 }
  0x64   :  { %1403 = vmatprep.subr.bf16.mxu0 %v5770_v22 }
  0x67   :  { %1404 = vmatpush1.bf16.msra.mxu0 %v5768_v23 }
  0x68   :  { %1405 = vmatprep.subr.bf16.mxu0 %v5773_v24 }
  0x6b   :  { %1406 = vmatpush1.bf16.msra.mxu0 %v5771_v25 }
  0x6c   :  { %1407 = vmatprep.subr.bf16.mxu0 %v5776_v26 }
  0x6f   :  { %1408 = vmatpush1.bf16.msra.mxu0 %v5774_v27 }
  0x70   :  { %1409 = vmatprep.subr.bf16.mxu0 %v5779_v28 }
  0x73   :  { %1410 = vmatpush1.bf16.msra.mxu0 %v5777_v29 }
  0x74   :  { %1411 = vmatprep.subr.bf16.mxu0 %v5782_v30 }
  0x77   :  { %1412 = vmatpush1.bf16.msra.mxu0 %v5780_v31 }
  0x78   :  { %1413 = vmatprep.subr.bf16.mxu0 %v5785_v32 }
  0x7b   :  { %1414 = vmatpush1.bf16.msra.mxu0 %v5783_v33 }
  0x7c   :  { %1415 = vmatprep.subr.bf16.mxu0 %v5788_v34 }
  0x7f   :  { %1416 = vmatpush1.bf16.msra.mxu0 %v5786_v35 }
  0x80   :  { %1426 = vmatprep.subr.bf16.mxu0 %v5791_v36 }
  0x82   :  { %1418 = vmatmul.mubr.bf16.vlgmr.msra.gmra.mrb[4].mxu0 %v6592_v3 }
  0x83   :  { %1427 = vmatpush1.bf16.msra.mxu0 %v5789_v37  ;;  %1458 = vmatprep.mubr.bf16.mxu0 %v6537_v49 }
  0x84   :  { %1428 = vmatprep.subr.bf16.mxu0 %v5794_v38 }
  0x87   :  { %1429 = vmatpush1.bf16.msra.mxu0 %v5792_v39 }
  0x88   :  { %1430 = vmatprep.subr.bf16.mxu0 %v5797_v40 }
  0x8b   :  { %1431 = vmatpush1.bf16.msra.mxu0 %v5795_v41 }
  0x8c   :  { %1432 = vmatprep.subr.bf16.mxu0 %v5800_v42 }
  0x8f   :  { %1433 = vmatpush1.bf16.msra.mxu0 %v5798_v43 }
  0x90   :  { %1434 = vmatprep.subr.bf16.mxu0 %v5803_v44 }
  0x93   :  { %1435 = vmatpush1.bf16.msra.mxu0 %v5801_v45 }
  0x94   :  { %1436 = vmatprep.subr.bf16.mxu0 %v5806_v46 }
  0x97   :  { %1437 = vmatpush1.bf16.msra.mxu0 %v5804_v47 }
  0x98   :  { %1438 = vmatprep.subr.bf16.mxu0 %v5809_v48 }
  0x9b   :  { %1439 = vmatpush1.bf16.msra.mxu0 %v5807_v50 }
  0x9c   :  { %1440 = vmatprep.subr.bf16.mxu0 %v5812_v51 }
  0x9f   :  { %1441 = vmatpush1.bf16.msra.mxu0 %v5810_v52 }
  0xa0   :  { %1442 = vmatprep.subr.bf16.mxu0 %v5815_v53 }
  0xa3   :  { %1443 = vmatpush1.bf16.msra.mxu0 %v5813_v54 }
  0xa4   :  { %1444 = vmatprep.subr.bf16.mxu0 %v5818_v55 }
  0xa7   :  { %1445 = vmatpush1.bf16.msra.mxu0 %v5816_v56 }
  0xa8   :  { %1446 = vmatprep.subr.bf16.mxu0 %v5821_v57 }
  0xab   :  { %1447 = vmatpush1.bf16.msra.mxu0 %v5819_v58 }
  0xac   :  { %1448 = vmatprep.subr.bf16.mxu0 %v5824_v59 }
  0xaf   :  { %1449 = vmatpush1.bf16.msra.mxu0 %v5822_v60 }
  0xb0   :  { %1450 = vmatprep.subr.bf16.mxu0 %v5827_v61 }
  0xb3   :  { %1451 = vmatpush1.bf16.msra.mxu0 %v5825_v62 }
  0xb4   :  { %1452 = vmatprep.subr.bf16.mxu0 %v5830_v63 }
  0xb7   :  { %1453 = vmatpush1.bf16.msra.mxu0 %v5828_v0 }
  0xb8   :  { %1454 = vmatprep.subr.bf16.mxu0 %v5833_v1 }
  0xbb   :  { %1455 = vmatpush1.bf16.msra.mxu0 %v5831_v2 }
  0xbc   :  { %1456 = vmatprep.subr.bf16.mxu0 %v5836_v4 }
  0xbf   :  { %1457 = vmatpush1.bf16.msra.mxu0 %v5834_v5 }
  0xc0   :  { %1467 = vmatprep.subr.bf16.mxu0 %v5839_v6 }
  0xc2   :  { %1459 = vmatmul.mubr.bf16.vlgmr.msra.gmra.mrb[8].mxu0 %v6592_v3 }
  0xc3   :  { %1468 = vmatpush1.bf16.msra.mxu0 %v5837_v7  ;;  %1499 = vmatprep.mubr.bf16.mxu0 %v6537_v49 }
  0xc4   :  { %1469 = vmatprep.subr.bf16.mxu0 %v5842_v8 }
  0xc7   :  { %1470 = vmatpush1.bf16.msra.mxu0 %v5840_v9 }
  0xc8   :  { %1471 = vmatprep.subr.bf16.mxu0 %v5845_v10 }
  0xcb   :  { %1472 = vmatpush1.bf16.msra.mxu0 %v5843_v11 }
  0xcc   :  { %1473 = vmatprep.subr.bf16.mxu0 %v5848_v12 }
  0xcd   :  { %22 = vsyncpa [#allocation7], 0  ;;  %v5849_v15 = vld [vmem:[%s8496_s2 + $0x1b8] ss:$52 sps:$4 sm:$0xff]   ;;  %v5852_v17 = vld [vmem:[%s8496_s2 + $0x220] ss:$52 sps:$4 sm:$0xff]  }
  0xce   :  { %v5854_v16 = vld [vmem:[%s8496_s2 + $0x224] ss:$52 sps:$4 sm:$0xff]   ;;  %v5857_v18 = vld [vmem:[%s8496_s2 + $0x28c] ss:$52 sps:$4 sm:$0xff]   ;;  %v5855_v19 = vld [vmem:[%s8496_s2 + $0x288] ss:$52 sps:$4 sm:$0xff]  }
  0xcf   :  { %1474 = vmatpush1.bf16.msra.mxu0 %v5846_v13  ;;  %v5860_v20 = vld [vmem:[%s8496_s2 + $0x2f4] ss:$52 sps:$4 sm:$0xff]   ;;  %v5858_v21 = vld [vmem:[%s8496_s2 + $0x2f0] ss:$52 sps:$4 sm:$0xff]   ;;  %v5861_v23 = vld [vmem:[%s8496_s2 + $0x358] ss:$52 sps:$4 sm:$0xff]  }
  0xd0   :  { %1475 = vmatprep.subr.bf16.mxu0 %v5851_v14  ;;  %v5863_v22 = vld [vmem:[%s8496_s2 + $0x35c] ss:$52 sps:$4 sm:$0xff]   ;;  %v5866_v24 = vld [vmem:[%s8496_s2 + $0x3c4] ss:$52 sps:$4 sm:$0xff]   ;;  %v5864_v25 = vld [vmem:[%s8496_s2 + $0x3c0] ss:$52 sps:$4 sm:$0xff]  }
  0xd1   :  { %v5869_v26 = vld [vmem:[%s8496_s2 + $0x42c] ss:$52 sps:$4 sm:$0xff]   ;;  %v5867_v27 = vld [vmem:[%s8496_s2 + $0x428] ss:$52 sps:$4 sm:$0xff]   ;;  %v5870_v29 = vld [vmem:[%s8496_s2 + $0x490] ss:$52 sps:$4 sm:$0xff]  }
  0xd2   :  { %v5872_v28 = vld [vmem:[%s8496_s2 + $0x494] ss:$52 sps:$4 sm:$0xff]   ;;  %v5875_v30 = vld [vmem:[%s8496_s2 + $0x4fc] ss:$52 sps:$4 sm:$0xff]   ;;  %v5873_v31 = vld [vmem:[%s8496_s2 + $0x4f8] ss:$52 sps:$4 sm:$0xff]  }
  0xd3   :  { %1476 = vmatpush1.bf16.msra.mxu0 %v5849_v15  ;;  %v5878_v32 = vld [vmem:[%s8496_s2 + $0x564] ss:$52 sps:$4 sm:$0xff]   ;;  %v5876_v33 = vld [vmem:[%s8496_s2 + $0x560] ss:$52 sps:$4 sm:$0xff]   ;;  %v5879_v35 = vld [vmem:[%s8496_s2 + $0x5c8] ss:$52 sps:$4 sm:$0xff]  }
  0xd4   :  { %1477 = vmatprep.subr.bf16.mxu0 %v5854_v16  ;;  %v5881_v34 = vld [vmem:[%s8496_s2 + $0x5cc] ss:$52 sps:$4 sm:$0xff]   ;;  %v5884_v36 = vld [vmem:[%s8496_s2 + $0x634] ss:$52 sps:$4 sm:$0xff]   ;;  %v5882_v37 = vld [vmem:[%s8496_s2 + $0x630] ss:$52 sps:$4 sm:$0xff]  }
  0xd5   :  { %v5887_v38 = vld [vmem:[%s8496_s2 + $0x24] ss:$52 sps:$4 sm:$0xff]   ;;  %v5885_v39 = vld [vmem:[%s8496_s2 + $0x20] ss:$52 sps:$4 sm:$0xff]   ;;  %v5888_v41 = vld [vmem:[%s8496_s2 + $0x88] ss:$52 sps:$4 sm:$0xff]  }
  0xd6   :  { %v5890_v40 = vld [vmem:[%s8496_s2 + $0x8c] ss:$52 sps:$4 sm:$0xff]   ;;  %v5893_v42 = vld [vmem:[%s8496_s2 + $0xf4] ss:$52 sps:$4 sm:$0xff]   ;;  %v5891_v43 = vld [vmem:[%s8496_s2 + $0xf0] ss:$52 sps:$4 sm:$0xff]  }
  0xd7   :  { %1478 = vmatpush1.bf16.msra.mxu0 %v5852_v17  ;;  %v5896_v44 = vld [vmem:[%s8496_s2 + $0x15c] ss:$52 sps:$4 sm:$0xff]   ;;  %v5894_v45 = vld [vmem:[%s8496_s2 + $0x158] ss:$52 sps:$4 sm:$0xff]   ;;  %v5897_v47 = vld [vmem:[%s8496_s2 + $0x1c0] ss:$52 sps:$4 sm:$0xff]  }
  0xd8   :  { %1479 = vmatprep.subr.bf16.mxu0 %v5857_v18  ;;  %v5899_v46 = vld [vmem:[%s8496_s2 + $0x1c4] ss:$52 sps:$4 sm:$0xff]   ;;  %v5902_v48 = vld [vmem:[%s8496_s2 + $0x22c] ss:$52 sps:$4 sm:$0xff]   ;;  %vm1630_vm0 = vcmask 1041408   ;;  %s6303_s16 = smov 64  }
  0xd9   :  { %v5900_v50 = vld [vmem:[%s8496_s2 + $0x228] ss:$52 sps:$4 sm:$0xff]   ;;  %v5903_v58 = vld [vmem:[%s8496_s2 + $0x290] ss:$52 sps:$4 sm:$0xff]   ;;  %v5906_v9 = vld [vmem:[%s8496_s2 + $0x2f8] ss:$52 sps:$4 sm:$0xff]  }
  0xda   :  { %v5905_v51 = vld [vmem:[%s8496_s2 + $0x294] ss:$52 sps:$4 sm:$0xff]   ;;  %v5908_v62 = vld [vmem:[%s8496_s2 + $0x2fc] ss:$52 sps:$4 sm:$0xff]   ;;  %v5911_v12 = vld [vmem:[%s8496_s2 + $0x364] ss:$52 sps:$4 sm:$0xff]  }
  0xdb   :  { %1480 = vmatpush1.bf16.msra.mxu0 %v5855_v19  ;;  %s6304_s19 = smov 96   ;;  %s6305_s0 = smov 32   ;;  %vm1715_vm1 = vcmask 254976   ;;  %vm2177_vm2 = vcmask 1040384   ;;  %vm2191_vm3 = vcmask 517376   ;;  %vm2196_vm4 = vcmask 779776  }
  0xdc   :  { %1481 = vmatprep.subr.bf16.mxu0 %v5860_v20  ;;  %vm2201_vm5 = vcmask 1042176   ;;  %vm3617_vm6 = vcmask 261120   ;;  %vm3975_vm7 = vcmask 517120   ;;  %s6308_s23 = smov 2   ;;  %vm3988_vm8 = vcmask 1041920  }
  0xdd   :  { %vm4131_vm9 = vcmask 9216   ;;  %vm4190_vm10 = vcmask 15360   ;;  %vm4546_vm11 = vcmask 523264  }
  0xdf   :  { %1482 = vmatpush1.bf16.msra.mxu0 %v5858_v21 }
  0xe0   :  { %1483 = vmatprep.subr.bf16.mxu0 %v5863_v22  ;;  %v5909_v22 = vld [vmem:[%s8496_s2 + $0x360] ss:$52 sps:$4 sm:$0xff]  }
  0xe3   :  { %1484 = vmatpush1.bf16.msra.mxu0 %v5861_v23 }
  0xe4   :  { %1485 = vmatprep.subr.bf16.mxu0 %v5866_v24  ;;  %v5914_v24 = vld [vmem:[%s8496_s2 + $0x3cc] ss:$52 sps:$4 sm:$0xff]  }
  0xe7   :  { %1486 = vmatpush1.bf16.msra.mxu0 %v5864_v25 }
  0xe8   :  { %1487 = vmatprep.subr.bf16.mxu0 %v5869_v26 }
  0xeb   :  { %1488 = vmatpush1.bf16.msra.mxu0 %v5867_v27 }
  0xec   :  { %1489 = vmatprep.subr.bf16.mxu0 %v5872_v28 }
  0xef   :  { %1490 = vmatpush1.bf16.msra.mxu0 %v5870_v29 }
  0xf0   :  { %1491 = vmatprep.subr.bf16.mxu0 %v5875_v30 }
  0xf3   :  { %1492 = vmatpush1.bf16.msra.mxu0 %v5873_v31  ;;  %v5912_v31 = vld [vmem:[%s8496_s2 + $0x3c8] ss:$52 sps:$4 sm:$0xff]  }
  0xf4   :  { %1493 = vmatprep.subr.bf16.mxu0 %v5878_v32 }
  0xf7   :  { %1494 = vmatpush1.bf16.msra.mxu0 %v5876_v33  ;;  %v5917_v33 = vld [vmem:[%s8496_s2 + $0x434] ss:$52 sps:$4 sm:$0xff]  }
  0xf8   :  { %1495 = vmatprep.subr.bf16.mxu0 %v5881_v34 }
  0xfb   :  { %1496 = vmatpush1.bf16.msra.mxu0 %v5879_v35 }
  0xfc   :  { %1497 = vmatprep.subr.bf16.mxu0 %v5884_v36 }
  0xff   :  { %1498 = vmatpush1.bf16.msra.mxu0 %v5882_v37  ;;  %v5915_v37 = vld [vmem:[%s8496_s2 + $0x430] ss:$52 sps:$4 sm:$0xff]  }
 0x100   :  { %1508 = vmatprep.subr.bf16.mxu0 %v5887_v38 }
 0x102   :  { %1500 = vmatmul.mubr.bf16.vlgmr.msra.gmra.mrb[12].mxu0 %v6592_v3 }
 0x103   :  { %1509 = vmatpush1.bf16.msra.mxu0 %v5885_v39  ;;  %1540 = vmatprep.mubr.bf16.mxu0 %v6537_v49 }
 0x104   :  { %1510 = vmatprep.subr.bf16.mxu0 %v5890_v40  ;;  %v5920_v40 = vld [vmem:[%s8496_s2 + $0x49c] ss:$52 sps:$4 sm:$0xff]  }
 0x107   :  { %1511 = vmatpush1.bf16.msra.mxu0 %v5888_v41 }
 0x108   :  { %1512 = vmatprep.subr.bf16.mxu0 %v5893_v42 }
 0x10b   :  { %1513 = vmatpush1.bf16.msra.mxu0 %v5891_v43  ;;  %v5918_v43 = vld [vmem:[%s8496_s2 + $0x498] ss:$52 sps:$4 sm:$0xff]  }
 0x10c   :  { %1514 = vmatprep.subr.bf16.mxu0 %v5896_v44 }
 0x10f   :  { %1515 = vmatpush1.bf16.msra.mxu0 %v5894_v45  ;;  %v5923_v45 = vld [vmem:[%s8496_s2 + $0x504] ss:$52 sps:$4 sm:$0xff]  }
 0x110   :  { %1516 = vmatprep.subr.bf16.mxu0 %v5899_v46 }
 0x113   :  { %1517 = vmatpush1.bf16.msra.mxu0 %v5897_v47 }
 0x114   :  { %1518 = vmatprep.subr.bf16.mxu0 %v5902_v48  ;;  %v5921_v48 = vld [vmem:[%s8496_s2 + $0x500] ss:$52 sps:$4 sm:$0xff]  }
 0x115   :  { %v6930_v52 = vpop.f32.mrb[0].mxu0 }
 0x116   :  { %v1631_v53 = vsel %vm1630_vm0, %v6930_v52, 0.0  ;;  %v1723_v54 = vmul.f32 %v6930_v52, %v6930_v52  ;;  %v6936_v55 = vpop.f32.mrb[1].mxu0 }
 0x117   :  { %v1632_v56 = vrot.slane %v1631_v53, 4  ;;  %v1382_v57 = vpop.f32.mrb[2].mxu0  ;;  %1519 = vmatpush1.bf16.msra.mxu0 %v5900_v50  ;;  %v1724_v60 = vmul.f32 %v6936_v55, %v6936_v55  ;;  %v6947_v1 = vpop.f32.mrb[0].mxu1  ;;  %v1638_v7 = vsel %vm1630_vm0, %v6936_v55, 0.0 }
 0x118   :  { %v1736_v59 = vsel %vm1630_vm0, %v1723_v54, 0.0  ;;  %v1383_v61 = vpop.f32.mrb[3].mxu0  ;;  %1520 = vmatprep.subr.bf16.mxu0 %v5905_v51  ;;  %v1701_v2 = vsel %vm1630_vm0, %v6947_v1, 0.0  ;;  %v1733_v4 = vmul.f32 %v6947_v1, %v6947_v1  ;;  %v1639_v17 = vrot.slane %v1638_v7, 4  ;;  %v7012_v50 = vpop.f32.mrb[1].mxu1 }
 0x119   :  { %v1633_v63 = vadd.f32 %v1632_v56, %v1631_v53  ;;  %v1737_v0 = vrot.slane %v1736_v59, 4  ;;  %v1702_v8 = vrot.slane %v1701_v2, 4  ;;  %v1743_v10 = vsel %vm1630_vm0, %v1724_v60, 0.0  ;;  %v5926_v51 = vld [vmem:[%s8496_s2 + $0x56c] ss:$52 sps:$4 sm:$0xff]   ;;  %v1587_v53 = vpop.f32.mrb[2].mxu1 }
 0x11a   :  { %v1806_v11 = vsel %vm1630_vm0, %v1733_v4, 0.0  ;;  %v1744_v23 = vrot.slane %v1743_v10, 4  ;;  %v1640_v29 = vadd.f32 %v1639_v17, %v1638_v7  ;;  %v1588_v56 = vpop.f32.mrb[3].mxu1  ;;  %v5927_v61 = vld [vmem:[%s8496_s2 + $0x5d0] ss:$52 sps:$4 sm:$0xff]  }
 0x11b   :  { %v1634_v5 = vrot.slane %v1633_v63, 2  ;;  %v1738_v6 = vadd.f32 %v1737_v0, %v1736_v59  ;;  %1521 = vmatpush1.bf16.msra.mxu0 %v5903_v58  ;;  %v1703_v15 = vadd.f32 %v1702_v8, %v1701_v2  ;;  %v1807_v16 = vrot.slane %v1806_v11, 4  ;;  %v5924_v58 = vld [vmem:[%s8496_s2 + $0x568] ss:$52 sps:$4 sm:$0xff]   ;;  %v5933_v0 = vld [vmem:[%s8496_s2 + $0x370] ss:$52 sps:$4 sm:$0xff]  }
 0x11c   :  { %1522 = vmatprep.subr.bf16.mxu0 %v5908_v62  ;;  %v1745_v34 = vadd.f32 %v1744_v23, %v1743_v10  ;;  %v1641_v36 = vrot.slane %v1640_v29, 2  ;;  %v5929_v59 = vld [vmem:[%s8496_s2 + $0x5d4] ss:$52 sps:$4 sm:$0xff]   ;;  %v5932_v62 = vld [vmem:[%s8496_s2 + $0x63c] ss:$52 sps:$4 sm:$0xff]  }
 0x11d   :  { %v1635_v13 = vadd.f32 %v1634_v5, %v1633_v63  ;;  %v1739_v14 = vrot.slane %v1738_v6, 2  ;;  %v1704_v20 = vrot.slane %v1703_v15, 2  ;;  %v1808_v21 = vadd.f32 %v1807_v16, %v1806_v11  ;;  %v5930_v63 = vld [vmem:[%s8496_s2 + $0x638] ss:$52 sps:$4 sm:$0xff]   ;;  %v5934_v2 = vld [vmem:[%s8496_s2 + $0x30] ss:$52 sps:$4 sm:$0xff]  }
 0x11e   :  { %v1746_v41 = vrot.slane %v1745_v34, 2  ;;  %v1642_v42 = vadd.f32 %v1641_v36, %v1640_v29  ;;  %v5935_v4 = vld [vmem:[%s8496_s2 + $0x3d8] ss:$52 sps:$4 sm:$0xff]   ;;  %v5938_v7 = vld [vmem:[%s8496_s2 + $0x100] ss:$52 sps:$4 sm:$0xff]  }
 0x11f   :  { %v1636_v18 = vrot.slane %v1635_v13, 1  ;;  %v1740_v19 = vadd.f32 %v1739_v14, %v1738_v6  ;;  %1523 = vmatpush1.bf16.msra.mxu0 %v5906_v9  ;;  %v1705_v25 = vadd.f32 %v1704_v20, %v1703_v15  ;;  %v1809_v26 = vrot.slane %v1808_v21, 2  ;;  %v5936_v5 = vld [vmem:[%s8496_s2 + $0x98] ss:$52 sps:$4 sm:$0xff]   ;;  %v5937_v6 = vld [vmem:[%s8496_s2 + $0x440] ss:$52 sps:$4 sm:$0xff]  }
 0x120   :  { %1524 = vmatprep.subr.bf16.mxu0 %v5911_v12  ;;  %v1747_v46 = vadd.f32 %v1746_v41, %v1745_v34  ;;  %v1643_v47 = vrot.slane %v1642_v42, 1  ;;  %v5939_v8 = vld [vmem:[%s8496_s2 + $0x4a8] ss:$52 sps:$4 sm:$0xff]   ;;  %v5941_v9 = vld [vmem:[%s8496_s2 + $0x510] ss:$52 sps:$4 sm:$0xff]  }
 0x121   :  { %v6969_v27 = vadd.f32 %v1636_v18, %v1635_v13  ;;  %v1741_v28 = vrot.slane %v1740_v19, 1  ;;  %v1810_v30 = vadd.f32 %v1809_v26, %v1808_v21  ;;  %v1706_v32 = vrot.slane %v1705_v25, 1  ;;  %v5942_v10 = vld [vmem:[%s8496_s2 + $0x1d0] ss:$52 sps:$4 sm:$0xff]   ;;  %v5943_v11 = vld [vmem:[%s8496_s2 + $0x578] ss:$52 sps:$4 sm:$0xff]  }
 0x122   :  { %v1748_v54 = vrot.slane %v1747_v46, 1  ;;  %v7019_v57 = vadd.f32 %v1643_v47, %v1642_v42  ;;  %v5944_v12 = vld [vmem:[%s8496_s2 + $0x238] ss:$52 sps:$4 sm:$0xff]   ;;  %v5945_v13 = vld [vmem:[%s8496_s2 + $0x5e0] ss:$52 sps:$4 sm:$0xff]  }
 0x123   :  { %1525 = vmatpush1.bf16.msra.mxu0 %v5909_v22  ;;  %1837 = vrot.lane.b32.xlu1 %v6969_v27, %s6303_s16  ;;  %v6981_v35 = vadd.f32 %v1741_v28, %v1740_v19  ;;  %v1811_v38 = vrot.slane %v1810_v30, 1  ;;  %v6990_v39 = vadd.f32 %v1706_v32, %v1705_v25  ;;  %v5946_v22 = vld [vmem:[%s8496_s2 + $0x2a0] ss:$52 sps:$4 sm:$0xff]   ;;  %v5947_v25 = vld [vmem:[%s8496_s2 + $0x648] ss:$52 sps:$4 sm:$0xff]  }
 0x124   :  { %1828 = vrot.lane.b32.xlu0 %v6969_v27, %s6304_s19  ;;  %1526 = vmatprep.subr.bf16.mxu0 %v5914_v24  ;;  %v7031_v60 = vadd.f32 %v1748_v54, %v1747_v46  ;;  %v5948_v34 = vld [vmem:[%s8496_s2 + $0x308] ss:$52 sps:$4 sm:$0xff]  }
 0x125   :  { %v7000_v44 = vadd.f32 %v1811_v38, %v1810_v30 }
 0x127   :  { %1527 = vmatpush1.bf16.msra.mxu0 %v5912_v31  ;;  %1841 = vrot.lane.b32.xlu1 %v6981_v35, %s6303_s16 }
 0x128   :  { %1845 = vrot.lane.b32.xlu0 %v6969_v27, %s6305_s0  ;;  %1528 = vmatprep.subr.bf16.mxu0 %v5917_v33 }
 0x12b   :  { %1529 = vmatpush1.bf16.msra.mxu0 %v5915_v37  ;;  %1849 = vrot.lane.b32.xlu1 %v6981_v35, %s6305_s0 }
 0x12c   :  { %2108 = vrot.lane.b32.xlu0 %v6990_v39, %s6304_s19  ;;  %1530 = vmatprep.subr.bf16.mxu0 %v5920_v40 }
 0x12f   :  { %1531 = vmatpush1.bf16.msra.mxu0 %v5918_v43  ;;  %2113 = vrot.lane.b32.xlu1 %v7000_v44, %s6304_s19 }
 0x130   :  { %2117 = vrot.lane.b32.xlu0 %v6990_v39, %s6303_s16  ;;  %1532 = vmatprep.subr.bf16.mxu0 %v5923_v45 }
 0x133   :  { %1533 = vmatpush1.bf16.msra.mxu0 %v5921_v48  ;;  %2121 = vrot.lane.b32.xlu1 %v7000_v44, %s6303_s16 }
 0x134   :  { %1856 = vrot.lane.b32.xlu0 %v7019_v57, %s6304_s19  ;;  %1534 = vmatprep.subr.bf16.mxu0 %v5926_v51 }
 0x137   :  { %1535 = vmatpush1.bf16.msra.mxu0 %v5924_v58  ;;  %1861 = vrot.lane.b32.xlu1 %v7031_v60, %s6304_s19 }
 0x138   :  { %1865 = vrot.lane.b32.xlu0 %v7019_v57, %s6303_s16  ;;  %1536 = vmatprep.subr.bf16.mxu0 %v5929_v59 }
 0x13b   :  { %1537 = vmatpush1.bf16.msra.mxu0 %v5927_v61  ;;  %1869 = vrot.lane.b32.xlu1 %v7031_v60, %s6303_s16 }
 0x13c   :  { %1873 = vrot.lane.b32.xlu0 %v7019_v57, %s6305_s0  ;;  %1538 = vmatprep.subr.bf16.mxu0 %v5932_v62 }
 0x13f   :  { %1539 = vmatpush1.bf16.msra.mxu0 %v5930_v63  ;;  %1877 = vrot.lane.b32.xlu1 %v7031_v60, %s6305_s0 }
 0x140   :  { %1833 = vrot.lane.b32.xlu0 %v6981_v35, %s6304_s19  ;;  %5382 = vmatprep.subr.bf16.mxu0 %v5933_v0 }
 0x142   :  { %1541 = vmatmul.mubr.bf16.vlgmr.msra.gmra.mrb[16].mxu0 %v6592_v3 }
 0x143   :  { %5383 = vmatpush3.bf16.msra.mxu0 %v5934_v2  ;;  %1622 = vmatprep.mubr.bf16.mxu0 %v6537_v49  ;;  %v5940_v49 = vld [vmem:[%s8496_s2 + $0x168] ss:$52 sps:$4 sm:$0xff]  }
 0x144   :  { %5384 = vmatprep.subr.bf16.mxu0 %v5935_v4 }
 0x147   :  { %5385 = vmatpush3.bf16.msra.mxu0 %v5936_v5 }
 0x148   :  { %5386 = vmatprep.subr.bf16.mxu0 %v5937_v6 }
 0x14b   :  { %5387 = vmatpush3.bf16.msra.mxu0 %v5938_v7 }
 0x14c   :  { %5388 = vmatprep.subr.bf16.mxu0 %v5939_v8 }
 0x14f   :  { %5389 = vmatpush3.bf16.msra.mxu0 %v5940_v49 }
 0x150   :  { %5390 = vmatprep.subr.bf16.mxu0 %v5941_v9 }
 0x153   :  { %5391 = vmatpush3.bf16.msra.mxu0 %v5942_v10 }
 0x154   :  { %5392 = vmatprep.subr.bf16.mxu0 %v5943_v11 }
 0x155   :  { %v7095_v14 = vpop.f32.mrb[4].mxu0 }
 0x156   :  { %8517 = vst [vmem:[#allocation10_spill] sm:$0xff] %v7095_v14  ;;  %v1645_v15 = vsel %vm1630_vm0, %v7095_v14, 0.0  ;;  %v1725_v16 = vmul.f32 %v7095_v14, %v7095_v14  ;;  %v7101_v17 = vpop.f32.mrb[5].mxu0 }
 0x157   :  { %v1646_v18 = vrot.slane %v1645_v15, 4  ;;  %v1652_v19 = vsel %vm1630_vm0, %v7101_v17, 0.0  ;;  %v1726_v20 = vmul.f32 %v7101_v17, %v7101_v17  ;;  %v1423_v21 = vpop.f32.mrb[6].mxu0  ;;  %5393 = vmatpush3.bf16.msra.mxu0 %v5944_v12 }
 0x158   :  { %v1750_v23 = vsel %vm1630_vm0, %v1725_v16, 0.0  ;;  %v1424_v24 = vpop.f32.mrb[7].mxu0  ;;  %5394 = vmatprep.subr.bf16.mxu0 %v5945_v13  ;;  %v1653_v29 = vrot.slane %v1652_v19, 4 }
 0x159   :  { %v1647_v26 = vadd.f32 %v1646_v18, %v1645_v15  ;;  %v1751_v28 = vrot.slane %v1750_v23, 4  ;;  %v1757_v30 = vsel %vm1630_vm0, %v1726_v20, 0.0 }
 0x15a   :  { %v1758_v33 = vrot.slane %v1757_v30, 4  ;;  %v1654_v38 = vadd.f32 %v1653_v29, %v1652_v19 }
 0x15b   :  { %v1648_v31 = vrot.slane %v1647_v26, 2  ;;  %v1752_v32 = vadd.f32 %v1751_v28, %v1750_v23  ;;  %5395 = vmatpush3.bf16.msra.mxu0 %v5946_v22 }
 0x15c   :  { %5396 = vmatprep.subr.bf16.mxu0 %v5947_v25  ;;  %v1759_v42 = vadd.f32 %v1758_v33, %v1757_v30  ;;  %v1655_v43 = vrot.slane %v1654_v38, 2 }
 0x15d   :  { %v1649_v36 = vadd.f32 %v1648_v31, %v1647_v26  ;;  %v1753_v37 = vrot.slane %v1752_v32, 2 }
 0x15e   :  { %v1760_v47 = vrot.slane %v1759_v42, 2  ;;  %v1656_v51 = vadd.f32 %v1655_v43, %v1654_v38 }
 0x15f   :  { %v1650_v40 = vrot.slane %v1649_v36, 1  ;;  %v1754_v41 = vadd.f32 %v1753_v37, %v1752_v32  ;;  %5397 = vmatpush3.bf16.msra.mxu0 %v5948_v34 }
 0x160   :  { %v1761_v53 = vadd.f32 %v1760_v47, %v1759_v42  ;;  %v1657_v54 = vrot.slane %v1656_v51, 1 }
 0x161   :  { %v7118_v45 = vadd.f32 %v1650_v40, %v1649_v36  ;;  %v1755_v46 = vrot.slane %v1754_v41, 1 }
 0x162   :  { %1623 = vmatmul.mubr.bf16.vlgmr.msra.gmra.mrb[20].mxu0 %v6592_v3  ;;  %v1762_v3 = vrot.slane %v1761_v53, 1  ;;  %v7135_v56 = vadd.f32 %v1657_v54, %v1656_v51 }
 0x163   :  { %1884 = vrot.lane.b32.xlu0 %v7118_v45, %s6304_s19  ;;  %v7123_v48 = vadd.f32 %v1755_v46, %v1754_v41 }
 0x164   :  { %v7139_v58 = vadd.f32 %v1762_v3, %v1761_v53 }
 0x165   :  { %1889 = vrot.lane.b32.xlu1 %v7123_v48, %s6304_s19 }
 0x167   :  { %1893 = vrot.lane.b32.xlu0 %v7118_v45, %s6303_s16 }
 0x169   :  { %1897 = vrot.lane.b32.xlu1 %v7123_v48, %s6303_s16 }
 0x16b   :  { %1901 = vrot.lane.b32.xlu0 %v7118_v45, %s6305_s0 }
 0x16d   :  { %1905 = vrot.lane.b32.xlu1 %v7123_v48, %s6305_s0 }
 0x16f   :  { %1912 = vrot.lane.b32.xlu0 %v7135_v56, %s6304_s19 }
 0x171   :  { %1917 = vrot.lane.b32.xlu1 %v7139_v58, %s6304_s19 }
 0x173   :  { %1921 = vrot.lane.b32.xlu0 %v7135_v56, %s6303_s16 }
 0x175   :  { %1925 = vrot.lane.b32.xlu1 %v7139_v58, %s6303_s16 }
 0x177   :  { %1929 = vrot.lane.b32.xlu0 %v7135_v56, %s6305_s0 }
 0x179   :  { %1933 = vrot.lane.b32.xlu1 %v7139_v58, %s6305_s0 }
 0x195   :  { %v7151_v59 = vpop.f32.mrb[8].mxu0 }
 0x196   :  { %8518 = vst [vmem:[#allocation11_spill] sm:$0xff] %v7151_v59  ;;  %v1659_v61 = vsel %vm1630_vm0, %v7151_v59, 0.0  ;;  %v1727_v62 = vmul.f32 %v7151_v59, %v7151_v59  ;;  %v7157_v63 = vpop.f32.mrb[9].mxu0 }
 0x197   :  { %8519 = vst [vmem:[#allocation12_spill] sm:$0xff] %v7157_v63  ;;  %v1660_v0 = vrot.slane %v1659_v61, 4  ;;  %v1666_v2 = vsel %vm1630_vm0, %v7157_v63, 0.0  ;;  %v1728_v4 = vmul.f32 %v7157_v63, %v7157_v63  ;;  %v1464_v5 = vpop.f32.mrb[10].mxu0 }
 0x198   :  { %v1764_v6 = vsel %vm1630_vm0, %v1727_v62, 0.0  ;;  %v1465_v7 = vpop.f32.mrb[11].mxu0  ;;  %v1667_v9 = vrot.slane %v1666_v2, 4 }
 0x199   :  { %v1661_v8 = vadd.f32 %v1660_v0, %v1659_v61  ;;  %v1765_v49 = vrot.slane %v1764_v6, 4  ;;  %v1771_v10 = vsel %vm1630_vm0, %v1728_v4, 0.0 }
 0x19a   :  { %v1772_v13 = vrot.slane %v1771_v10, 4  ;;  %v1668_v18 = vadd.f32 %v1667_v9, %v1666_v2 }
 0x19b   :  { %v1662_v11 = vrot.slane %v1661_v8, 2  ;;  %v1766_v12 = vadd.f32 %v1765_v49, %v1764_v6 }
 0x19c   :  { %v1773_v21 = vadd.f32 %v1772_v13, %v1771_v10  ;;  %v1669_v22 = vrot.slane %v1668_v18, 2 }
 0x19d   :  { %v1663_v15 = vadd.f32 %v1662_v11, %v1661_v8  ;;  %v1767_v16 = vrot.slane %v1766_v12, 2 }
 0x19e   :  { %v1774_v25 = vrot.slane %v1773_v21, 2  ;;  %v1670_v28 = vadd.f32 %v1669_v22, %v1668_v18  ;;  %v7245_v22 = vpop.permute.xlu1 %1837 }
 0x19f   :  { %v1664_v19 = vrot.slane %v1663_v15, 1  ;;  %v1768_v20 = vadd.f32 %v1767_v16, %v1766_v12 }
 0x1a0   :  { %v1775_v29 = vadd.f32 %v1774_v25, %v1773_v21  ;;  %v1671_v30 = vrot.slane %v1670_v28, 1  ;;  %v7243_v21 = vpop.permute.xlu0 %1828 }
 0x1a1   :  { %v7165_v23 = vadd.f32 %v1664_v19, %v1663_v15  ;;  %v1769_v24 = vrot.slane %v1768_v20, 1 }
 0x1a2   :  { %v1776_v31 = vrot.slane %v1775_v29, 1  ;;  %v7181_v32 = vadd.f32 %v1671_v30, %v1670_v28  ;;  %v7249_v25 = vpop.permute.xlu1 %1841 }
 0x1a3   :  { %1940 = vrot.lane.b32.xlu0 %v7165_v23, %s6304_s19  ;;  %v7169_v26 = vadd.f32 %v1769_v24, %v1768_v20 }
 0x1a4   :  { %v7185_v33 = vadd.f32 %v1776_v31, %v1775_v29  ;;  %v7247_v24 = vpop.permute.xlu0 %1845 }
 0x1a5   :  { %1945 = vrot.lane.b32.xlu1 %v7169_v26, %s6304_s19 }
 0x1a6   :  { %v7253_v29 = vpop.permute.xlu1 %1849 }
 0x1a7   :  { %1949 = vrot.lane.b32.xlu0 %v7165_v23, %s6303_s16 }
 0x1a8   :  { %v7251_v28 = vpop.permute.xlu0 %2108 }
 0x1a9   :  { %1953 = vrot.lane.b32.xlu1 %v7169_v26, %s6303_s16 }
 0x1aa   :  { %v7257_v31 = vpop.permute.xlu1 %2113 }
 0x1ab   :  { %1957 = vrot.lane.b32.xlu0 %v7165_v23, %s6305_s0 }
 0x1ac   :  { %v7255_v30 = vpop.permute.xlu0 %2117 }
 0x1ad   :  { %1961 = vrot.lane.b32.xlu1 %v7169_v26, %s6305_s0 }
 0x1af   :  { %1968 = vrot.lane.b32.xlu0 %v7181_v32, %s6304_s19 }
 0x1b1   :  { %1973 = vrot.lane.b32.xlu1 %v7185_v33, %s6304_s19 }
 0x1b3   :  { %1977 = vrot.lane.b32.xlu0 %v7181_v32, %s6303_s16 }
 0x1b5   :  { %1981 = vrot.lane.b32.xlu1 %v7185_v33, %s6303_s16 }
 0x1b7   :  { %1985 = vrot.lane.b32.xlu0 %v7181_v32, %s6305_s0 }
 0x1b9   :  { %1989 = vrot.lane.b32.xlu1 %v7185_v33, %s6305_s0 }
 0x1d5   :  { %v7197_v34 = vpop.f32.mrb[12].mxu0 }
 0x1d6   :  { %8520 = vst [vmem:[#allocation13_spill] sm:$0xff] %v7197_v34  ;;  %v1673_v36 = vsel %vm1630_vm0, %v7197_v34, 0.0  ;;  %v1729_v37 = vmul.f32 %v7197_v34, %v7197_v34  ;;  %v7203_v38 = vpop.f32.mrb[13].mxu0 }
 0x1d7   :  { %8521 = vst [vmem:[#allocation14_spill] sm:$0xff] %v7203_v38  ;;  %v1674_v40 = vrot.slane %v1673_v36, 4  ;;  %v1680_v41 = vsel %vm1630_vm0, %v7203_v38, 0.0  ;;  %v1730_v42 = vmul.f32 %v7203_v38, %v7203_v38  ;;  %v1505_v43 = vpop.f32.mrb[14].mxu0 }
 0x1d8   :  { %v1778_v46 = vsel %vm1630_vm0, %v1729_v37, 0.0  ;;  %v1506_v47 = vpop.f32.mrb[15].mxu0  ;;  %v1681_v54 = vrot.slane %v1680_v41, 4 }
 0x1d9   :  { %v1675_v51 = vadd.f32 %v1674_v40, %v1673_v36  ;;  %v1779_v53 = vrot.slane %v1778_v46, 4  ;;  %v1785_v3 = vsel %vm1630_vm0, %v1730_v42, 0.0 }
 0x1da   :  { %v1786_v0 = vrot.slane %v1785_v3, 4  ;;  %v1682_v5 = vadd.f32 %v1681_v54, %v1680_v41  ;;  %v7272_v54 = vpop.permute.xlu0 %1856 }
 0x1db   :  { %v1676_v61 = vrot.slane %v1675_v51, 2  ;;  %v1780_v62 = vadd.f32 %v1779_v53, %v1778_v46 }
 0x1dc   :  { %v1787_v8 = vadd.f32 %v1786_v0, %v1785_v3  ;;  %v1683_v49 = vrot.slane %v1682_v5, 2 }
 0x1dd   :  { %v1677_v2 = vadd.f32 %v1676_v61, %v1675_v51  ;;  %v1781_v4 = vrot.slane %v1780_v62, 2 }
 0x1de   :  { %v1788_v11 = vrot.slane %v1787_v8, 2  ;;  %v1684_v13 = vadd.f32 %v1683_v49, %v1682_v5 }
 0x1df   :  { %v1678_v6 = vrot.slane %v1677_v2, 1  ;;  %v1782_v7 = vadd.f32 %v1781_v4, %v1780_v62 }
 0x1e0   :  { %v1789_v15 = vadd.f32 %v1788_v11, %v1787_v8  ;;  %v1685_v16 = vrot.slane %v1684_v13, 1 }
 0x1e1   :  { %v7211_v9 = vadd.f32 %v1678_v6, %v1677_v2  ;;  %v1783_v10 = vrot.slane %v1782_v7, 1  ;;  %v7275_v2 = vpop.permute.xlu1 %2121 }
 0x1e2   :  { %v1790_v18 = vrot.slane %v1789_v15, 1  ;;  %v7227_v19 = vadd.f32 %v1685_v16, %v1684_v13 }
 0x1e3   :  { %1996 = vrot.lane.b32.xlu0 %v7211_v9, %s6304_s19  ;;  %v7215_v12 = vadd.f32 %v1783_v10, %v1782_v7  ;;  %v7277_v10 = vpop.permute.xlu0 %1865 }
 0x1e4   :  { %v7231_v20 = vadd.f32 %v1790_v18, %v1789_v15 }
 0x1e5   :  { %2001 = vrot.lane.b32.xlu1 %v7215_v12, %s6304_s19  ;;  %v7279_v16 = vpop.permute.xlu1 %1861 }
 0x1e7   :  { %2005 = vrot.lane.b32.xlu0 %v7211_v9, %s6303_s16 }
 0x1e9   :  { %2009 = vrot.lane.b32.xlu1 %v7215_v12, %s6303_s16 }
 0x1eb   :  { %2013 = vrot.lane.b32.xlu0 %v7211_v9, %s6305_s0 }
 0x1ed   :  { %2017 = vrot.lane.b32.xlu1 %v7215_v12, %s6305_s0 }
 0x1ef   :  { %2024 = vrot.lane.b32.xlu0 %v7227_v19, %s6304_s19 }
 0x1f1   :  { %2029 = vrot.lane.b32.xlu1 %v7231_v20, %s6304_s19 }
 0x1f3   :  { %2033 = vrot.lane.b32.xlu0 %v7227_v19, %s6303_s16 }
 0x1f5   :  { %2037 = vrot.lane.b32.xlu1 %v7231_v20, %s6303_s16 }
 0x1f7   :  { %2041 = vrot.lane.b32.xlu0 %v7227_v19, %s6305_s0 }
 0x1f9   :  { %2045 = vrot.lane.b32.xlu1 %v7231_v20, %s6305_s0 }
 0x215   :  { %v7259_v36 = vpop.f32.mrb[16].mxu0 }
 0x216   :  { %8522 = vst [vmem:[#allocation15_spill] sm:$0xff] %v7259_v36  ;;  %v1687_v37 = vsel %vm1630_vm0, %v7259_v36, 0.0  ;;  %v1731_v40 = vmul.f32 %v7259_v36, %v7259_v36  ;;  %v7265_v41 = vpop.f32.mrb[17].mxu0 }
 0x217   :  { %8523 = vst [vmem:[#allocation16_spill] sm:$0xff] %v7265_v41  ;;  %v1688_v42 = vrot.slane %v1687_v37, 4  ;;  %v1694_v43 = vsel %vm1630_vm0, %v7265_v41, 0.0  ;;  %v1732_v46 = vmul.f32 %v7265_v41, %v7265_v41  ;;  %v1546_v47 = vpop.f32.mrb[18].mxu0 }
 0x218   :  { %v1792_v51 = vsel %vm1630_vm0, %v1731_v40, 0.0  ;;  %v1547_v53 = vpop.f32.mrb[19].mxu0  ;;  %v1695_v62 = vrot.slane %v1694_v43, 4  ;;  %v7289_v47 = vpop.permute.xlu0 %1873 }
 0x219   :  { %v1689_v3 = vadd.f32 %v1688_v42, %v1687_v37  ;;  %v1793_v61 = vrot.slane %v1792_v51, 4  ;;  %v1799_v0 = vsel %vm1630_vm0, %v1732_v46, 0.0  ;;  %v1708_v53 = vsel %vm1630_vm0, %v7012_v50, 0.0 }
 0x21a   :  { %v1800_v6 = vrot.slane %v1799_v0, 4  ;;  %v1696_v49 = vadd.f32 %v1695_v62, %v1694_v43  ;;  %v1734_v43 = vmul.f32 %v7012_v50, %v7012_v50 }
 0x21b   :  { %v1690_v4 = vrot.slane %v1689_v3, 2  ;;  %v1794_v5 = vadd.f32 %v1793_v61, %v1792_v51 }
 0x21c   :  { %v1801_v15 = vadd.f32 %v1800_v6, %v1799_v0  ;;  %v1697_v18 = vrot.slane %v1696_v49, 2  ;;  %v1813_v62 = vsel %vm1630_vm0, %v1734_v43, 0.0  ;;  %v1709_v0 = vrot.slane %v1708_v53, 4  ;;  %v1834_v6 = vpop.permute.xlu0 %1833 }
 0x21d   :  { %v1691_v7 = vadd.f32 %v1690_v4, %v1689_v3  ;;  %v1795_v8 = vrot.slane %v1794_v5, 2  ;;  %v7295_v3 = vpop.permute.xlu1 %1869  ;;  %v1836_v34 = vadd.f32 %v1834_v6, %v6981_v35 }
 0x21e   :  { %v1802_v42 = vrot.slane %v1801_v15, 2  ;;  %v1698_v51 = vadd.f32 %v1697_v18, %v1696_v49 }
 0x21f   :  { %v1692_v11 = vrot.slane %v1691_v7, 1  ;;  %v1796_v13 = vadd.f32 %v1795_v8, %v1794_v5  ;;  %v1814_v5 = vrot.slane %v1813_v62, 4  ;;  %v1710_v8 = vadd.f32 %v1709_v0, %v1708_v53 }
 0x220   :  { %v1803_v61 = vadd.f32 %v1802_v42, %v1801_v15  ;;  %v1699_v4 = vrot.slane %v1698_v51, 1  ;;  %v1885_v15 = vpop.permute.xlu0 %1884 }
 0x221   :  { %v7281_v37 = vadd.f32 %v1692_v11, %v1691_v7  ;;  %v1797_v40 = vrot.slane %v1796_v13, 1  ;;  %v1878_v49 = vpop.permute.xlu1 %1877 }
 0x222   :  { %v1804_v7 = vrot.slane %v1803_v61, 1  ;;  %v7306_v11 = vadd.f32 %v1699_v4, %v1698_v51 }
 0x223   :  { %2052 = vrot.lane.b32.xlu0 %v7281_v37, %s6304_s19  ;;  %v7285_v46 = vadd.f32 %v1797_v40, %v1796_v13  ;;  %v1815_v13 = vadd.f32 %v1814_v5, %v1813_v62  ;;  %v1711_v40 = vrot.slane %v1710_v8, 2 }
 0x224   :  { %v7310_v18 = vadd.f32 %v1804_v7, %v1803_v61  ;;  %v1894_v0 = vpop.permute.xlu0 %1893 }
 0x225   :  { %2057 = vrot.lane.b32.xlu1 %v7285_v46, %s6304_s19  ;;  %v1890_v42 = vpop.permute.xlu1 %1889  ;;  %v1816_v43 = vrot.slane %v1815_v13, 2  ;;  %v1712_v53 = vadd.f32 %v1711_v40, %v1710_v8 }
 0x227   :  { %2061 = vrot.lane.b32.xlu0 %v7281_v37, %s6303_s16  ;;  %v1817_v4 = vadd.f32 %v1816_v43, %v1815_v13  ;;  %v1713_v41 = vrot.slane %v1712_v53, 1 }
 0x228   :  { %v1902_v8 = vpop.permute.xlu0 %1901 }
 0x229   :  { %2065 = vrot.lane.b32.xlu1 %v7285_v46, %s6303_s16  ;;  %v1898_v5 = vpop.permute.xlu1 %1897  ;;  %v1818_v40 = vrot.slane %v1817_v4, 1  ;;  %v7329_v43 = vadd.f32 %v1713_v41, %v1712_v53 }
 0x22b   :  { %2069 = vrot.lane.b32.xlu0 %v7281_v37, %s6305_s0 }
 0x22d   :  { %2073 = vrot.lane.b32.xlu1 %v7285_v46, %s6305_s0  ;;  %v1906_v13 = vpop.permute.xlu1 %1905 }
 0x22f   :  { %2080 = vrot.lane.b32.xlu0 %v7306_v11, %s6304_s19 }
 0x231   :  { %2085 = vrot.lane.b32.xlu1 %v7310_v18, %s6304_s19  ;;  %v1918_v35 = vpop.permute.xlu1 %1917 }
 0x233   :  { %2089 = vrot.lane.b32.xlu0 %v7306_v11, %s6303_s16 }
 0x235   :  { %2093 = vrot.lane.b32.xlu1 %v7310_v18, %s6303_s16  ;;  %v5398_v51 = vpop.f32.mrb[20].mxu0 }
 0x236   :  { %v5399_v62 = vpop.f32.mrb[21].mxu0 }
 0x237   :  { %2097 = vrot.lane.b32.xlu0 %v7306_v11, %s6305_s0  ;;  %v7320_v61 = vadd.f32 %v5399_v62, %v5398_v51  ;;  %v5401_v7 = vpop.f32.mrb[22].mxu0  ;;  %v1831_v51 = vadd.f32 %v7243_v21, %v6969_v27  ;;  %v1844_v62 = vadd.f32 %v7249_v25, %v1836_v34  ;;  %v1926_v21 = vpop.permute.xlu1 %1925 }
 0x238   :  { %v5402_v36 = vpop.f32.mrb[23].mxu0  ;;  %v1913_v7 = vpop.permute.xlu0 %1912 }
 0x239   :  { %2101 = vrot.lane.b32.xlu1 %v7310_v18, %s6305_s0  ;;  %v7333_v36 = vadd.f32 %v1818_v40, %v1817_v4  ;;  %v1840_v41 = vadd.f32 %v7245_v22, %v1831_v51  ;;  %v1852_v6 = vadd.f32 %v7253_v29, %v1844_v62 }
 0x23b   :  { %2125 = vrot.lane.b32.xlu0 %v6990_v39, %s6305_s0  ;;  %v1848_v27 = vadd.f32 %v7247_v24, %v1840_v41  ;;  %v1854_v34 = vadd.f32 %v1852_v6, %v7031_v60  ;;  %v1934_v40 = vpop.permute.xlu1 %1933 }
 0x23c   :  { %v1922_v53 = vpop.permute.xlu0 %1921 }
 0x23d   :  { %2129 = vrot.lane.b32.xlu1 %v7000_v44, %s6305_s0  ;;  %v1853_v25 = vadd.f32 %v1848_v27, %v7019_v57  ;;  %v1864_v22 = vadd.f32 %v7279_v16, %v1854_v34 }
 0x23f   :  { %2136 = vrot.lane.b32.xlu0 %v7329_v43, %s6304_s19  ;;  %v1859_v4 = vadd.f32 %v7272_v54, %v1853_v25  ;;  %v1872_v62 = vadd.f32 %v7295_v3, %v1864_v22  ;;  %v1946_v60 = vpop.permute.xlu1 %1945 }
 0x240   :  { %v1930_v29 = vpop.permute.xlu0 %1929 }
 0x241   :  { %2141 = vrot.lane.b32.xlu1 %v7333_v36, %s6304_s19  ;;  %v1868_v51 = vadd.f32 %v7277_v10, %v1859_v4  ;;  %v1880_v41 = vadd.f32 %v1878_v49, %v1872_v62 }
 0x243   :  { %2145 = vrot.lane.b32.xlu0 %v7329_v43, %s6303_s16  ;;  %v1876_v24 = vadd.f32 %v7289_v47, %v1868_v51  ;;  %v1882_v57 = vadd.f32 %v1880_v41, %v7123_v48  ;;  %v1954_v16 = vpop.permute.xlu1 %1953  ;;  %v5949_v47 = vld [vmem:[%s8498_s4] ss:$8 sps:$4 sm:$0xff]   ;;  %v5954_v48 = vld [vmem:[%s8498_s4 + $0x14] ss:$8 sps:$4 sm:$0xff]  }
 0x244   :  { %v1941_v38 = vpop.permute.xlu0 %1940 }
 0x245   :  { %2149 = vrot.lane.b32.xlu1 %v7333_v36, %s6303_s16  ;;  %v1881_v6 = vadd.f32 %v1876_v24, %v7118_v45  ;;  %v1892_v27 = vadd.f32 %v1890_v42, %v1882_v57  ;;  %v5951_v45 = vld [vmem:[%s8498_s4 + $0x4] ss:$8 sps:$4 sm:$0xff]  }
 0x246   :  { %3621 = vmatprep.subr.bf16.mxu1 %v5951_v45  ;;  %v5957_v42 = vld [vmem:[%s8498_s4 + $0x24] ss:$8 sps:$4 sm:$0xff]  }
 0x247   :  { %2153 = vrot.lane.b32.xlu0 %v7329_v43, %s6305_s0  ;;  %v1887_v63 = vadd.f32 %v1885_v15, %v1881_v6  ;;  %v1900_v54 = vadd.f32 %v1898_v5, %v1892_v27  ;;  %v1962_v4 = vpop.permute.xlu1 %1961  ;;  %3622 = vmatpush1.bf16.msra.mxu1 %v5949_v47 }
 0x248   :  { %v1950_v59 = vpop.permute.xlu0 %1949  ;;  %3623 = vmatprep.subr.bf16.mxu1 %v5954_v48 }
 0x249   :  { %2157 = vrot.lane.b32.xlu1 %v7333_v36, %s6305_s0  ;;  %v1896_v34 = vadd.f32 %v1894_v0, %v1887_v63  ;;  %v1908_v10 = vadd.f32 %v1906_v13, %v1900_v54 }
 0x24b   :  { %v1904_v25 = vadd.f32 %v1902_v8, %v1896_v34  ;;  %v1910_v63 = vadd.f32 %v1908_v10, %v7139_v58  ;;  %v1974_v0 = vpop.permute.xlu1 %1973  ;;  %v5955_v58 = vld [vmem:[%s8498_s4 + $0x20] ss:$8 sps:$4 sm:$0xff]  }
 0x24c   :  { %v1958_v14 = vpop.permute.xlu0 %1957 }
 0x24d   :  { %v1909_v3 = vadd.f32 %v1904_v25, %v7135_v56  ;;  %v5952_v56 = vld [vmem:[%s8498_s4 + $0x10] ss:$8 sps:$4 sm:$0xff]   ;;  %v1920_v5 = vadd.f32 %v1918_v35, %v1910_v63 }
 0x24e   :  { %3624 = vmatpush1.bf16.msra.mxu1 %v5952_v56  ;;  %v5958_v35 = vld [vmem:[%s8498_s4 + $0x30] ss:$8 sps:$4 sm:$0xff]  }
 0x24f   :  { %v1915_v15 = vadd.f32 %v1913_v7, %v1909_v3  ;;  %v1928_v13 = vadd.f32 %v1926_v21, %v1920_v5  ;;  %3625 = vmatprep.subr.bf16.mxu1 %v5957_v42  ;;  %v5960_v7 = vld [vmem:[%s8498_s4 + $0x34] ss:$8 sps:$4 sm:$0xff]   ;;  %v1982_v24 = vpop.permute.xlu1 %1981  ;;  %v5963_v21 = vld [vmem:[%s8498_s4 + $0x44] ss:$8 sps:$4 sm:$0xff]  }
 0x250   :  { %v1969_v49 = vpop.permute.xlu0 %1968 }
 0x251   :  { %v1924_v8 = vadd.f32 %v1922_v53, %v1915_v15  ;;  %v1936_v62 = vadd.f32 %v1934_v40, %v1928_v13  ;;  %v5961_v40 = vld [vmem:[%s8498_s4 + $0x40] ss:$8 sps:$4 sm:$0xff]  }
 0x252   :  { %3626 = vmatpush1.bf16.msra.mxu1 %v5955_v58 }
 0x253   :  { %v1932_v22 = vadd.f32 %v1930_v29, %v1924_v8  ;;  %3627 = vmatprep.subr.bf16.mxu1 %v5960_v7  ;;  %v1938_v41 = vadd.f32 %v1936_v62, %v7169_v26  ;;  %v1990_v34 = vpop.permute.xlu1 %1989  ;;  %v5964_v26 = vld [vmem:[%s8498_s4 + $0x50] ss:$8 sps:$4 sm:$0xff]   ;;  %v5981_v62 = vld [vmem:[%s8498_s4 + $0xa4] ss:$8 sps:$4 sm:$0xff]  }
 0x254   :  { %v1978_v51 = vpop.permute.xlu0 %1977 }
 0x255   :  { %v1937_v53 = vadd.f32 %v1932_v22, %v7165_v23  ;;  %v1948_v57 = vadd.f32 %v1946_v60, %v1938_v41  ;;  %v5966_v23 = vld [vmem:[%s8498_s4 + $0x54] ss:$8 sps:$4 sm:$0xff]   ;;  %v5976_v22 = vld [vmem:[%s8498_s4 + $0x90] ss:$8 sps:$4 sm:$0xff]  }
 0x256   :  { %3628 = vmatpush1.bf16.msra.mxu1 %v5958_v35 }
 0x257   :  { %v1943_v29 = vadd.f32 %v1941_v38, %v1937_v53  ;;  %3629 = vmatprep.subr.bf16.mxu1 %v5963_v21  ;;  %v1956_v54 = vadd.f32 %v1954_v16, %v1948_v57  ;;  %v2002_v60 = vpop.permute.xlu1 %2001 }
 0x258   :  { %v1986_v6 = vpop.permute.xlu0 %1985 }
 0x259   :  { %v1952_v27 = vadd.f32 %v1950_v59, %v1943_v29  ;;  %v1964_v38 = vadd.f32 %v1962_v4, %v1956_v54  ;;  %v5969_v59 = vld [vmem:[%s8498_s4 + $0x64] ss:$8 sps:$4 sm:$0xff]   ;;  %v5972_v4 = vld [vmem:[%s8498_s4 + $0x74] ss:$8 sps:$4 sm:$0xff]  }
 0x25a   :  { %3630 = vmatpush1.bf16.msra.mxu1 %v5961_v40 }
 0x25b   :  { %v1960_v25 = vadd.f32 %v1958_v14, %v1952_v27  ;;  %3631 = vmatprep.subr.bf16.mxu1 %v5966_v23  ;;  %v5967_v14 = vld [vmem:[%s8498_s4 + $0x60] ss:$8 sps:$4 sm:$0xff]   ;;  %v1966_v16 = vadd.f32 %v1964_v38, %v7185_v33  ;;  %v2010_v48 = vpop.permute.xlu1 %2009  ;;  %v5975_v33 = vld [vmem:[%s8498_s4 + $0x84] ss:$8 sps:$4 sm:$0xff]  }
 0x25c   :  { %v1997_v10 = vpop.permute.xlu0 %1996 }
 0x25d   :  { %v1965_v3 = vadd.f32 %v1960_v25, %v7181_v32  ;;  %v5970_v32 = vld [vmem:[%s8498_s4 + $0x70] ss:$8 sps:$4 sm:$0xff]   ;;  %v1976_v63 = vadd.f32 %v1974_v0, %v1966_v16  ;;  %v5978_v0 = vld [vmem:[%s8498_s4 + $0x94] ss:$8 sps:$4 sm:$0xff]  }
 0x25e   :  { %3632 = vmatpush1.bf16.msra.mxu1 %v5964_v26 }
 0x25f   :  { %3633 = vmatprep.subr.bf16.mxu1 %v5969_v59  ;;  %v1971_v45 = vadd.f32 %v1969_v49, %v1965_v3  ;;  %v1984_v15 = vadd.f32 %v1982_v24, %v1976_v63  ;;  %v5973_v49 = vld [vmem:[%s8498_s4 + $0x80] ss:$8 sps:$4 sm:$0xff]   ;;  %v2018_v58 = vpop.permute.xlu1 %2017 }
 0x260   :  { %v2006_v47 = vpop.permute.xlu0 %2005 }
 0x261   :  { %v1980_v56 = vadd.f32 %v1978_v51, %v1971_v45  ;;  %v1992_v8 = vadd.f32 %v1990_v34, %v1984_v15 }
 0x262   :  { %3634 = vmatpush1.bf16.msra.mxu1 %v5967_v14 }
 0x263   :  { %3635 = vmatprep.subr.bf16.mxu1 %v5972_v4  ;;  %v1988_v42 = vadd.f32 %v1986_v6, %v1980_v56  ;;  %v1994_v51 = vadd.f32 %v1992_v8, %v7215_v12  ;;  %v2030_v21 = vpop.permute.xlu1 %2029 }
 0x264   :  { %v2014_v5 = vpop.permute.xlu0 %2013 }
 0x265   :  { %v1993_v13 = vadd.f32 %v1988_v42, %v7211_v9  ;;  %v2004_v35 = vadd.f32 %v2002_v60, %v1994_v51  ;;  %v5979_v9 = vld [vmem:[%s8498_s4 + $0xa0] ss:$8 sps:$4 sm:$0xff]   ;;  %v1735_v42 = vmul.f32 %v7320_v61, %v7320_v61 }
 0x266   :  { %3636 = vmatpush1.bf16.msra.mxu1 %v5970_v32 }
 0x267   :  { %3637 = vmatprep.subr.bf16.mxu1 %v5975_v33  ;;  %v1999_v7 = vadd.f32 %v1997_v10, %v1993_v13  ;;  %v2012_v29 = vadd.f32 %v2010_v48, %v2004_v35  ;;  %v2038_v57 = vpop.permute.xlu1 %2037 }
 0x268   :  { %v2025_v24 = vpop.permute.xlu0 %2024 }
 0x269   :  { %v2008_v53 = vadd.f32 %v2006_v47, %v1999_v7  ;;  %v2020_v6 = vadd.f32 %v2018_v58, %v2012_v29 }
 0x26a   :  { %3638 = vmatpush1.bf16.msra.mxu1 %v5973_v49  ;;  %v1716_v49 = vsel %vm1715_vm1, %v7320_v61, 0.0 }
 0x26b   :  { %3639 = vmatprep.subr.bf16.mxu1 %v5978_v0  ;;  %v2016_v41 = vadd.f32 %v2014_v5, %v2008_v53  ;;  %v2022_v27 = vadd.f32 %v2020_v6, %v7231_v20  ;;  %v2046_v10 = vpop.permute.xlu1 %2045  ;;  %v1820_v0 = vsel %vm1715_vm1, %v1735_v42, 0.0  ;;  %v1717_v13 = vrot.slane %v1716_v49, 4 }
 0x26c   :  { %v2034_v40 = vpop.permute.xlu0 %2033 }
 0x26d   :  { %v2021_v12 = vadd.f32 %v2016_v41, %v7227_v19  ;;  %v2032_v54 = vadd.f32 %v2030_v21, %v2022_v27  ;;  %v1718_v35 = vadd.f32 %v1717_v13, %v1716_v49 }
 0x26e   :  { %3640 = vmatpush1.bf16.msra.mxu1 %v5976_v22 }
 0x26f   :  { %3641 = vmatprep.subr.bf16.mxu1 %v5981_v62  ;;  %v2027_v23 = vadd.f32 %v2025_v24, %v2021_v12  ;;  %v2040_v26 = vadd.f32 %v2038_v57, %v2032_v54  ;;  %v1821_v62 = vrot.slane %v1820_v0, 4 }
 0x270   :  { %v2042_v34 = vpop.permute.xlu0 %2041 }
 0x271   :  { %v2036_v25 = vadd.f32 %v2034_v40, %v2027_v23  ;;  %v2048_v60 = vadd.f32 %v2046_v10, %v2040_v26 }
 0x272   :  { %3642 = vmatpush1.bf16.msra.mxu1 %v5979_v9  ;;  %v1822_v9 = vadd.f32 %v1821_v62, %v1820_v0  ;;  %v5984_v0 = vld [vmem:[%s8498_s4 + $0xb4] ss:$8 sps:$4 sm:$0xff]  }
 0x273   :  { %v2044_v38 = vadd.f32 %v2042_v34, %v2036_v25  ;;  %v2050_v47 = vadd.f32 %v2048_v60, %v7285_v46  ;;  %3643 = vmatprep.subr.bf16.mxu1 %v5984_v0 }
 0x274   :  { %v1823_v34 = vrot.slane %v1822_v9, 2 }
 0x275   :  { %v2049_v14 = vadd.f32 %v2044_v38, %v7281_v37 }
 0x276   :  { %v1824_v60 = vadd.f32 %v1823_v34, %v1822_v9  ;;  %v5988_v9 = vld [vmem:[%s8498_s4 + $0xd0] ss:$8 sps:$4 sm:$0xff]  }
 0x295   :  { %v2053_v59 = vpop.permute.xlu0 %2052 }
 0x296   :  { %v2055_v4 = vadd.f32 %v2053_v59, %v2049_v14 }
 0x297   :  { %v2058_v3 = vpop.permute.xlu1 %2057 }
 0x298   :  { %v2060_v45 = vadd.f32 %v2058_v3, %v2050_v47 }
 0x299   :  { %v2062_v16 = vpop.permute.xlu0 %2061 }
 0x29a   :  { %v2064_v48 = vadd.f32 %v2062_v16, %v2055_v4 }
 0x29b   :  { %v2066_v19 = vpop.permute.xlu1 %2065 }
 0x29c   :  { %v2068_v32 = vadd.f32 %v2066_v19, %v2060_v45 }
 0x29d   :  { %v2070_v20 = vpop.permute.xlu0 %2069 }
 0x29e   :  { %v2072_v63 = vadd.f32 %v2070_v20, %v2064_v48 }
 0x29f   :  { %v2074_v56 = vpop.permute.xlu1 %2073 }
 0x2a0   :  { %v2076_v33 = vadd.f32 %v2074_v56, %v2068_v32  ;;  %v2077_v5 = vadd.f32 %v2072_v63, %v7306_v11 }
 0x2a1   :  { %v2081_v15 = vpop.permute.xlu0 %2080 }
 0x2a2   :  { %v2078_v46 = vadd.f32 %v2076_v33, %v7310_v18  ;;  %v2083_v58 = vadd.f32 %v2081_v15, %v2077_v5  ;;  %v1719_v18 = vrot.slane %v1718_v35, 2 }
 0x2a3   :  { %v2086_v37 = vpop.permute.xlu1 %2085 }
 0x2a4   :  { %v2088_v7 = vadd.f32 %v2086_v37, %v2078_v46  ;;  %v1720_v26 = vadd.f32 %v1719_v18, %v1718_v35  ;;  %v6306_v37 = vmov 1983009808   ;;  %v2184_v46 = vlaneseq  ;;  %v5987_v35 = vld [vmem:[%s8498_s4 + $0xc4] ss:$8 sps:$4 sm:$0xff]  }
 0x2a5   :  { %v2090_v8 = vpop.permute.xlu0 %2089  ;;  %v2182_v49 = vunpack.c.l.s4 %v6306_v37 }
 0x2a6   :  { %v2092_v51 = vadd.f32 %v2090_v8, %v2083_v58  ;;  %v1721_v14 = vrot.slane %v1720_v26, 1  ;;  %v5982_v8 = vld [vmem:[%s8498_s4 + $0xb0] ss:$8 sps:$4 sm:$0xff]  }
 0x2a7   :  { %v2094_v22 = vpop.permute.xlu1 %2093  ;;  %3644 = vmatpush1.bf16.msra.mxu1 %v5982_v8 }
 0x2a8   :  { %v2096_v53 = vadd.f32 %v2094_v22, %v2088_v7  ;;  %v1722_v45 = vadd.f32 %v1721_v14, %v1720_v26  ;;  %v2168_v22 = vld [vmem:[%s8497_s3 + $0x1] sm:$0x1]  ;;  %v2183_v7 = vunpack.c.0.s8 %v2182_v49  ;;  %3645 = vmatprep.subr.bf16.mxu1 %v5987_v35 }
 0x2a9   :  { %v2098_v24 = vpop.permute.xlu0 %2097  ;;  %v6009_v35 = vld [vmem:[%s8498_s4 + $0x140] ss:$8 sps:$4 sm:$0xff]  }
 0x2aa   :  { %v2100_v21 = vadd.f32 %v2098_v24, %v2092_v51  ;;  %v7465_v51 = vshrl.u32 %v2184_v46, 7  ;;  %v5985_v24 = vld [vmem:[%s8498_s4 + $0xc0] ss:$8 sps:$4 sm:$0xff]  }
 0x2ab   :  { %v2102_v11 = vpop.permute.xlu1 %2101  ;;  %3646 = vmatpush1.bf16.msra.mxu1 %v5985_v24  ;;  %v6006_v24 = vld [vmem:[%s8498_s4 + $0x130] ss:$8 sps:$4 sm:$0xff]  }
 0x2ac   :  { %v2105_v29 = vadd.f32 %v2100_v21, %v6990_v39  ;;  %v2104_v41 = vadd.f32 %v2102_v11, %v2096_v53  ;;  %v5990_v53 = vld [vmem:[%s8498_s4 + $0xd4] ss:$8 sps:$4 sm:$0xff]   ;;  %v7477_v11 = vsub.s32 %v2183_v7, %v7465_v51  ;;  %v2267_v26 = vsub.s32 3, %v7465_v51 }
 0x2ad   :  { %v2126_v6 = vpop.permute.xlu0 %2125  ;;  %3647 = vmatprep.subr.bf16.mxu1 %v5990_v53  ;;  %v6008_v7 = vld [vmem:[%s8498_s4 + $0x134] ss:$8 sps:$4 sm:$0xff]  }
 0x2ae   :  { %v2106_v40 = vadd.f32 %v2104_v41, %v7000_v44  ;;  %v2111_v12 = vadd.f32 %v7251_v28, %v2105_v29  ;;  %v5993_v41 = vld [vmem:[%s8498_s4 + $0xe4] ss:$8 sps:$4 sm:$0xff]   ;;  %v6014_v53 = vld [vmem:[%s8498_s4 + $0x154] ss:$8 sps:$4 sm:$0xff]  }
 0x2af   :  { %v2130_v57 = vpop.permute.xlu1 %2129  ;;  %3648 = vmatpush1.bf16.msra.mxu1 %v5988_v9  ;;  %v6017_v9 = vld [vmem:[%s8498_s4 + $0x164] ss:$8 sps:$4 sm:$0xff]  }
 0x2b0   :  { %v2120_v27 = vadd.f32 %v7255_v30, %v2111_v12  ;;  %v2116_v23 = vadd.f32 %v7257_v31, %v2106_v40  ;;  %v1825_v31 = vrot.slane %v1824_v60, 1  ;;  %v5991_v40 = vld [vmem:[%s8498_s4 + $0xe0] ss:$8 sps:$4 sm:$0xff]   ;;  %3649 = vmatprep.subr.bf16.mxu1 %v5993_v41  ;;  %v5996_v12 = vld [vmem:[%s8498_s4 + $0xf4] ss:$8 sps:$4 sm:$0xff]  }
 0x2b1   :  { %v2137_v54 = vpop.permute.xlu0 %2136  ;;  %v6020_v41 = vld [vmem:[%s8498_s4 + $0x174] ss:$8 sps:$4 sm:$0xff]  }
 0x2b2   :  { %v2128_v25 = vadd.f32 %v2126_v6, %v2120_v27  ;;  %v2124_v10 = vadd.f32 %v7275_v2, %v2116_v23  ;;  %v1826_v32 = vadd.f32 %v1825_v31, %v1824_v60  ;;  %v5999_v27 = vld [vmem:[%s8498_s4 + $0x104] ss:$8 sps:$4 sm:$0xff]  }
 0x2b3   :  { %v2142_v38 = vpop.permute.xlu1 %2141  ;;  %3650 = vmatpush1.bf16.msra.mxu1 %v5991_v40  ;;  %v6021_v40 = vld [vmem:[%s8498_s4 + $0x180] ss:$8 sps:$4 sm:$0xff]  }
 0x2b4   :  { %v2132_v39 = vadd.f32 %v2130_v57, %v2124_v10  ;;  %v2133_v59 = vadd.f32 %v2128_v25, %v7329_v43  ;;  %v5994_v57 = vld [vmem:[%s8498_s4 + $0xf0] ss:$8 sps:$4 sm:$0xff]   ;;  %3651 = vmatprep.subr.bf16.mxu1 %v5996_v12  ;;  %v7552_v25 = vsub.s32 1, %v7465_v51  ;;  %v7555_v10 = vsub.s32 0, %v7465_v51  ;;  %v6026_v12 = vld [vmem:[%s8498_s4 + $0x194] ss:$8 sps:$4 sm:$0xff]  }
 0x2b5   :  { %v2146_v3 = vpop.permute.xlu0 %2145 }
 0x2b6   :  { %v2139_v44 = vadd.f32 %v2137_v54, %v2133_v59  ;;  %v2134_v28 = vadd.f32 %v2132_v39, %v7333_v36  ;;  %v2167_v36 = vld [vmem:[%s8497_s3] sm:$0x1] }
 0x2b7   :  { %v2150_v16 = vpop.permute.xlu1 %2149  ;;  %3652 = vmatpush1.bf16.msra.mxu1 %v5994_v57  ;;  %v6024_v57 = vld [vmem:[%s8498_s4 + $0x190] ss:$8 sps:$4 sm:$0xff]  }
 0x2b8   :  { %v2144_v30 = vadd.f32 %v2142_v38, %v2134_v28  ;;  %v2148_v4 = vadd.f32 %v2146_v3, %v2139_v44  ;;  %3662 = vmatprep.subr.bf16.mxu1 %v5999_v27  ;;  %v6029_v27 = vld [vmem:[%s8498_s4 + $0x1a4] ss:$8 sps:$4 sm:$0xff]  }
 0x2b9   :  { %v2154_v47 = vpop.permute.xlu0 %2153 }
 0x2ba   :  { %v2152_v19 = vadd.f32 %v2150_v16, %v2144_v30  ;;  %v2156_v48 = vadd.f32 %v2154_v47, %v2148_v4 }
 0x2bb   :  { %v2158_v2 = vpop.permute.xlu1 %2157 }
 0x2bc   :  { %v2161_v20 = vadd.f32 %v2156_v48, %v1722_v45  ;;  %v2160_v63 = vadd.f32 %v2158_v2, %v2152_v19 }
 0x2be   :  { %v2163_v56 = vmul.f32 0.010204081, %v2161_v20  ;;  %v2162_v43 = vadd.f32 %v2160_v63, %v1826_v32  ;;  %v7585_v63 = vsub.s32 4, %v7465_v51 }
 0x2c0   :  { %v2165_v33 = vmul.f32 %v2163_v56, %v2163_v56  ;;  %v2164_v15 = vmul.f32 0.010204081, %v2162_v43 }
 0x2c2   :  { %v2166_v42 = vsub.f32 %v2164_v15, %v2165_v33  ;;  %v6000_v15 = vld [vmem:[%s8498_s4 + $0x110] ss:$8 sps:$4 sm:$0xff]  }
 0x2c4   :  { %v2169_v5 = vadd.f32 1e-05, %v2166_v42  ;;  %v6005_v42 = vld [vmem:[%s8498_s4 + $0x124] ss:$8 sps:$4 sm:$0xff]  }
 0x2c6   :  { %6245 = vrsqrt.f32 %v2169_v5 }
 0x2d0   :  { %v6246_v58 = vpop.eup %6245 }
 0x2d1   :  { %v2171_v13 = vmul.f32 %v6246_v58, %v2167_v36 }
 0x2d3   :  { %v2172_v62 = vmul.f32 %v2171_v13, %v2163_v56 }
 0x2d5   :  { %v2173_v21 = vsub.f32 %v2168_v22, %v2172_v62 }
 0x2d7   :  { %v2175_v29 = vrot.slane %v2173_v21, 7  ;;  %v6012_v21 = vld [vmem:[%s8498_s4 + $0x150] ss:$8 sps:$4 sm:$0xff]  }
 0x2d9   :  { %v2178_v6 = vsel %vm2177_vm2, %v2171_v13, %v2175_v29  ;;  %v6003_v13 = vld [vmem:[%s8498_s4 + $0x120] ss:$8 sps:$4 sm:$0xff]  }
 0x2da   :  { %2179 = vst.msk [vmem:[#allocation2] sm:$0x3] %vm1715_vm1, %v2178_v6  ;;  %2203 = vst.msk [vmem:[#allocation2 + $0x2] sm:$0x3] %vm1715_vm1, %v2178_v6  ;;  %v2187_v18 = vrot.slane %v2178_v6, %v7477_v11  ;;  %v6015_v29 = vld [vmem:[%s8498_s4 + $0x160] ss:$8 sps:$4 sm:$0xff]  }
 0x2db   :  { %2207 = vst.msk [vmem:[#allocation2 + $0x4] sm:$0x3] %vm1715_vm1, %v2178_v6  ;;  %2211 = vst.msk [vmem:[#allocation2 + $0x6] sm:$0x3] %vm1715_vm1, %v2178_v6 }
 0x2dc   :  { %2215 = vst.msk [vmem:[#allocation2 + $0x8] sm:$0x3] %vm1715_vm1, %v2178_v6  ;;  %2219 = vst.msk [vmem:[#allocation2 + $0xa] sm:$0x3] %vm1715_vm1, %v2178_v6  ;;  %2193 = vrot.lane.b32.xlu1 %v2187_v18, %s6303_s16  ;;  %2188 = vrot.lane.b32.xlu0 %v2187_v18, %s6305_s0 }
 0x2dd   :  { %2223 = vst.msk [vmem:[#allocation2 + $0xc] sm:$0x3] %vm1715_vm1, %v2178_v6  ;;  %2227 = vst.msk [vmem:[#allocation2 + $0xe] sm:$0x3] %vm1715_vm1, %v2178_v6 }
 0x2de   :  { %2231 = vst.msk [vmem:[#allocation2 + $0x10] sm:$0x3] %vm1715_vm1, %v2178_v6  ;;  %2235 = vst.msk [vmem:[#allocation2 + $0x12] sm:$0x3] %vm1715_vm1, %v2178_v6 }
 0x2df   :  { %2239 = vst.msk [vmem:[#allocation2 + $0x14] sm:$0x3] %vm1715_vm1, %v2178_v6  ;;  %2243 = vst.msk [vmem:[#allocation2 + $0x16] sm:$0x3] %vm1715_vm1, %v2178_v6 }
 0x2e0   :  { %2247 = vst.msk [vmem:[#allocation2 + $0x18] sm:$0x3] %vm1715_vm1, %v2178_v6  ;;  %2198 = vrot.lane.b32.xlu0 %v2187_v18, %s6304_s19  ;;  %v6018_v6 = vld [vmem:[%s8498_s4 + $0x170] ss:$8 sps:$4 sm:$0xff]   ;;  %v6023_v18 = vld [vmem:[%s8498_s4 + $0x184] ss:$8 sps:$4 sm:$0xff]  }
 0x34e   :  { %v2194_v23 = vpop.permute.xlu1 %2193  ;;  %v2189_v34 = vpop.permute.xlu0 %2188 }
 0x34f   :  { %2192 = vst.msk [vmem:[#allocation2] sm:$0x3] %vm2191_vm3, %v2189_v34  ;;  %2204 = vst.msk [vmem:[#allocation2 + $0x2] sm:$0x3] %vm2191_vm3, %v2189_v34 }
 0x350   :  { %2208 = vst.msk [vmem:[#allocation2 + $0x4] sm:$0x3] %vm2191_vm3, %v2189_v34  ;;  %2212 = vst.msk [vmem:[#allocation2 + $0x6] sm:$0x3] %vm2191_vm3, %v2189_v34 }
 0x351   :  { %2216 = vst.msk [vmem:[#allocation2 + $0x8] sm:$0x3] %vm2191_vm3, %v2189_v34  ;;  %2220 = vst.msk [vmem:[#allocation2 + $0xa] sm:$0x3] %vm2191_vm3, %v2189_v34 }
 0x352   :  { %2224 = vst.msk [vmem:[#allocation2 + $0xc] sm:$0x3] %vm2191_vm3, %v2189_v34  ;;  %2228 = vst.msk [vmem:[#allocation2 + $0xe] sm:$0x3] %vm2191_vm3, %v2189_v34  ;;  %v2199_v54 = vpop.permute.xlu0 %2198 }
 0x353   :  { %2232 = vst.msk [vmem:[#allocation2 + $0x10] sm:$0x3] %vm2191_vm3, %v2189_v34  ;;  %2236 = vst.msk [vmem:[#allocation2 + $0x12] sm:$0x3] %vm2191_vm3, %v2189_v34 }
 0x354   :  { %2240 = vst.msk [vmem:[#allocation2 + $0x14] sm:$0x3] %vm2191_vm3, %v2189_v34  ;;  %2244 = vst.msk [vmem:[#allocation2 + $0x16] sm:$0x3] %vm2191_vm3, %v2189_v34  ;;  %v6032_v34 = vld [vmem:[%s8498_s4 + $0x1b4] ss:$8 sps:$4 sm:$0xff]  }
 0x355   :  { %2205 = vst.msk [vmem:[#allocation2 + $0x2] sm:$0x3] %vm2196_vm4, %v2194_v23  ;;  %2209 = vst.msk [vmem:[#allocation2 + $0x4] sm:$0x3] %vm2196_vm4, %v2194_v23 }
 0x356   :  { %2213 = vst.msk [vmem:[#allocation2 + $0x6] sm:$0x3] %vm2196_vm4, %v2194_v23  ;;  %2217 = vst.msk [vmem:[#allocation2 + $0x8] sm:$0x3] %vm2196_vm4, %v2194_v23 }
 0x357   :  { %2221 = vst.msk [vmem:[#allocation2 + $0xa] sm:$0x3] %vm2196_vm4, %v2194_v23  ;;  %2225 = vst.msk [vmem:[#allocation2 + $0xc] sm:$0x3] %vm2196_vm4, %v2194_v23 }
 0x358   :  { %2229 = vst.msk [vmem:[#allocation2 + $0xe] sm:$0x3] %vm2196_vm4, %v2194_v23  ;;  %2233 = vst.msk [vmem:[#allocation2 + $0x10] sm:$0x3] %vm2196_vm4, %v2194_v23 }
 0x359   :  { %2237 = vst.msk [vmem:[#allocation2 + $0x12] sm:$0x3] %vm2196_vm4, %v2194_v23  ;;  %2241 = vst.msk [vmem:[#allocation2 + $0x14] sm:$0x3] %vm2196_vm4, %v2194_v23 }
 0x35a   :  { %2245 = vst.msk [vmem:[#allocation2 + $0x16] sm:$0x3] %vm2196_vm4, %v2194_v23  ;;  %2197 = vst.msk [vmem:[#allocation2] sm:$0x3] %vm2196_vm4, %v2194_v23  ;;  %v6027_v23 = vld [vmem:[%s8498_s4 + $0x1a0] ss:$8 sps:$4 sm:$0xff]  }
 0x35b   :  { %2202 = vst.msk [vmem:[#allocation2] sm:$0x3] %vm2201_vm5, %v2199_v54  ;;  %2206 = vst.msk [vmem:[#allocation2 + $0x2] sm:$0x3] %vm2201_vm5, %v2199_v54 }
 0x35c   :  { %2210 = vst.msk [vmem:[#allocation2 + $0x4] sm:$0x3] %vm2201_vm5, %v2199_v54  ;;  %2214 = vst.msk [vmem:[#allocation2 + $0x6] sm:$0x3] %vm2201_vm5, %v2199_v54 }
 0x35d   :  { %2218 = vst.msk [vmem:[#allocation2 + $0x8] sm:$0x3] %vm2201_vm5, %v2199_v54  ;;  %2222 = vst.msk [vmem:[#allocation2 + $0xa] sm:$0x3] %vm2201_vm5, %v2199_v54 }
 0x35e   :  { %2226 = vst.msk [vmem:[#allocation2 + $0xc] sm:$0x3] %vm2201_vm5, %v2199_v54  ;;  %2230 = vst.msk [vmem:[#allocation2 + $0xe] sm:$0x3] %vm2201_vm5, %v2199_v54 }
 0x35f   :  { %2234 = vst.msk [vmem:[#allocation2 + $0x10] sm:$0x3] %vm2201_vm5, %v2199_v54  ;;  %2238 = vst.msk [vmem:[#allocation2 + $0x12] sm:$0x3] %vm2201_vm5, %v2199_v54 }
 0x360   :  { %2242 = vst.msk [vmem:[#allocation2 + $0x14] sm:$0x3] %vm2201_vm5, %v2199_v54  ;;  %2246 = vst.msk [vmem:[#allocation2 + $0x16] sm:$0x3] %vm2201_vm5, %v2199_v54  ;;  %v6030_v54 = vld [vmem:[%s8498_s4 + $0x1b0] ss:$8 sps:$4 sm:$0xff]  }
 0x365   :  { %v7558_v38 = vld [vmem:[#allocation2] ss:$2 sm:$0xff]  ;;  %v7560_v39 = vld [vmem:[#allocation2 + $0x1] ss:$2 sm:$0xff] }
 0x366   :  { %v2260_v59 = vrot.slane %v7558_v38, %v7552_v25  ;;  %v2256_v60 = vrot.slane %v7558_v38, %v7555_v10  ;;  %v2268_v3 = vrot.slane %v7558_v38, %v2267_v26  ;;  %v2344_v28 = vrot.slane %v7560_v39, %v7552_v25 }
 0x367   :  { %v2340_v16 = vrot.slane %v7560_v39, %v7555_v10  ;;  %v2352_v4 = vrot.slane %v7560_v39, %v2267_v26  ;;  %v7587_v43 = vld [vmem:[#allocation2 + $0x10] ss:$2 sm:$0x1f]  ;;  %v7589_v33 = vld [vmem:[#allocation2 + $0x11] ss:$2 sm:$0x1f] }
 0x368   :  { %v2319_v44 = vmul.f32 %v2260_v59, %v6936_v55  ;;  %v2318_v14 = vmul.f32 %v2256_v60, %v6930_v52  ;;  %v2321_v30 = vmul.f32 %v2268_v3, %v7101_v17  ;;  %v5997_v55 = vld [vmem:[%s8498_s4 + $0x100] ss:$8 sps:$4 sm:$0xff]   ;;  %v6002_v52 = vld [vmem:[%s8498_s4 + $0x114] ss:$8 sps:$4 sm:$0xff]   ;;  %v7582_v17 = vsub.s32 2, %v7465_v51 }
 0x369   :  { %v2300_v5 = vrot.slane %v7587_v43, %v2267_v26  ;;  %v2384_v36 = vrot.slane %v7589_v33, %v2267_v26  ;;  %v2304_v46 = vrot.slane %v7587_v43, %v7585_v63  ;;  %v2388_v58 = vrot.slane %v7589_v33, %v7585_v63  ;;  %v6035_v26 = vld [vmem:[%s8498_s4 + $0x1c4] ss:$8 sps:$4 sm:$0xff]   ;;  %v6033_v60 = vld [vmem:[%s8498_s4 + $0x1c0] ss:$8 sps:$4 sm:$0xff]   ;;  %v6038_v3 = vld [vmem:[%s8498_s4 + $0x1d4] ss:$8 sps:$4 sm:$0xff]  }
 0x36a   :  { %v2403_v31 = vadd.f32 %v2344_v28, %v2319_v44  ;;  %v2402_v47 = vadd.f32 %v2340_v16, %v2318_v14  ;;  %v2405_v19 = vadd.f32 %v2352_v4, %v2321_v30  ;;  %v2296_v37 = vrot.slane %v7587_v43, %v7582_v17  ;;  %v6036_v14 = vld [vmem:[%s8498_s4 + $0x1d0] ss:$8 sps:$4 sm:$0xff]   ;;  %v6041_v16 = vld [vmem:[%s8498_s4 + $0x1e4] ss:$8 sps:$4 sm:$0xff]  }
 0x36b   :  { %v2380_v49 = vrot.slane %v7589_v33, %v7582_v17  ;;  %v2329_v8 = vmul.f32 %v2300_v5, %v7012_v50  ;;  %v2330_v22 = vmul.f32 %v7320_v61, %v2304_v46  ;;  %v6011_v61 = vld [vmem:[%s8498_s4 + $0x144] ss:$8 sps:$4 sm:$0xff]   ;;  %v2275_v59 = vsub.s32 5, %v7465_v51  ;;  %v6050_v5 = vld [vmem:[%s8498_s4 + $0x214] ss:$8 sps:$4 sm:$0xff]  }
 0x36c   :  { %v2416_v45 = vmax.f32 %v2403_v31, 0.0  ;;  %v2415_v48 = vmax.f32 %v2402_v47, 0.0  ;;  %v2418_v2 = vmax.f32 %v2405_v19, 0.0  ;;  %v2328_v0 = vmul.f32 %v2296_v37, %v6947_v1  ;;  %v8524_v30 = vld [vmem:[#allocation10_spill] sm:$0xff]  ;;  %v8525_v31 = vld [vmem:[#allocation12_spill] sm:$0xff] }
 0x36d   :  { %v7616_v62 = vadd.f32 %v2384_v36, %v2329_v8  ;;  %v7620_v1 = vadd.f32 %v2388_v58, %v2330_v22  ;;  %v2264_v44 = vrot.slane %v7558_v38, %v7582_v17  ;;  %v2276_v28 = vrot.slane %v7558_v38, %v2275_v59  ;;  %v6048_v37 = vld [vmem:[%s8498_s4 + $0x210] ss:$8 sps:$4 sm:$0xff]   ;;  %v6051_v46 = vld [vmem:[%s8498_s4 + $0x220] ss:$8 sps:$4 sm:$0xff]   ;;  %v6056_v8 = vld [vmem:[%s8498_s4 + $0x234] ss:$8 sps:$4 sm:$0xff]  }
 0x36e   :  { %v2429_v20 = vpack.c.bf16 %v2416_v45, %v2416_v45  ;;  %v2428_v32 = vpack.c.bf16 %v2415_v48, %v2415_v48  ;;  %v2431_v56 = vpack.c.bf16 %v2418_v2, %v2418_v2  ;;  %v7618_v50 = vadd.f32 %v2380_v49, %v2328_v0  ;;  %v6039_v45 = vld [vmem:[%s8498_s4 + $0x1e0] ss:$8 sps:$4 sm:$0xff]   ;;  %v6044_v2 = vld [vmem:[%s8498_s4 + $0x1f4] ss:$8 sps:$4 sm:$0xff]   ;;  %v6053_v49 = vld [vmem:[%s8498_s4 + $0x224] ss:$8 sps:$4 sm:$0xff]  }
 0x36f   :  { %v2320_v4 = vmul.f32 %v2264_v44, %v8524_v30  ;;  %v2323_v47 = vmul.f32 %v2276_v28, %v8525_v31  ;;  %v2348_v19 = vrot.slane %v7560_v39, %v7582_v17  ;;  %v2360_v48 = vrot.slane %v7560_v39, %v2275_v59  ;;  %v6047_v17 = vld [vmem:[%s8498_s4 + $0x204] ss:$8 sps:$4 sm:$0xff]   ;;  %v6054_v0 = vld [vmem:[%s8498_s4 + $0x230] ss:$8 sps:$4 sm:$0xff]   ;;  %v6062_v22 = vld [vmem:[%s8498_s4 + $0x254] ss:$8 sps:$4 sm:$0xff]  }
 0x370   :  { %3653 = vmatprep.mubr.bf16.mxu1 %v2429_v20  ;;  %v6059_v58 = vld [vmem:[%s8498_s4 + $0x244] ss:$8 sps:$4 sm:$0xff]   ;;  %v6084_v59 = vld [vmem:[%s8498_s4 + $0x2d0] ss:$8 sps:$4 sm:$0xff]   ;;  %v6087_v30 = vld [vmem:[%s8498_s4 + $0x2e0] ss:$8 sps:$4 sm:$0xff]  }
 0x371   :  { %3654 = vmatmul.mubr.bf16.vlgmr.msra.gmra.mrb[4].mxu1 %v2428_v32  ;;  %v2404_v20 = vadd.f32 %v2348_v19, %v2320_v4  ;;  %v6042_v32 = vld [vmem:[%s8498_s4 + $0x1f0] ss:$8 sps:$4 sm:$0xff]   ;;  %v8527_v28 = vld [vmem:[#allocation14_spill] sm:$0xff] }
 0x372   :  { %3663 = vmatpush1.bf16.msra.mxu1 %v5997_v55  ;;  %3694 = vmatprep.mubr.bf16.mxu1 %v2431_v56  ;;  %v2407_v55 = vadd.f32 %v2360_v48, %v2323_v47  ;;  %v6092_v31 = vld [vmem:[%s8498_s4 + $0x2f4] ss:$8 sps:$4 sm:$0xff]   ;;  %v6095_v48 = vld [vmem:[%s8498_s4 + $0x304] ss:$8 sps:$4 sm:$0xff]  }
 0x373   :  { %3664 = vmatprep.subr.bf16.mxu1 %v6002_v52  ;;  %v2417_v52 = vmax.f32 %v2404_v20, 0.0  ;;  %v6093_v20 = vld [vmem:[%s8498_s4 + $0x300] ss:$8 sps:$4 sm:$0xff]  }
 0x374   :  { %v2420_v56 = vmax.f32 %v2407_v55, 0.0 }
 0x376   :  { %3665 = vmatpush1.bf16.msra.mxu1 %v6000_v15  ;;  %v6045_v15 = vld [vmem:[%s8498_s4 + $0x200] ss:$8 sps:$4 sm:$0xff]   ;;  %v2433_v36 = vpack.c.bf16 %v2420_v56, %v2420_v56  ;;  %v6101_v56 = vld [vmem:[%s8498_s4 + $0x324] ss:$8 sps:$4 sm:$0xff]  }
 0x377   :  { %3666 = vmatprep.subr.bf16.mxu1 %v6005_v42  ;;  %v2430_v42 = vpack.c.bf16 %v2417_v52, %v2417_v52 }
 0x37a   :  { %3667 = vmatpush1.bf16.msra.mxu1 %v6003_v13  ;;  %v6057_v13 = vld [vmem:[%s8498_s4 + $0x240] ss:$8 sps:$4 sm:$0xff]  }
 0x37b   :  { %3668 = vmatprep.subr.bf16.mxu1 %v6008_v7  ;;  %v6060_v7 = vld [vmem:[%s8498_s4 + $0x250] ss:$8 sps:$4 sm:$0xff]  }
 0x37e   :  { %3669 = vmatpush1.bf16.msra.mxu1 %v6006_v24  ;;  %v6065_v24 = vld [vmem:[%s8498_s4 + $0x264] ss:$8 sps:$4 sm:$0xff]  }
 0x37f   :  { %3670 = vmatprep.subr.bf16.mxu1 %v6011_v61  ;;  %v6063_v61 = vld [vmem:[%s8498_s4 + $0x260] ss:$8 sps:$4 sm:$0xff]  }
 0x382   :  { %3671 = vmatpush1.bf16.msra.mxu1 %v6009_v35  ;;  %v6068_v35 = vld [vmem:[%s8498_s4 + $0x274] ss:$8 sps:$4 sm:$0xff]  }
 0x383   :  { %3672 = vmatprep.subr.bf16.mxu1 %v6014_v53  ;;  %v6066_v53 = vld [vmem:[%s8498_s4 + $0x270] ss:$8 sps:$4 sm:$0xff]  }
 0x386   :  { %3673 = vmatpush1.bf16.msra.mxu1 %v6012_v21  ;;  %v6071_v21 = vld [vmem:[%s8498_s4 + $0x284] ss:$8 sps:$4 sm:$0xff]  }
 0x387   :  { %3674 = vmatprep.subr.bf16.mxu1 %v6017_v9  ;;  %v6069_v9 = vld [vmem:[%s8498_s4 + $0x280] ss:$8 sps:$4 sm:$0xff]  }
 0x38a   :  { %3675 = vmatpush1.bf16.msra.mxu1 %v6015_v29  ;;  %v6074_v29 = vld [vmem:[%s8498_s4 + $0x294] ss:$8 sps:$4 sm:$0xff]  }
 0x38b   :  { %3676 = vmatprep.subr.bf16.mxu1 %v6020_v41  ;;  %v6072_v41 = vld [vmem:[%s8498_s4 + $0x290] ss:$8 sps:$4 sm:$0xff]  }
 0x38e   :  { %3677 = vmatpush1.bf16.msra.mxu1 %v6018_v6  ;;  %v6077_v6 = vld [vmem:[%s8498_s4 + $0x2a4] ss:$8 sps:$4 sm:$0xff]  }
 0x38f   :  { %3678 = vmatprep.subr.bf16.mxu1 %v6023_v18  ;;  %v6075_v18 = vld [vmem:[%s8498_s4 + $0x2a0] ss:$8 sps:$4 sm:$0xff]  }
 0x392   :  { %3679 = vmatpush1.bf16.msra.mxu1 %v6021_v40  ;;  %v6080_v40 = vld [vmem:[%s8498_s4 + $0x2b4] ss:$8 sps:$4 sm:$0xff]  }
 0x393   :  { %3680 = vmatprep.subr.bf16.mxu1 %v6026_v12  ;;  %v6078_v12 = vld [vmem:[%s8498_s4 + $0x2b0] ss:$8 sps:$4 sm:$0xff]  }
 0x396   :  { %3681 = vmatpush1.bf16.msra.mxu1 %v6024_v57  ;;  %v6083_v57 = vld [vmem:[%s8498_s4 + $0x2c4] ss:$8 sps:$4 sm:$0xff]  }
 0x397   :  { %3682 = vmatprep.subr.bf16.mxu1 %v6029_v27  ;;  %v2283_v27 = vsub.s32 7, %v7465_v51 }
 0x399   :  { %v2368_v4 = vrot.slane %v7560_v39, %v2283_v27 }
 0x39a   :  { %3683 = vmatpush1.bf16.msra.mxu1 %v6027_v23  ;;  %v6081_v23 = vld [vmem:[%s8498_s4 + $0x2c0] ss:$8 sps:$4 sm:$0xff]  }
 0x39b   :  { %3684 = vmatprep.subr.bf16.mxu1 %v6032_v34  ;;  %v6086_v34 = vld [vmem:[%s8498_s4 + $0x2d4] ss:$8 sps:$4 sm:$0xff]  }
 0x39e   :  { %3685 = vmatpush1.bf16.msra.mxu1 %v6030_v54  ;;  %v2272_v54 = vrot.slane %v7558_v38, %v7585_v63 }
 0x39f   :  { %3686 = vmatprep.subr.bf16.mxu1 %v6035_v26  ;;  %v2284_v26 = vrot.slane %v7558_v38, %v2283_v27  ;;  %v8528_v27 = vld [vmem:[#allocation13_spill] sm:$0xff] }
 0x3a2   :  { %3687 = vmatpush1.bf16.msra.mxu1 %v6033_v60  ;;  %v6089_v60 = vld [vmem:[%s8498_s4 + $0x2e4] ss:$8 sps:$4 sm:$0xff]  }
 0x3a3   :  { %3688 = vmatprep.subr.bf16.mxu1 %v6038_v3  ;;  %v8526_v3 = vld [vmem:[#allocation11_spill] sm:$0xff] }
 0x3a4   :  { %v2322_v44 = vmul.f32 %v2272_v54, %v8526_v3 }
 0x3a6   :  { %3689 = vmatpush1.bf16.msra.mxu1 %v6036_v14  ;;  %v2325_v14 = vmul.f32 %v2284_v26, %v8527_v28 }
 0x3a7   :  { %3690 = vmatprep.subr.bf16.mxu1 %v6041_v16  ;;  %v2356_v16 = vrot.slane %v7560_v39, %v7585_v63 }
 0x3a8   :  { %v2409_v19 = vadd.f32 %v2368_v4, %v2325_v14  ;;  %v6143_v14 = vld [vmem:[%s8498_s4 + $0x404] ss:$8 sps:$4 sm:$0xff]  }
 0x3a9   :  { %v2406_v47 = vadd.f32 %v2356_v16, %v2322_v44 }
 0x3aa   :  { %3691 = vmatpush1.bf16.msra.mxu1 %v6039_v45  ;;  %v6090_v45 = vld [vmem:[%s8498_s4 + $0x2f0] ss:$8 sps:$4 sm:$0xff]  }
 0x3ab   :  { %3692 = vmatprep.subr.bf16.mxu1 %v6044_v2  ;;  %v2419_v63 = vmax.f32 %v2406_v47, 0.0  ;;  %v2422_v2 = vmax.f32 %v2409_v19, 0.0  ;;  %v6144_v19 = vld [vmem:[%s8498_s4 + $0x410] ss:$8 sps:$4 sm:$0xff]  }
 0x3ad   :  { %v2432_v55 = vpack.c.bf16 %v2419_v63, %v2419_v63  ;;  %v2435_v52 = vpack.c.bf16 %v2422_v2, %v2422_v2  ;;  %v6147_v63 = vld [vmem:[%s8498_s4 + $0x420] ss:$8 sps:$4 sm:$0xff]   ;;  %v6150_v2 = vld [vmem:[%s8498_s4 + $0x430] ss:$8 sps:$4 sm:$0xff]  }
 0x3ae   :  { %3693 = vmatpush1.bf16.msra.mxu1 %v6042_v32  ;;  %v6098_v32 = vld [vmem:[%s8498_s4 + $0x314] ss:$8 sps:$4 sm:$0xff]  }
 0x3af   :  { %3703 = vmatprep.subr.bf16.mxu1 %v6047_v17  ;;  %v6096_v17 = vld [vmem:[%s8498_s4 + $0x310] ss:$8 sps:$4 sm:$0xff]  }
 0x3b1   :  { %3695 = vmatmul.mubr.bf16.vlgmr.msra.gmra.mrb[4].mxu1 %v2430_v42  ;;  %v6104_v42 = vld [vmem:[%s8498_s4 + $0x334] ss:$8 sps:$4 sm:$0xff]  }
 0x3b2   :  { %3704 = vmatpush1.bf16.msra.mxu1 %v6045_v15  ;;  %3735 = vmatprep.mubr.bf16.mxu1 %v2433_v36  ;;  %v6099_v15 = vld [vmem:[%s8498_s4 + $0x320] ss:$8 sps:$4 sm:$0xff]   ;;  %v6107_v36 = vld [vmem:[%s8498_s4 + $0x344] ss:$8 sps:$4 sm:$0xff]  }
 0x3b3   :  { %3705 = vmatprep.subr.bf16.mxu1 %v6050_v5  ;;  %v6102_v5 = vld [vmem:[%s8498_s4 + $0x330] ss:$8 sps:$4 sm:$0xff]  }
 0x3b6   :  { %3706 = vmatpush1.bf16.msra.mxu1 %v6048_v37  ;;  %v6105_v37 = vld [vmem:[%s8498_s4 + $0x340] ss:$8 sps:$4 sm:$0xff]  }
 0x3b7   :  { %3707 = vmatprep.subr.bf16.mxu1 %v6053_v49  ;;  %v6110_v49 = vld [vmem:[%s8498_s4 + $0x354] ss:$8 sps:$4 sm:$0xff]  }
 0x3ba   :  { %3708 = vmatpush1.bf16.msra.mxu1 %v6051_v46  ;;  %v6108_v46 = vld [vmem:[%s8498_s4 + $0x350] ss:$8 sps:$4 sm:$0xff]  }
 0x3bb   :  { %3709 = vmatprep.subr.bf16.mxu1 %v6056_v8  ;;  %v6113_v8 = vld [vmem:[%s8498_s4 + $0x364] ss:$8 sps:$4 sm:$0xff]  }
 0x3be   :  { %3710 = vmatpush1.bf16.msra.mxu1 %v6054_v0  ;;  %v6111_v0 = vld [vmem:[%s8498_s4 + $0x360] ss:$8 sps:$4 sm:$0xff]  }
 0x3bf   :  { %3711 = vmatprep.subr.bf16.mxu1 %v6059_v58  ;;  %v6116_v58 = vld [vmem:[%s8498_s4 + $0x374] ss:$8 sps:$4 sm:$0xff]  }
 0x3c2   :  { %3712 = vmatpush1.bf16.msra.mxu1 %v6057_v13  ;;  %v6114_v13 = vld [vmem:[%s8498_s4 + $0x370] ss:$8 sps:$4 sm:$0xff]  }
 0x3c3   :  { %3713 = vmatprep.subr.bf16.mxu1 %v6062_v22  ;;  %v6119_v22 = vld [vmem:[%s8498_s4 + $0x384] ss:$8 sps:$4 sm:$0xff]  }
 0x3c6   :  { %3714 = vmatpush1.bf16.msra.mxu1 %v6060_v7  ;;  %v6117_v7 = vld [vmem:[%s8498_s4 + $0x380] ss:$8 sps:$4 sm:$0xff]  }
 0x3c7   :  { %3715 = vmatprep.subr.bf16.mxu1 %v6065_v24  ;;  %v6122_v24 = vld [vmem:[%s8498_s4 + $0x394] ss:$8 sps:$4 sm:$0xff]  }
 0x3ca   :  { %3716 = vmatpush1.bf16.msra.mxu1 %v6063_v61  ;;  %v6120_v61 = vld [vmem:[%s8498_s4 + $0x390] ss:$8 sps:$4 sm:$0xff]  }
 0x3cb   :  { %3717 = vmatprep.subr.bf16.mxu1 %v6068_v35  ;;  %v6125_v35 = vld [vmem:[%s8498_s4 + $0x3a4] ss:$8 sps:$4 sm:$0xff]  }
 0x3ce   :  { %3718 = vmatpush1.bf16.msra.mxu1 %v6066_v53  ;;  %v6123_v53 = vld [vmem:[%s8498_s4 + $0x3a0] ss:$8 sps:$4 sm:$0xff]  }
 0x3cf   :  { %3719 = vmatprep.subr.bf16.mxu1 %v6071_v21  ;;  %v6128_v21 = vld [vmem:[%s8498_s4 + $0x3b4] ss:$8 sps:$4 sm:$0xff]  }
 0x3d2   :  { %3720 = vmatpush1.bf16.msra.mxu1 %v6069_v9  ;;  %v6126_v9 = vld [vmem:[%s8498_s4 + $0x3b0] ss:$8 sps:$4 sm:$0xff]  }
 0x3d3   :  { %3721 = vmatprep.subr.bf16.mxu1 %v6074_v29  ;;  %v6131_v29 = vld [vmem:[%s8498_s4 + $0x3c4] ss:$8 sps:$4 sm:$0xff]  }
 0x3d6   :  { %3722 = vmatpush1.bf16.msra.mxu1 %v6072_v41  ;;  %v2279_v41 = vsub.s32 6, %v7465_v51  ;;  %v6132_v51 = vld [vmem:[%s8498_s4 + $0x3d0] ss:$8 sps:$4 sm:$0xff]  }
 0x3d7   :  { %3723 = vmatprep.subr.bf16.mxu1 %v6077_v6  ;;  %v6129_v6 = vld [vmem:[%s8498_s4 + $0x3c0] ss:$8 sps:$4 sm:$0xff]  }
 0x3d8   :  { %v2364_v26 = vrot.slane %v7560_v39, %v2279_v41  ;;  %v6138_v39 = vld [vmem:[%s8498_s4 + $0x3f0] ss:$8 sps:$4 sm:$0xff]  }
 0x3da   :  { %3724 = vmatpush1.bf16.msra.mxu1 %v6075_v18  ;;  %v6134_v18 = vld [vmem:[%s8498_s4 + $0x3d4] ss:$8 sps:$4 sm:$0xff]  }
 0x3db   :  { %3725 = vmatprep.subr.bf16.mxu1 %v6080_v40  ;;  %v2280_v40 = vrot.slane %v7558_v38, %v2279_v41  ;;  %v6135_v38 = vld [vmem:[%s8498_s4 + $0x3e0] ss:$8 sps:$4 sm:$0xff]  }
 0x3de   :  { %3726 = vmatpush1.bf16.msra.mxu1 %v6078_v12  ;;  %v2292_v12 = vrot.slane %v7587_v43, %v7552_v25 }
 0x3df   :  { %3727 = vmatprep.subr.bf16.mxu1 %v6083_v57  ;;  %v6137_v57 = vld [vmem:[%s8498_s4 + $0x3e4] ss:$8 sps:$4 sm:$0xff]  }
 0x3e2   :  { %3728 = vmatpush1.bf16.msra.mxu1 %v6081_v23  ;;  %v2324_v23 = vmul.f32 %v2280_v40, %v8528_v27  ;;  %v2426_v40 = vmax.f32 %v7616_v62, 0.0  ;;  %v6197_v62 = vld [vmem:[%s8498_s4 + $0x524] ss:$8 sps:$4 sm:$0xff]  }
 0x3e3   :  { %3729 = vmatprep.subr.bf16.mxu1 %v6086_v34  ;;  %v8529_v34 = vld [vmem:[#allocation16_spill] sm:$0xff] }
 0x3e4   :  { %v2327_v54 = vmul.f32 %v2292_v12, %v8529_v34  ;;  %v2408_v3 = vadd.f32 %v2364_v26, %v2324_v23  ;;  %v6189_v12 = vld [vmem:[%s8498_s4 + $0x500] ss:$8 sps:$4 sm:$0xff]   ;;  %v2439_v27 = vpack.c.bf16 %v2426_v40, %v2426_v40  ;;  %v6192_v23 = vld [vmem:[%s8498_s4 + $0x510] ss:$8 sps:$4 sm:$0xff]  }
 0x3e5   :  { %v6195_v34 = vld [vmem:[%s8498_s4 + $0x520] ss:$8 sps:$4 sm:$0xff]   ;;  %v6198_v26 = vld [vmem:[%s8498_s4 + $0x530] ss:$8 sps:$4 sm:$0xff]  }
 0x3e6   :  { %3730 = vmatpush1.bf16.msra.mxu1 %v6084_v59  ;;  %v2376_v59 = vrot.slane %v7589_v33, %v7552_v25  ;;  %v2421_v28 = vmax.f32 %v2408_v3, 0.0  ;;  %v6204_v3 = vld [vmem:[%s8498_s4 + $0x550] ss:$8 sps:$4 sm:$0xff]  }
 0x3e7   :  { %3731 = vmatprep.subr.bf16.mxu1 %v6089_v60  ;;  %v6140_v60 = vld [vmem:[%s8498_s4 + $0x3f4] ss:$8 sps:$4 sm:$0xff]  }
 0x3e8   :  { %v2411_v44 = vadd.f32 %v2376_v59, %v2327_v54  ;;  %v2434_v4 = vpack.c.bf16 %v2421_v28, %v2421_v28  ;;  %v6200_v54 = vld [vmem:[%s8498_s4 + $0x534] ss:$8 sps:$4 sm:$0xff]   ;;  %v6201_v59 = vld [vmem:[%s8498_s4 + $0x540] ss:$8 sps:$4 sm:$0xff]  }
 0x3e9   :  { %v6212_v28 = vld [vmem:[%s8498_s4 + $0x574] ss:$8 sps:$4 sm:$0xff]  }
 0x3ea   :  { %3732 = vmatpush1.bf16.msra.mxu1 %v6087_v30  ;;  %v2424_v16 = vmax.f32 %v2411_v44, 0.0  ;;  %v6141_v30 = vld [vmem:[%s8498_s4 + $0x400] ss:$8 sps:$4 sm:$0xff]   ;;  %v6209_v44 = vld [vmem:[%s8498_s4 + $0x564] ss:$8 sps:$4 sm:$0xff]  }
 0x3eb   :  { %3733 = vmatprep.subr.bf16.mxu1 %v6092_v31  ;;  %v6146_v31 = vld [vmem:[%s8498_s4 + $0x414] ss:$8 sps:$4 sm:$0xff]  }
 0x3ec   :  { %v2437_v47 = vpack.c.bf16 %v2424_v16, %v2424_v16  ;;  %v6215_v16 = vld [vmem:[%s8498_s4 + $0x584] ss:$8 sps:$4 sm:$0xff]  }
 0x3ee   :  { %3734 = vmatpush1.bf16.msra.mxu1 %v6090_v45  ;;  %v6149_v45 = vld [vmem:[%s8498_s4 + $0x424] ss:$8 sps:$4 sm:$0xff]  }
 0x3ef   :  { %3744 = vmatprep.subr.bf16.mxu1 %v6095_v48  ;;  %v6152_v48 = vld [vmem:[%s8498_s4 + $0x434] ss:$8 sps:$4 sm:$0xff]  }
 0x3f1   :  { %3736 = vmatmul.mubr.bf16.vlgmr.msra.gmra.mrb[4].mxu1 %v2432_v55  ;;  %v6153_v55 = vld [vmem:[%s8498_s4 + $0x440] ss:$8 sps:$4 sm:$0xff]  }
 0x3f2   :  { %3745 = vmatpush1.bf16.msra.mxu1 %v6093_v20  ;;  %3776 = vmatprep.mubr.bf16.mxu1 %v2435_v52  ;;  %v6155_v20 = vld [vmem:[%s8498_s4 + $0x444] ss:$8 sps:$4 sm:$0xff]   ;;  %v6156_v52 = vld [vmem:[%s8498_s4 + $0x450] ss:$8 sps:$4 sm:$0xff]  }
 0x3f3   :  { %3746 = vmatprep.subr.bf16.mxu1 %v6098_v32  ;;  %v6158_v32 = vld [vmem:[%s8498_s4 + $0x454] ss:$8 sps:$4 sm:$0xff]  }
 0x3f6   :  { %3747 = vmatpush1.bf16.msra.mxu1 %v6096_v17  ;;  %v6161_v17 = vld [vmem:[%s8498_s4 + $0x464] ss:$8 sps:$4 sm:$0xff]  }
 0x3f7   :  { %3748 = vmatprep.subr.bf16.mxu1 %v6101_v56  ;;  %v6159_v56 = vld [vmem:[%s8498_s4 + $0x460] ss:$8 sps:$4 sm:$0xff]  }
 0x3fa   :  { %3749 = vmatpush1.bf16.msra.mxu1 %v6099_v15  ;;  %v6164_v15 = vld [vmem:[%s8498_s4 + $0x474] ss:$8 sps:$4 sm:$0xff]  }
 0x3fb   :  { %3750 = vmatprep.subr.bf16.mxu1 %v6104_v42  ;;  %v6162_v42 = vld [vmem:[%s8498_s4 + $0x470] ss:$8 sps:$4 sm:$0xff]  }
 0x3fe   :  { %3751 = vmatpush1.bf16.msra.mxu1 %v6102_v5  ;;  %v6167_v5 = vld [vmem:[%s8498_s4 + $0x484] ss:$8 sps:$4 sm:$0xff]  }
 0x3ff   :  { %3752 = vmatprep.subr.bf16.mxu1 %v6107_v36  ;;  %v6165_v36 = vld [vmem:[%s8498_s4 + $0x480] ss:$8 sps:$4 sm:$0xff]  }
 0x402   :  { %3753 = vmatpush1.bf16.msra.mxu1 %v6105_v37  ;;  %v6170_v37 = vld [vmem:[%s8498_s4 + $0x494] ss:$8 sps:$4 sm:$0xff]  }
 0x403   :  { %3754 = vmatprep.subr.bf16.mxu1 %v6110_v49  ;;  %v6168_v49 = vld [vmem:[%s8498_s4 + $0x490] ss:$8 sps:$4 sm:$0xff]  }
 0x406   :  { %3755 = vmatpush1.bf16.msra.mxu1 %v6108_v46  ;;  %v6173_v46 = vld [vmem:[%s8498_s4 + $0x4a4] ss:$8 sps:$4 sm:$0xff]  }
 0x407   :  { %3756 = vmatprep.subr.bf16.mxu1 %v6113_v8  ;;  %v6171_v8 = vld [vmem:[%s8498_s4 + $0x4a0] ss:$8 sps:$4 sm:$0xff]  }
 0x40a   :  { %3757 = vmatpush1.bf16.msra.mxu1 %v6111_v0  ;;  %v6176_v0 = vld [vmem:[%s8498_s4 + $0x4b4] ss:$8 sps:$4 sm:$0xff]  }
 0x40b   :  { %3758 = vmatprep.subr.bf16.mxu1 %v6116_v58  ;;  %v6174_v58 = vld [vmem:[%s8498_s4 + $0x4b0] ss:$8 sps:$4 sm:$0xff]  }
 0x40e   :  { %3759 = vmatpush1.bf16.msra.mxu1 %v6114_v13  ;;  %v6179_v13 = vld [vmem:[%s8498_s4 + $0x4c4] ss:$8 sps:$4 sm:$0xff]  }
 0x40f   :  { %3760 = vmatprep.subr.bf16.mxu1 %v6119_v22  ;;  %v6177_v22 = vld [vmem:[%s8498_s4 + $0x4c0] ss:$8 sps:$4 sm:$0xff]  }
 0x412   :  { %3761 = vmatpush1.bf16.msra.mxu1 %v6117_v7  ;;  %v6182_v7 = vld [vmem:[%s8498_s4 + $0x4d4] ss:$8 sps:$4 sm:$0xff]  }
 0x413   :  { %3762 = vmatprep.subr.bf16.mxu1 %v6122_v24  ;;  %v2288_v24 = vrot.slane %v7587_v43, %v7555_v10  ;;  %v6183_v43 = vld [vmem:[%s8498_s4 + $0x4e0] ss:$8 sps:$4 sm:$0xff]  }
 0x416   :  { %3763 = vmatpush1.bf16.msra.mxu1 %v6120_v61  ;;  %v6180_v61 = vld [vmem:[%s8498_s4 + $0x4d0] ss:$8 sps:$4 sm:$0xff]  }
 0x417   :  { %3764 = vmatprep.subr.bf16.mxu1 %v6125_v35  ;;  %v6185_v35 = vld [vmem:[%s8498_s4 + $0x4e4] ss:$8 sps:$4 sm:$0xff]  }
 0x41a   :  { %3765 = vmatpush1.bf16.msra.mxu1 %v6123_v53  ;;  %v8530_v53 = vld [vmem:[#allocation15_spill] sm:$0xff] }
 0x41b   :  { %3766 = vmatprep.subr.bf16.mxu1 %v6128_v21  ;;  %v2326_v21 = vmul.f32 %v2288_v24, %v8530_v53 }
 0x41e   :  { %3767 = vmatpush1.bf16.msra.mxu1 %v6126_v9  ;;  %v2372_v9 = vrot.slane %v7589_v33, %v7555_v10  ;;  %v6191_v33 = vld [vmem:[%s8498_s4 + $0x504] ss:$8 sps:$4 sm:$0xff]  }
 0x41f   :  { %3768 = vmatprep.subr.bf16.mxu1 %v6131_v29  ;;  %v6188_v29 = vld [vmem:[%s8498_s4 + $0x4f4] ss:$8 sps:$4 sm:$0xff]  }
 0x420   :  { %v2410_v41 = vadd.f32 %v2372_v9, %v2326_v21 }
 0x422   :  { %3769 = vmatpush1.bf16.msra.mxu1 %v6129_v6  ;;  %v6186_v6 = vld [vmem:[%s8498_s4 + $0x4f0] ss:$8 sps:$4 sm:$0xff]  }
 0x423   :  { %3770 = vmatprep.subr.bf16.mxu1 %v6134_v18  ;;  %v2423_v18 = vmax.f32 %v2410_v41, 0.0 }
 0x426   :  { %3771 = vmatpush1.bf16.msra.mxu1 %v6132_v51  ;;  %v2436_v51 = vpack.c.bf16 %v2423_v18, %v2423_v18 }
 0x427   :  { %3772 = vmatprep.subr.bf16.mxu1 %v6137_v57  ;;  %v6194_v57 = vld [vmem:[%s8498_s4 + $0x514] ss:$8 sps:$4 sm:$0xff]  }
 0x42a   :  { %3773 = vmatpush1.bf16.msra.mxu1 %v6135_v38  ;;  %v6203_v38 = vld [vmem:[%s8498_s4 + $0x544] ss:$8 sps:$4 sm:$0xff]  }
 0x42b   :  { %3774 = vmatprep.subr.bf16.mxu1 %v6140_v60  ;;  %v6206_v60 = vld [vmem:[%s8498_s4 + $0x554] ss:$8 sps:$4 sm:$0xff]  }
 0x42e   :  { %3775 = vmatpush1.bf16.msra.mxu1 %v6138_v39  ;;  %v6207_v39 = vld [vmem:[%s8498_s4 + $0x560] ss:$8 sps:$4 sm:$0xff]  }
 0x42f   :  { %3785 = vmatprep.subr.bf16.mxu1 %v6143_v14  ;;  %v6210_v14 = vld [vmem:[%s8498_s4 + $0x570] ss:$8 sps:$4 sm:$0xff]  }
 0x431   :  { %3777 = vmatmul.mubr.bf16.vlgmr.msra.gmra.mrb[4].mxu1 %v2434_v4  ;;  %v6218_v4 = vld [vmem:[%s8498_s4 + $0x594] ss:$8 sps:$4 sm:$0xff]  }
 0x432   :  { %3786 = vmatpush1.bf16.msra.mxu1 %v6141_v30  ;;  %3817 = vmatprep.mubr.bf16.mxu1 %v2437_v47  ;;  %v6213_v30 = vld [vmem:[%s8498_s4 + $0x580] ss:$8 sps:$4 sm:$0xff]   ;;  %v6221_v47 = vld [vmem:[%s8498_s4 + $0x5a4] ss:$8 sps:$4 sm:$0xff]  }
 0x433   :  { %3787 = vmatprep.subr.bf16.mxu1 %v6146_v31  ;;  %v6216_v31 = vld [vmem:[%s8498_s4 + $0x590] ss:$8 sps:$4 sm:$0xff]  }
 0x436   :  { %3788 = vmatpush1.bf16.msra.mxu1 %v6144_v19  ;;  %v6219_v19 = vld [vmem:[%s8498_s4 + $0x5a0] ss:$8 sps:$4 sm:$0xff]  }
 0x437   :  { %3789 = vmatprep.subr.bf16.mxu1 %v6149_v45  ;;  %v6224_v45 = vld [vmem:[%s8498_s4 + $0x5b4] ss:$8 sps:$4 sm:$0xff]  }
 0x43a   :  { %3790 = vmatpush1.bf16.msra.mxu1 %v6147_v63  ;;  %v6222_v63 = vld [vmem:[%s8498_s4 + $0x5b0] ss:$8 sps:$4 sm:$0xff]  }
 0x43b   :  { %3791 = vmatprep.subr.bf16.mxu1 %v6152_v48  ;;  %v6227_v48 = vld [vmem:[%s8498_s4 + $0x5c4] ss:$8 sps:$4 sm:$0xff]  }
 0x43e   :  { %3792 = vmatpush1.bf16.msra.mxu1 %v6150_v2  ;;  %v6225_v2 = vld [vmem:[%s8498_s4 + $0x5c0] ss:$8 sps:$4 sm:$0xff]  }
 0x43f   :  { %3793 = vmatprep.subr.bf16.mxu1 %v6155_v20  ;;  %v6230_v20 = vld [vmem:[%s8498_s4 + $0x5d4] ss:$8 sps:$4 sm:$0xff]  }
 0x442   :  { %3794 = vmatpush1.bf16.msra.mxu1 %v6153_v55  ;;  %v6228_v55 = vld [vmem:[%s8498_s4 + $0x5d0] ss:$8 sps:$4 sm:$0xff]  }
 0x443   :  { %3795 = vmatprep.subr.bf16.mxu1 %v6158_v32  ;;  %v6233_v32 = vld [vmem:[%s8498_s4 + $0x5e4] ss:$8 sps:$4 sm:$0xff]  }
 0x446   :  { %3796 = vmatpush1.bf16.msra.mxu1 %v6156_v52  ;;  %v6231_v52 = vld [vmem:[%s8498_s4 + $0x5e0] ss:$8 sps:$4 sm:$0xff]  }
 0x447   :  { %3797 = vmatprep.subr.bf16.mxu1 %v6161_v17  ;;  %v6236_v17 = vld [vmem:[%s8498_s4 + $0x5f4] ss:$8 sps:$4 sm:$0xff]  }
 0x44a   :  { %3798 = vmatpush1.bf16.msra.mxu1 %v6159_v56  ;;  %v6234_v56 = vld [vmem:[%s8498_s4 + $0x5f0] ss:$8 sps:$4 sm:$0xff]  }
 0x44b   :  { %3799 = vmatprep.subr.bf16.mxu1 %v6164_v15  ;;  %v2425_v15 = vmax.f32 %v7618_v50, 0.0  ;;  %v6240_v50 = vld [vmem:[%s8498_s4 + $0x610] ss:$8 sps:$4 sm:$0xff]  }
 0x44e   :  { %3800 = vmatpush1.bf16.msra.mxu1 %v6162_v42  ;;  %v6239_v42 = vld [vmem:[%s8498_s4 + $0x604] ss:$8 sps:$4 sm:$0xff]  }
 0x44f   :  { %3801 = vmatprep.subr.bf16.mxu1 %v6167_v5  ;;  %v6237_v5 = vld [vmem:[%s8498_s4 + $0x600] ss:$8 sps:$4 sm:$0xff]  }
 0x452   :  { %3802 = vmatpush1.bf16.msra.mxu1 %v6165_v36  ;;  %v2438_v36 = vpack.c.bf16 %v2425_v15, %v2425_v15  ;;  %v4045_v15 = vld [vmem:[%s8500_s6 + $0xb8] sm:$0xff] }
 0x453   :  { %3803 = vmatprep.subr.bf16.mxu1 %v6170_v37  ;;  %v6242_v37 = vld [vmem:[%s8498_s4 + $0x614] ss:$8 sps:$4 sm:$0xff]  }
 0x456   :  { %3804 = vmatpush1.bf16.msra.mxu1 %v6168_v49  ;;  %v6307_v49 = vmov 0  }
 0x457   :  { %3805 = vmatprep.subr.bf16.mxu1 %v6173_v46  ;;  %v2427_v46 = vmax.f32 %v7620_v1, 0.0 }
 0x45a   :  { %3806 = vmatpush1.bf16.msra.mxu1 %v6171_v8  ;;  %v2440_v8 = vpack.c.bf16 %v2427_v46, %v2427_v46 }
 0x45b   :  { %3807 = vmatprep.subr.bf16.mxu1 %v6176_v0 }
 0x45e   :  { %3808 = vmatpush1.bf16.msra.mxu1 %v6174_v58 }
 0x45f   :  { %3809 = vmatprep.subr.bf16.mxu1 %v6179_v13 }
 0x462   :  { %3810 = vmatpush1.bf16.msra.mxu1 %v6177_v22 }
 0x463   :  { %3811 = vmatprep.subr.bf16.mxu1 %v6182_v7 }
 0x466   :  { %3812 = vmatpush1.bf16.msra.mxu1 %v6180_v61 }
 0x467   :  { %3813 = vmatprep.subr.bf16.mxu1 %v6185_v35 }
 0x46a   :  { %3814 = vmatpush1.bf16.msra.mxu1 %v6183_v43 }
 0x46b   :  { %3815 = vmatprep.subr.bf16.mxu1 %v6188_v29 }
 0x46e   :  { %3816 = vmatpush1.bf16.msra.mxu1 %v6186_v6 }
 0x46f   :  { %3826 = vmatprep.subr.bf16.mxu1 %v6191_v33 }
 0x471   :  { %3818 = vmatmul.mubr.bf16.vlgmr.msra.gmra.mrb[4].mxu1 %v2436_v51 }
 0x472   :  { %3827 = vmatpush1.bf16.msra.mxu1 %v6189_v12  ;;  %3858 = vmatprep.mubr.bf16.mxu1 %v2439_v27 }
 0x473   :  { %3828 = vmatprep.subr.bf16.mxu1 %v6194_v57 }
 0x476   :  { %3829 = vmatpush1.bf16.msra.mxu1 %v6192_v23 }
 0x477   :  { %3830 = vmatprep.subr.bf16.mxu1 %v6197_v62 }
 0x47a   :  { %3831 = vmatpush1.bf16.msra.mxu1 %v6195_v34 }
 0x47b   :  { %3832 = vmatprep.subr.bf16.mxu1 %v6200_v54 }
 0x47e   :  { %3833 = vmatpush1.bf16.msra.mxu1 %v6198_v26 }
 0x47f   :  { %3834 = vmatprep.subr.bf16.mxu1 %v6203_v38 }
 0x482   :  { %3835 = vmatpush1.bf16.msra.mxu1 %v6201_v59 }
 0x483   :  { %3836 = vmatprep.subr.bf16.mxu1 %v6206_v60 }
 0x486   :  { %3837 = vmatpush1.bf16.msra.mxu1 %v6204_v3 }
 0x487   :  { %3838 = vmatprep.subr.bf16.mxu1 %v6209_v44 }
 0x48a   :  { %3839 = vmatpush1.bf16.msra.mxu1 %v6207_v39 }
 0x48b   :  { %3840 = vmatprep.subr.bf16.mxu1 %v6212_v28  ;;  %v4038_v28 = vld [vmem:[%s8500_s6 + $0x80] sm:$0xff] }
 0x48e   :  { %3841 = vmatpush1.bf16.msra.mxu1 %v6210_v14  ;;  %v4039_v14 = vld [vmem:[%s8500_s6 + $0x88] sm:$0xff] }
 0x48f   :  { %3842 = vmatprep.subr.bf16.mxu1 %v6215_v16  ;;  %v4022_v16 = vld [vmem:[%s8500_s6] sm:$0xff] }
 0x492   :  { %3843 = vmatpush1.bf16.msra.mxu1 %v6213_v30  ;;  %v5531_v30 = vpack.c.bf16 %v4039_v14, %v4038_v28  ;;  %v4034_v28 = vld [vmem:[%s8500_s6 + $0x60] sm:$0xff]  ;;  %v4035_v14 = vld [vmem:[%s8500_s6 + $0x68] sm:$0xff] }
 0x493   :  { %3844 = vmatprep.subr.bf16.mxu1 %v6218_v4  ;;  %v4023_v4 = vld [vmem:[%s8500_s6 + $0x8] sm:$0xff] }
 0x494   :  { %5532 = vmatprep.subr.bf16.mxu0 %v5531_v30  ;;  %v4052_v30 = vld [vmem:[%s8500_s6 + $0xf0] sm:$0xff] }
 0x496   :  { %3845 = vmatpush1.bf16.msra.mxu1 %v6216_v31  ;;  %v4040_v31 = vld [vmem:[%s8500_s6 + $0x90] sm:$0xff] }
 0x497   :  { %3846 = vmatprep.subr.bf16.mxu1 %v6221_v47  ;;  %v4041_v47 = vld [vmem:[%s8500_s6 + $0x98] sm:$0xff] }
 0x49a   :  { %3847 = vmatpush1.bf16.msra.mxu1 %v6219_v19  ;;  %v5533_v19 = vpack.c.bf16 %v4023_v4, %v4022_v16  ;;  %v4053_v4 = vld [vmem:[%s8500_s6 + $0xf8] sm:$0xff] }
 0x49b   :  { %3848 = vmatprep.subr.bf16.mxu1 %v6224_v45  ;;  %v5535_v45 = vpack.c.bf16 %v4041_v47, %v4040_v31  ;;  %v5557_v47 = vpack.c.bf16 %v4035_v14, %v4034_v28 }
 0x49c   :  { %5534 = vmatpush3.bf16.msra.mxu0 %v5533_v19  ;;  %v5559_v19 = vpack.c.bf16 %v4053_v4, %v4052_v30  ;;  %v4614_v30 = vld [vmem:[%s8504_s10 + $0x30] sm:$0xff]  ;;  %v4615_v4 = vld [vmem:[%s8504_s10 + $0x38] sm:$0xff] }
 0x49d   :  { %5536 = vmatprep.subr.bf16.mxu0 %v5535_v45  ;;  %v4036_v45 = vld [vmem:[%s8500_s6 + $0x70] sm:$0xff] }
 0x49e   :  { %3849 = vmatpush1.bf16.msra.mxu1 %v6222_v63  ;;  %v4024_v63 = vld [vmem:[%s8500_s6 + $0x10] sm:$0xff] }
 0x49f   :  { %3850 = vmatprep.subr.bf16.mxu1 %v6227_v48  ;;  %v4025_v48 = vld [vmem:[%s8500_s6 + $0x18] sm:$0xff] }
 0x4a2   :  { %3851 = vmatpush1.bf16.msra.mxu1 %v6225_v2  ;;  %v4042_v2 = vld [vmem:[%s8500_s6 + $0xa0] sm:$0xff] }
 0x4a3   :  { %3852 = vmatprep.subr.bf16.mxu1 %v6230_v20  ;;  %v4043_v20 = vld [vmem:[%s8500_s6 + $0xa8] sm:$0xff] }
 0x4a6   :  { %3853 = vmatpush1.bf16.msra.mxu1 %v6228_v55  ;;  %v5537_v55 = vpack.c.bf16 %v4025_v48, %v4024_v63  ;;  %v4037_v63 = vld [vmem:[%s8500_s6 + $0x78] sm:$0xff] }
 0x4a7   :  { %3854 = vmatprep.subr.bf16.mxu1 %v6233_v32  ;;  %v5539_v32 = vpack.c.bf16 %v4043_v20, %v4042_v2  ;;  %v5561_v20 = vpack.c.bf16 %v4037_v63, %v4036_v45 }
 0x4a8   :  { %5538 = vmatpush3.bf16.msra.mxu0 %v5537_v55  ;;  %v4141_v55 = vld [vmem:[%s8495_s1] sm:$0x3] }
 0x4a9   :  { %5540 = vmatprep.subr.bf16.mxu0 %v5539_v32 }
 0x4aa   :  { %3855 = vmatpush1.bf16.msra.mxu1 %v6231_v52  ;;  %v4026_v52 = vld [vmem:[%s8500_s6 + $0x20] sm:$0xff] }
 0x4ab   :  { %3856 = vmatprep.subr.bf16.mxu1 %v6236_v17  ;;  %v4027_v17 = vld [vmem:[%s8500_s6 + $0x28] sm:$0xff] }
 0x4ae   :  { %3857 = vmatpush1.bf16.msra.mxu1 %v6234_v56  ;;  %v4044_v56 = vld [vmem:[%s8500_s6 + $0xb0] sm:$0xff] }
 0x4af   :  { %3867 = vmatprep.subr.bf16.mxu1 %v6239_v42  ;;  %v5541_v42 = vpack.c.bf16 %v4027_v17, %v4026_v52 }
 0x4b1   :  { %3859 = vmatmul.mubr.bf16.vlgmr.msra.gmra.mrb[4].mxu1 %v2438_v36  ;;  %v4028_v36 = vld [vmem:[%s8500_s6 + $0x30] sm:$0xff]  ;;  %5542 = vmatpush3.bf16.msra.mxu0 %v5541_v42 }
 0x4b2   :  { %3868 = vmatpush1.bf16.msra.mxu1 %v6237_v5  ;;  %3899 = vmatprep.mubr.bf16.mxu1 %v6307_v49  ;;  %v5543_v5 = vpack.c.bf16 %v4045_v15, %v4044_v56 }
 0x4b3   :  { %3869 = vmatprep.subr.bf16.mxu1 %v6242_v37  ;;  %v4029_v37 = vld [vmem:[%s8500_s6 + $0x38] sm:$0xff] }
 0x4b4   :  { %5544 = vmatprep.subr.bf16.mxu0 %v5543_v5 }
 0x4b6   :  { %3870 = vmatpush1.bf16.msra.mxu1 %v6240_v50  ;;  %v5545_v50 = vpack.c.bf16 %v4029_v37, %v4028_v36 }
 0x4b8   :  { %5546 = vmatpush3.bf16.msra.mxu0 %v5545_v50 }
 0x4bd   :  { %5362 = vmatmul.mubr.msk.bf16.vlgmr.msra.gmra.mrb[4].mxu1 %vm3617_vm6, %v2440_v8 }
 0x590   :  { %v8128_v0 = vpop.f32.mrb[4].mxu1 }
 0x591   :  { %v3908_v58 = vsel %vm1630_vm0, %v8128_v0, 0.0  ;;  %v3922_v13 = vmul.f32 %v8128_v0, %v8128_v0  ;;  %v8134_v22 = vpop.f32.mrb[5].mxu1 }
 0x592   :  { %v3909_v7 = vrot.slane %v3908_v58, 4  ;;  %v3915_v24 = vsel %vm1630_vm0, %v8134_v22, 0.0  ;;  %v3923_v1 = vmul.f32 %v8134_v22, %v8134_v22  ;;  %v3905_v61 = vpop.f32.mrb[6].mxu1 }
 0x593   :  { %v3924_v35 = vsel %vm1630_vm0, %v3922_v13, 0.0  ;;  %v3916_v53 = vrot.slane %v3915_v24, 4  ;;  %v3906_v21 = vpop.f32.mrb[7].mxu1 }
 0x594   :  { %v3910_v9 = vadd.f32 %v3909_v7, %v3908_v58  ;;  %v3925_v43 = vrot.slane %v3924_v35, 4  ;;  %v3931_v29 = vsel %vm1630_vm0, %v3923_v1, 0.0 }
 0x595   :  { %v3917_v41 = vadd.f32 %v3916_v53, %v3915_v24  ;;  %v3932_v6 = vrot.slane %v3931_v29, 4 }
 0x596   :  { %v3911_v18 = vrot.slane %v3910_v9, 2  ;;  %v3926_v33 = vadd.f32 %v3925_v43, %v3924_v35 }
 0x597   :  { %v3918_v40 = vrot.slane %v3917_v41, 2  ;;  %v3933_v12 = vadd.f32 %v3932_v6, %v3931_v29  ;;  %v4046_v6 = vld [vmem:[%s8500_s6 + $0xc0] sm:$0xff] }
 0x598   :  { %v3912_v51 = vadd.f32 %v3911_v18, %v3910_v9  ;;  %v3927_v57 = vrot.slane %v3926_v33, 2  ;;  %v4047_v18 = vld [vmem:[%s8500_s6 + $0xc8] sm:$0xff] }
 0x599   :  { %v3919_v27 = vadd.f32 %v3918_v40, %v3917_v41  ;;  %v3934_v23 = vrot.slane %v3933_v12, 2  ;;  %v3964_v41 = vld [vmem:[%s8499_s5] sm:$0x1] }
 0x59a   :  { %v3913_v62 = vrot.slane %v3912_v51, 1  ;;  %v3928_v34 = vadd.f32 %v3927_v57, %v3926_v33  ;;  %v4030_v33 = vld [vmem:[%s8500_s6 + $0x40] sm:$0xff]  ;;  %v4048_v57 = vld [vmem:[%s8500_s6 + $0xd0] sm:$0xff] }
 0x59b   :  { %v3935_v54 = vadd.f32 %v3934_v23, %v3933_v12  ;;  %v3920_v59 = vrot.slane %v3919_v27, 1  ;;  %v5547_v12 = vpack.c.bf16 %v4047_v18, %v4046_v6  ;;  %v4153_v18 = vld [vmem:[%s8502_s8 + $0x8] sm:$0xff] }
 0x59c   :  { %v3914_v26 = vadd.f32 %v3913_v62, %v3912_v51  ;;  %v3929_v38 = vrot.slane %v3928_v34, 1  ;;  %v4031_v51 = vld [vmem:[%s8500_s6 + $0x48] sm:$0xff] }
 0x59d   :  { %v3936_v3 = vrot.slane %v3935_v54, 1  ;;  %v3921_v44 = vadd.f32 %v3920_v59, %v3919_v27  ;;  %v4049_v27 = vld [vmem:[%s8500_s6 + $0xd8] sm:$0xff]  ;;  %v5549_v62 = vpack.c.bf16 %v4031_v51, %v4030_v33  ;;  %v3965_v59 = vld [vmem:[%s8499_s5 + $0x1] sm:$0x1]  ;;  %5548 = vmatprep.subr.bf16.mxu0 %v5547_v12  ;;  %v4180_v33 = vrot.slane %v4153_v18, %v7477_v11 }
 0x59e   :  { %3939 = vrot.lane.b32.xlu1 %v3914_v26, %s6303_s16  ;;  %v3930_v60 = vadd.f32 %v3929_v38, %v3928_v34  ;;  %v5551_v34 = vpack.c.bf16 %v4049_v27, %v4048_v57  ;;  %v4050_v38 = vld [vmem:[%s8500_s6 + $0xe0] sm:$0xff] }
 0x59f   :  { %v3937_v39 = vadd.f32 %v3936_v3, %v3935_v54  ;;  %v4032_v54 = vld [vmem:[%s8500_s6 + $0x50] sm:$0xff]  ;;  %5550 = vmatpush3.bf16.msra.mxu0 %v5549_v62  ;;  %v4188_v57 = vcombine.high %v4180_v33, %v4180_v33 }
 0x5a0   :  { %3944 = vrot.lane.b32.xlu0 %v3930_v60, %s6303_s16  ;;  %5552 = vmatprep.subr.bf16.mxu0 %v5551_v34 }
 0x5a2   :  { %3951 = vrot.lane.b32.xlu1 %v3921_v44, %s6303_s16 }
 0x5a4   :  { %3956 = vrot.lane.b32.xlu0 %v3937_v39, %s6303_s16 }
 0x5a8   :  { %4143 = vrot.lane.b32.xlu0 %v4141_v55, %s6308_s23 }
 0x610   :  { %v3940_v49 = vpop.permute.xlu1 %3939 }
 0x611   :  { %v3942_v46 = vadd.f32 %v3940_v49, %v3914_v26  ;;  %v4033_v26 = vld [vmem:[%s8500_s6 + $0x58] sm:$0xff] }
 0x612   :  { %v3945_v8 = vpop.permute.xlu0 %3944 }
 0x613   :  { %v3947_v58 = vadd.f32 %v3945_v8, %v3930_v60  ;;  %v3948_v13 = vadd.f32 %v3942_v46, %v3921_v44  ;;  %v4051_v60 = vld [vmem:[%s8500_s6 + $0xe8] sm:$0xff]  ;;  %v5553_v44 = vpack.c.bf16 %v4033_v26, %v4032_v54  ;;  %v4608_v54 = vld [vmem:[%s8504_s10] sm:$0xff] }
 0x614   :  { %v3952_v7 = vpop.permute.xlu1 %3951  ;;  %v4609_v26 = vld [vmem:[%s8504_s10 + $0x8] sm:$0xff] }
 0x615   :  { %v3954_v24 = vadd.f32 %v3952_v7, %v3948_v13  ;;  %v3949_v1 = vadd.f32 %v3947_v58, %v3937_v39  ;;  %v5555_v39 = vpack.c.bf16 %v4051_v60, %v4050_v38  ;;  %5554 = vmatpush3.bf16.msra.mxu0 %v5553_v44  ;;  %v4152_v58 = vld [vmem:[%s8502_s8] sm:$0xff]  ;;  %v4610_v38 = vld [vmem:[%s8504_s10 + $0x10] sm:$0xff]  ;;  %v4611_v60 = vld [vmem:[%s8504_s10 + $0x18] sm:$0xff] }
 0x616   :  { %v3957_v61 = vpop.permute.xlu0 %3956  ;;  %v4163_v13 = vrot.slane %v4152_v58, %v7477_v11  ;;  %v4612_v44 = vld [vmem:[%s8504_s10 + $0x20] sm:$0xff] }
 0x617   :  { %v3960_v35 = vmul.f32 0.125, %v3954_v24  ;;  %v3959_v53 = vadd.f32 %v3957_v61, %v3949_v1  ;;  %5556 = vmatprep.subr.bf16.mxu0 %v5555_v39  ;;  %v4613_v39 = vld [vmem:[%s8504_s10 + $0x28] sm:$0xff] }
 0x618   :  { %v4171_v7 = vcombine.high %v4163_v13, %v4163_v13 }
 0x619   :  { %v3962_v21 = vmul.f32 %v3960_v35, %v3960_v35  ;;  %v3961_v9 = vmul.f32 0.125, %v3959_v53  ;;  %5558 = vmatpush3.bf16.msra.mxu0 %v5557_v47  ;;  %v6309_v53 = vmov 0.0  }
 0x61a   :  { %5560 = vmatprep.subr.bf16.mxu0 %v5559_v19  ;;  %v5575_v19 = vpack.c.bf16 %v4615_v4, %v4614_v30 }
 0x61b   :  { %v3963_v43 = vsub.f32 %v3961_v9, %v3962_v21  ;;  %v4156_v21 = vcombine.high %v4152_v58, %v4152_v58 }
 0x61d   :  { %v3966_v29 = vadd.f32 1e-05, %v3963_v43  ;;  %5562 = vmatpush3.bf16.msra.mxu0 %v5561_v20  ;;  %v4170_v9 = vrot.slane %v4156_v21, %v7477_v11 }
 0x61e   :  { %5364 = vmatprep.subr.msk.mxu0 %vm1630_vm0, %v4171_v7 }
 0x61f   :  { %6247 = vrsqrt.f32 %v3966_v29  ;;  %v4172_v43 = vcombine.high %v4170_v9, %v4170_v9  ;;  %v4144_v29 = vpop.permute.xlu0 %4143 }
 0x629   :  { %v6248_v40 = vpop.eup %6247 }
 0x62a   :  { %v3968_v23 = vmul.f32 %v6248_v40, %v3964_v41  ;;  %v4173_v40 = vcombine.high %v4153_v18, %v4153_v18 }
 0x62c   :  { %v3969_v3 = vmul.f32 %v3968_v23, %v3960_v35  ;;  %v4187_v27 = vrot.slane %v4173_v40, %v7477_v11 }
 0x62e   :  { %v3970_v16 = vsub.f32 %v3965_v59, %v3969_v3  ;;  %v5563_v59 = vpack.c.bf16 %v4609_v26, %v4608_v54  ;;  %v5567_v3 = vpack.c.bf16 %v4611_v60, %v4610_v38  ;;  %v4581_v60 = vld [vmem:[%s8503_s9] sm:$0x1] }
 0x630   :  { %v3972_v31 = vrot.slane %v3970_v16, 7  ;;  %v5571_v16 = vpack.c.bf16 %v4613_v39, %v4612_v44  ;;  %v4582_v39 = vld [vmem:[%s8503_s9 + $0x1] sm:$0x1] }
 0x632   :  { %v3974_v48 = vsel %vm2177_vm2, %v3968_v23, %v3972_v31  ;;  %v4189_v23 = vcombine.high %v4187_v27, %v4187_v27 }
 0x633   :  { %v3984_v2 = vrot.slane %v3974_v48, %v7477_v11  ;;  %3990 = vst.msk [vmem:[#allocation2 + $0x2] sm:$0x3] %vm3975_vm7, %v3974_v48  ;;  %3976 = vst.msk [vmem:[#allocation2] sm:$0x3] %vm3975_vm7, %v3974_v48 }
 0x635   :  { %3985 = vrot.lane.b32.xlu1 %v3984_v2, %s6303_s16 }
 0x6a7   :  { %v3986_v32 = vpop.permute.xlu1 %3985 }
 0x6a8   :  { %3989 = vst.msk [vmem:[#allocation2] sm:$0x3] %vm3988_vm8, %v3986_v32  ;;  %3991 = vst.msk [vmem:[#allocation2 + $0x2] sm:$0x3] %vm3988_vm8, %v3986_v32 }
 0x6af   :  { %v3992_v52 = vld [vmem:[#allocation2] ss:$2 sm:$0x3]  ;;  %v4006_v17 = vld [vmem:[#allocation2 + $0x1] ss:$2 sm:$0x3] }
 0x6b0   :  { %v4001_v56 = vrot.slane %v3992_v52, %v7552_v25  ;;  %v3997_v15 = vrot.slane %v3992_v52, %v7555_v10  ;;  %v4015_v5 = vrot.slane %v4006_v17, %v7552_v25  ;;  %v4011_v37 = vrot.slane %v4006_v17, %v7555_v10 }
 0x6b2   :  { %v4005_v42 = vmul.f32 %v4001_v56, %v8134_v22  ;;  %v4004_v36 = vmul.f32 %v3997_v15, %v8128_v0  ;;  %v5363_v0 = vld [vmem:[%s8501_s7] ss:$0 sm:$0xff]  ;;  %s6310_s7 = smov 126  }
 0x6b4   :  { %v4019_v50 = vadd.f32 %v4015_v5, %v4005_v42  ;;  %v4018_v49 = vadd.f32 %v4011_v37, %v4004_v36 }
 0x6b6   :  { %v4021_v46 = vmax.f32 %v4019_v50, 0.0  ;;  %v4020_v8 = vmax.f32 %v4018_v49, 0.0 }
 0x6b8   :  { %4125 = vmatprep.mubr.f32.mxu0 %v4021_v46 }
 0x6b9   :  { %4126 = vmatmul.mubr.f32.vlgmr.msra.gmra.mrb[24].mxu0 %v4020_v8 }
 0x6ba   :  { %5365 = vmatpush1.msk.msra.mxu0 %vm1630_vm0, %v4163_v13  ;;  %4274 = vmatprep.mubr.f32.mxu0 %v6309_v53 }
 0x6bb   :  { %5367 = vmatprep.subr.msk.mxu0 %vm1630_vm0, %v4172_v43 }
 0x78c   :  { %v5436_v25 = vpop.f32.mrb[24].mxu0 }
 0x78d   :  { %v5437_v22 = vpop.f32.mrb[25].mxu0 }
 0x78e   :  { %v5438_v24 = vadd.f32 %v5437_v22, %v5436_v25 }
 0x790   :  { %v8271_v1 = vadd.f32 %v5438_v24, %v5363_v0 }
 0x792   :  { %v4138_v61 = vmul.f32 0.5, %v8271_v1  ;;  %4132 = vst.msk [vmem:[#allocation4] sm:$0x3] %vm4131_vm9, %v8271_v1 }
 0x794   :  { %v4139_v35 = vmul.f32 1.442695, %v4138_v61 }
 0x796   :  { %6249 = vpow2.f32 %v4139_v35 }
 0x7a0   :  { %v6250_v41 = vpop.eup %6249 }
 0x7a1   :  { %v4146_v6 = vmul.f32 %v6250_v41, %v4144_v29 }
 0x7a3   :  { %4148 = vrot.lane.b32.xlu1 %v4146_v6, %s6310_s7 }
 0x815   :  { %v4149_v12 = vpop.permute.xlu1 %4148 }
 0x816   :  { %v4151_v51 = vadd.f32 %v4149_v12, %v8271_v1 }
 0x818   :  { %5366 = vmatmul.mubr.msk.f32.vlgmr.msra.gmra.mrb[26].mxu0 %vm4190_vm10, %v4151_v51 }
 0x819   :  { %5368 = vmatpush1.msk.msra.mxu0 %vm1630_vm0, %v4170_v9  ;;  %4345 = vmatprep.mubr.f32.mxu0 %v6309_v53 }
 0x81a   :  { %5370 = vmatprep.subr.msk.mxu0 %vm1630_vm0, %v4188_v57 }
 0x81c   :  { %5369 = vmatmul.mubr.msk.f32.vlgmr.msra.gmra.mrb[28].mxu0 %vm4190_vm10, %v4151_v51 }
 0x81d   :  { %5371 = vmatpush1.msk.msra.mxu0 %vm1630_vm0, %v4180_v33  ;;  %4416 = vmatprep.mubr.f32.mxu0 %v6309_v53 }
 0x81e   :  { %5373 = vmatprep.subr.msk.mxu0 %vm1630_vm0, %v4189_v23 }
 0x820   :  { %5372 = vmatmul.mubr.msk.f32.vlgmr.msra.gmra.mrb[30].mxu0 %vm4190_vm10, %v4151_v51 }
 0x821   :  { %5374 = vmatpush1.msk.msra.mxu0 %vm1630_vm0, %v4187_v27  ;;  %4487 = vmatprep.mubr.f32.mxu0 %v6309_v53 }
 0x822   :  { %5564 = vmatprep.subr.bf16.mxu0 %v5563_v59 }
 0x824   :  { %5375 = vmatmul.mubr.msk.f32.vlgmr.msra.gmra.mrb[32].mxu0 %vm4190_vm10, %v4151_v51 }
 0x825   :  { %5566 = vmatpush3.bf16.msra.mxu0 %v5563_v59 }
 0x826   :  { %5568 = vmatprep.subr.bf16.mxu0 %v5567_v3 }
 0x829   :  { %5570 = vmatpush3.bf16.msra.mxu0 %v5567_v3 }
 0x82a   :  { %5572 = vmatprep.subr.bf16.mxu0 %v5571_v16 }
 0x82d   :  { %5574 = vmatpush3.bf16.msra.mxu0 %v5571_v16 }
 0x82e   :  { %5576 = vmatprep.subr.bf16.mxu0 %v5575_v19 }
 0x831   :  { %5578 = vmatpush3.bf16.msra.mxu0 %v5575_v19 }
 0x8eb   :  { %v4276_v62 = vpop.f32.mrb[26].mxu0 }
 0x8ec   :  { %4494 = vst.msk [vmem:[#allocation3] sm:$0x3] %vm3975_vm7, %v4276_v62  ;;  %4496 = vrot.lane.b32.xlu0 %v4276_v62, %s6303_s16  ;;  %v4278_v34 = vpop.f32.mrb[27].mxu0 }
 0x8ed   :  { %4500 = vst.msk [vmem:[#allocation3 + $0x4] sm:$0x3] %vm3975_vm7, %v4278_v34  ;;  %4502 = vrot.lane.b32.xlu1 %v4278_v34, %s6303_s16 }
 0x8ef   :  { %v4347_v28 = vpop.f32.mrb[28].mxu0 }
 0x8f0   :  { %4506 = vst.msk [vmem:[#allocation3 + $0x8] sm:$0x3] %vm3975_vm7, %v4347_v28  ;;  %4508 = vrot.lane.b32.xlu0 %v4347_v28, %s6303_s16  ;;  %v4349_v14 = vpop.f32.mrb[29].mxu0 }
 0x8f1   :  { %4512 = vst.msk [vmem:[#allocation3 + $0xc] sm:$0x3] %vm3975_vm7, %v4349_v14  ;;  %4514 = vrot.lane.b32.xlu1 %v4349_v14, %s6303_s16 }
 0x8f3   :  { %v4418_v31 = vpop.f32.mrb[30].mxu0 }
 0x8f4   :  { %4518 = vst.msk [vmem:[#allocation3 + $0x10] sm:$0x3] %vm3975_vm7, %v4418_v31  ;;  %4520 = vrot.lane.b32.xlu0 %v4418_v31, %s6303_s16  ;;  %v4420_v47 = vpop.f32.mrb[31].mxu0 }
 0x8f5   :  { %4524 = vst.msk [vmem:[#allocation3 + $0x14] sm:$0x3] %vm3975_vm7, %v4420_v47  ;;  %4526 = vrot.lane.b32.xlu1 %v4420_v47, %s6303_s16 }
 0x8f7   :  { %v4489_v45 = vpop.f32.mrb[32].mxu0 }
 0x8f8   :  { %4530 = vst.msk [vmem:[#allocation3 + $0x18] sm:$0x3] %vm3975_vm7, %v4489_v45  ;;  %4532 = vrot.lane.b32.xlu0 %v4489_v45, %s6303_s16  ;;  %v4491_v63 = vpop.f32.mrb[33].mxu0 }
 0x8f9   :  { %4536 = vst.msk [vmem:[#allocation3 + $0x1c] sm:$0x3] %vm3975_vm7, %v4491_v63  ;;  %4538 = vrot.lane.b32.xlu1 %v4491_v63, %s6303_s16 }
 0x95e   :  { %v4497_v48 = vpop.permute.xlu0 %4496 }
 0x95f   :  { %4499 = vst.msk [vmem:[#allocation3 + $0x2] sm:$0x3] %vm3975_vm7, %v4497_v48  ;;  %v4503_v2 = vpop.permute.xlu1 %4502 }
 0x960   :  { %4505 = vst.msk [vmem:[#allocation3 + $0x6] sm:$0x3] %vm3975_vm7, %v4503_v2 }
 0x962   :  { %v4509_v20 = vpop.permute.xlu0 %4508 }
 0x963   :  { %4511 = vst.msk [vmem:[#allocation3 + $0xa] sm:$0x3] %vm3975_vm7, %v4509_v20  ;;  %v4515_v55 = vpop.permute.xlu1 %4514 }
 0x964   :  { %4517 = vst.msk [vmem:[#allocation3 + $0xe] sm:$0x3] %vm3975_vm7, %v4515_v55 }
 0x966   :  { %v4521_v32 = vpop.permute.xlu0 %4520 }
 0x967   :  { %4523 = vst.msk [vmem:[#allocation3 + $0x12] sm:$0x3] %vm3975_vm7, %v4521_v32  ;;  %v4527_v52 = vpop.permute.xlu1 %4526  ;;  %v4542_v15 = vld [vmem:[#allocation3] sm:$0xff] }
 0x968   :  { %4529 = vst.msk [vmem:[#allocation3 + $0x16] sm:$0x3] %vm3975_vm7, %v4527_v52  ;;  %v4560_v37 = vmul.f32 %v4542_v15, %v4542_v15  ;;  %v4547_v49 = vsel %vm4546_vm11, %v4542_v15, 0.0 }
 0x96a   :  { %v4533_v17 = vpop.permute.xlu0 %4532  ;;  %v4564_v7 = vsel %vm4546_vm11, %v4560_v37, 0.0 }
 0x96b   :  { %4535 = vst.msk [vmem:[#allocation3 + $0x1a] sm:$0x3] %vm3975_vm7, %v4533_v17  ;;  %v4539_v56 = vpop.permute.xlu1 %4538  ;;  %v4543_v42 = vld [vmem:[#allocation3 + $0x8] sm:$0xff] }
 0x96c   :  { %4541 = vst.msk [vmem:[#allocation3 + $0x1e] sm:$0x3] %vm3975_vm7, %v4539_v56  ;;  %v4561_v5 = vmul.f32 %v4543_v42, %v4543_v42  ;;  %v4548_v36 = vsel %vm4546_vm11, %v4543_v42, 0.0 }
 0x96d   :  { %v4549_v13 = vadd.f32 %v4548_v36, %v4547_v49 }
 0x96e   :  { %v4565_v58 = vsel %vm4546_vm11, %v4561_v5, 0.0 }
 0x96f   :  { %v4544_v50 = vld [vmem:[#allocation3 + $0x10] sm:$0xff]  ;;  %v4566_v24 = vadd.f32 %v4565_v58, %v4564_v7 }
 0x970   :  { %v4550_v46 = vsel %vm4546_vm11, %v4544_v50, 0.0  ;;  %v4562_v8 = vmul.f32 %v4544_v50, %v4544_v50 }
 0x971   :  { %v4551_v22 = vadd.f32 %v4550_v46, %v4549_v13 }
 0x972   :  { %v4567_v25 = vsel %vm4546_vm11, %v4562_v8, 0.0 }
 0x973   :  { %v4545_v0 = vld [vmem:[#allocation3 + $0x18] sm:$0xff]  ;;  %v4568_v21 = vadd.f32 %v4567_v25, %v4566_v24 }
 0x974   :  { %v4552_v61 = vsel %vm4546_vm11, %v4545_v0, 0.0  ;;  %v4563_v35 = vmul.f32 %v4545_v0, %v4545_v0 }
 0x975   :  { %v4553_v53 = vadd.f32 %v4552_v61, %v4551_v22 }
 0x976   :  { %v4569_v9 = vsel %vm4546_vm11, %v4563_v35, 0.0 }
 0x977   :  { %v4554_v43 = vrot.slane %v4553_v53, 4  ;;  %v4570_v29 = vadd.f32 %v4569_v9, %v4568_v21 }
 0x979   :  { %v4555_v41 = vadd.f32 %v4554_v43, %v4553_v53  ;;  %v4571_v6 = vrot.slane %v4570_v29, 4 }
 0x97b   :  { %v4556_v18 = vrot.slane %v4555_v41, 2  ;;  %v4572_v33 = vadd.f32 %v4571_v6, %v4570_v29  ;;  %v4820_v6 = vld [vmem:[%s8506_s12 + $0x8] sm:$0xff] }
 0x97d   :  { %v4557_v40 = vadd.f32 %v4556_v18, %v4555_v41  ;;  %v4573_v12 = vrot.slane %v4572_v33, 2  ;;  %v4819_v41 = vld [vmem:[%s8506_s12] sm:$0xff]  ;;  %v4821_v18 = vld [vmem:[%s8506_s12 + $0x10] sm:$0xff] }
 0x97f   :  { %v4558_v51 = vrot.slane %v4557_v40, 1  ;;  %v4574_v57 = vadd.f32 %v4573_v12, %v4572_v33  ;;  %v5579_v33 = vpack.c.bf16 %v4820_v6, %v4819_v41 }
 0x981   :  { %v4559_v27 = vadd.f32 %v4558_v51, %v4557_v40  ;;  %v4575_v23 = vrot.slane %v4574_v57, 1  ;;  %v4822_v40 = vld [vmem:[%s8506_s12 + $0x18] sm:$0xff]  ;;  %v4823_v51 = vld [vmem:[%s8506_s12 + $0x20] sm:$0xff]  ;;  %5580 = vmatprep.subr.bf16.mxu0 %v5579_v33 }
 0x982   :  { %v5583_v12 = vpack.c.bf16 %v4822_v40, %v4821_v18 }
 0x983   :  { %v4576_v62 = vadd.f32 %v4575_v23, %v4574_v57  ;;  %v4577_v34 = vmul.f32 0.03125, %v4559_v27  ;;  %v4824_v57 = vld [vmem:[%s8506_s12 + $0x28] sm:$0xff]  ;;  %v4825_v23 = vld [vmem:[%s8506_s12 + $0x30] sm:$0xff] }
 0x984   :  { %v5587_v27 = vpack.c.bf16 %v4824_v57, %v4823_v51 }
 0x985   :  { %v4578_v54 = vmul.f32 0.03125, %v4576_v62  ;;  %v4579_v26 = vmul.f32 %v4577_v34, %v4577_v34  ;;  %v4826_v62 = vld [vmem:[%s8506_s12 + $0x38] sm:$0xff] }
 0x987   :  { %v4580_v38 = vsub.f32 %v4578_v54, %v4579_v26 }
 0x989   :  { %v4583_v59 = vadd.f32 1e-05, %v4580_v38 }
 0x98b   :  { %6251 = vrsqrt.f32 %v4583_v59 }
 0x995   :  { %v6252_v3 = vpop.eup %6251 }
 0x996   :  { %v4585_v44 = vmul.f32 %v6252_v3, %v4581_v60 }
 0x998   :  { %v4586_v28 = vmul.f32 %v4585_v44, %v4577_v34  ;;  %v4591_v14 = vrot.slane %v4585_v44, %v7555_v10  ;;  %v5591_v34 = vpack.c.bf16 %v4826_v62, %v4825_v23 }
 0x99a   :  { %v4587_v16 = vsub.f32 %v4582_v39, %v4586_v28  ;;  %v4592_v30 = vmul.f32 %v4591_v14, %v4542_v15  ;;  %v4593_v31 = vmul.f32 %v4591_v14, %v4543_v42  ;;  %v4594_v47 = vmul.f32 %v4591_v14, %v4544_v50 }
 0x99b   :  { %v4595_v48 = vmul.f32 %v4591_v14, %v4545_v0 }
 0x99c   :  { %v4599_v4 = vrot.slane %v4587_v16, %v7555_v10 }
 0x99e   :  { %v4600_v19 = vadd.f32 %v4599_v4, %v4592_v30  ;;  %v4601_v45 = vadd.f32 %v4599_v4, %v4593_v31  ;;  %v4602_v63 = vadd.f32 %v4599_v4, %v4594_v47  ;;  %v4603_v55 = vadd.f32 %v4599_v4, %v4595_v48 }
 0x9a0   :  { %v4604_v2 = vmax.f32 %v4600_v19, 0.0  ;;  %v4605_v20 = vmax.f32 %v4601_v45, 0.0  ;;  %v4606_v32 = vmax.f32 %v4602_v63, 0.0  ;;  %v4607_v52 = vmax.f32 %v4603_v55, 0.0  ;;  %v4765_v63 = vld [vmem:[%s8505_s11] sm:$0x1] }
 0x9a2   :  { %5487 = vmatprep.mubr.msk.f32.mxu0 %vm4546_vm11, %v4604_v2  ;;  %v4827_v2 = vld [vmem:[%s8506_s12 + $0x40] sm:$0xff] }
 0x9a3   :  { %5488 = vmatmul.mubr.msk.f32.vlgmr.msra.gmra.mrb[34].mxu0 %vm4546_vm11, %v4605_v20  ;;  %v4828_v20 = vld [vmem:[%s8506_s12 + $0x48] sm:$0xff] }
 0x9a4   :  { %5490 = vmatprep.mubr.msk.f32.mxu0 %vm4546_vm11, %v4606_v32  ;;  %5582 = vmatpush3.bf16.msra.mxu0 %v5579_v33  ;;  %v5595_v32 = vpack.c.bf16 %v4828_v20, %v4827_v2 }
 0x9a5   :  { %5584 = vmatprep.subr.bf16.mxu0 %v5583_v12 }
 0x9a7   :  { %5491 = vmatmul.mubr.msk.f32.gmra.mrb[36].mxu0 %vm4546_vm11, %v4607_v52  ;;  %v4766_v52 = vld [vmem:[%s8505_s11 + $0x1] sm:$0x1] }
 0x9a8   :  { %5586 = vmatpush3.bf16.msra.mxu0 %v5583_v12 }
 0x9a9   :  { %5588 = vmatprep.subr.bf16.mxu0 %v5587_v27 }
 0x9ac   :  { %5590 = vmatpush3.bf16.msra.mxu0 %v5587_v27 }
 0x9ad   :  { %5592 = vmatprep.subr.bf16.mxu0 %v5591_v34 }
 0x9b0   :  { %5594 = vmatpush3.bf16.msra.mxu0 %v5591_v34 }
 0x9b1   :  { %5596 = vmatprep.subr.bf16.mxu0 %v5595_v32 }
 0x9b4   :  { %5598 = vmatpush3.bf16.msra.mxu0 %v5595_v32 }
 0xa76   :  { %v8362_v10 = vpop.f32.mrb[34].mxu0 }
 0xa77   :  { %v4723_v17 = vmul.f32 %v8362_v10, %v8362_v10  ;;  %v8366_v56 = vpop.f32.mrb[35].mxu0 }
 0xa78   :  { %v4713_v15 = vadd.f32 %v8362_v10, %v8366_v56  ;;  %v4722_v42 = vmul.f32 %v8366_v56, %v8366_v56 }
 0xa7a   :  { %v4726_v5 = vadd.f32 %v4723_v17, %v4722_v42  ;;  %v8372_v36 = vpop.f32.mrb[36].mxu0  ;;  %v4830_v42 = vld [vmem:[%s8506_s12 + $0x58] sm:$0xff] }
 0xa7b   :  { %v8374_v37 = vpop.f32.mrb[37].mxu0  ;;  %v4725_v46 = vmul.f32 %v8372_v36, %v8372_v36 }
 0xa7c   :  { %v4714_v50 = vadd.f32 %v4713_v15, %v8374_v37  ;;  %v4724_v49 = vmul.f32 %v8374_v37, %v8374_v37  ;;  %v4829_v15 = vld [vmem:[%s8506_s12 + $0x50] sm:$0xff] }
 0xa7e   :  { %v4715_v8 = vadd.f32 %v8372_v36, %v4714_v50  ;;  %v4727_v58 = vadd.f32 %v4726_v5, %v4724_v49  ;;  %v4831_v5 = vld [vmem:[%s8506_s12 + $0x60] sm:$0xff]  ;;  %v5599_v50 = vpack.c.bf16 %v4830_v42, %v4829_v15  ;;  %v4832_v49 = vld [vmem:[%s8506_s12 + $0x68] sm:$0xff] }
 0xa80   :  { %v4716_v13 = vrot.slane %v4715_v8, 4  ;;  %v4728_v7 = vadd.f32 %v4727_v58, %v4725_v46  ;;  %5600 = vmatprep.subr.bf16.mxu0 %v5599_v50 }
 0xa81   :  { %5602 = vmatpush3.bf16.msra.mxu0 %v5599_v50 }
 0xa82   :  { %v4717_v25 = vadd.f32 %v4716_v13, %v4715_v8  ;;  %v4729_v0 = vrot.slane %v4728_v7, 4  ;;  %v5603_v8 = vpack.c.bf16 %v4832_v49, %v4831_v5  ;;  %v4833_v13 = vld [vmem:[%s8506_s12 + $0x70] sm:$0xff] }
 0xa84   :  { %v4718_v22 = vrot.slane %v4717_v25, 2  ;;  %v4730_v24 = vadd.f32 %v4729_v0, %v4728_v7  ;;  %v4834_v7 = vld [vmem:[%s8506_s12 + $0x78] sm:$0xff]  ;;  %5604 = vmatprep.subr.bf16.mxu0 %v5603_v8  ;;  %s6311_s12 = smov [#allocation4]  }
 0xa85   :  { %5606 = vmatpush3.bf16.msra.mxu0 %v5603_v8 }
 0xa86   :  { %v4719_v61 = vadd.f32 %v4718_v22, %v4717_v25  ;;  %v4731_v35 = vrot.slane %v4730_v24, 2  ;;  %v5607_v22 = vpack.c.bf16 %v4834_v7, %v4833_v13 }
 0xa88   :  { %v4720_v53 = vrot.slane %v4719_v61, 1  ;;  %v4732_v21 = vadd.f32 %v4731_v35, %v4730_v24  ;;  %5608 = vmatprep.subr.bf16.mxu0 %v5607_v22 }
 0xa89   :  { %5610 = vmatpush3.bf16.msra.mxu0 %v5607_v22 }
 0xa8a   :  { %v4721_v9 = vadd.f32 %v4720_v53, %v4719_v61  ;;  %v4733_v43 = vrot.slane %v4732_v21, 1 }
 0xa8c   :  { %4736 = vrot.lane.b32.xlu0 %v4721_v9, %s6304_s19  ;;  %v4734_v29 = vadd.f32 %v4733_v43, %v4732_v21 }
 0xa8e   :  { %4741 = vrot.lane.b32.xlu1 %v4734_v29, %s6304_s19 }
 0xa90   :  { %4745 = vrot.lane.b32.xlu0 %v4721_v9, %s6303_s16 }
 0xa92   :  { %4749 = vrot.lane.b32.xlu1 %v4734_v29, %s6303_s16 }
 0xa94   :  { %4753 = vrot.lane.b32.xlu0 %v4721_v9, %s6305_s0 }
 0xa96   :  { %4757 = vrot.lane.b32.xlu1 %v4734_v29, %s6305_s0 }
 0xafe   :  { %v4737_v54 = vpop.permute.xlu0 %4736 }
 0xaff   :  { %v4739_v59 = vadd.f32 %v4737_v54, %v4721_v9 }
 0xb00   :  { %v4742_v26 = vpop.permute.xlu1 %4741 }
 0xb01   :  { %v4744_v3 = vadd.f32 %v4742_v26, %v4734_v29 }
 0xb02   :  { %v4746_v38 = vpop.permute.xlu0 %4745 }
 0xb03   :  { %v4748_v44 = vadd.f32 %v4746_v38, %v4739_v59 }
 0xb04   :  { %v4750_v60 = vpop.permute.xlu1 %4749 }
 0xb05   :  { %v4752_v28 = vadd.f32 %v4750_v60, %v4744_v3 }
 0xb06   :  { %v4754_v39 = vpop.permute.xlu0 %4753 }
 0xb07   :  { %v4756_v14 = vadd.f32 %v4754_v39, %v4748_v44 }
 0xb08   :  { %v4758_v16 = vpop.permute.xlu1 %4757 }
 0xb09   :  { %v4761_v30 = vmul.f32 0.0078125, %v4756_v14  ;;  %v4760_v4 = vadd.f32 %v4758_v16, %v4752_v28 }
 0xb0b   :  { %v4763_v31 = vmul.f32 %v4761_v30, %v4761_v30  ;;  %v4762_v47 = vmul.f32 0.0078125, %v4760_v4 }
 0xb0d   :  { %v4764_v19 = vsub.f32 %v4762_v47, %v4763_v31 }
 0xb0f   :  { %v4767_v45 = vadd.f32 1e-05, %v4764_v19 }
 0xb11   :  { %6253 = vrsqrt.f32 %v4767_v45 }
 0xb1b   :  { %v6254_v48 = vpop.eup %6253 }
 0xb1c   :  { %v4769_v55 = vmul.f32 %v6254_v48, %v4765_v63 }
 0xb1e   :  { %v4770_v17 = vmul.f32 %v4769_v55, %v4761_v30 }
 0xb20   :  { %v4771_v46 = vsub.f32 %v4766_v52, %v4770_v17 }
 0xb22   :  { %v4773_v58 = vrot.slane %v4771_v46, 7 }
 0xb24   :  { %v4775_v25 = vsel %vm2177_vm2, %v4769_v55, %v4773_v58 }
 0xb25   :  { %v4784_v0 = vrot.slane %v4775_v25, %v7477_v11  ;;  %4776 = vst.msk [vmem:[#allocation2] sm:$0x3] %vm1715_vm1, %v4775_v25 }
 0xb27   :  { %4789 = vrot.lane.b32.xlu1 %v4784_v0, %s6303_s16  ;;  %4785 = vrot.lane.b32.xlu0 %v4784_v0, %s6305_s0  ;;  %s4931_s16 = sshll.u32 %s6311_s12, 4  ;;  %s4932_s16 = int_to_ptr.vmem [resolvable:$true] %s4931_s16 }
 0xb28   :  { %p6260_p1 = scmp.lt.s32.totalorder %s4932_s16, %s4932_s16 }
 0xb2b   :  { %4134 = vrot.lane.b32.xlu1 %v8271_v1, %s6310_s7  ;;  %4793 = vrot.lane.b32.xlu0 %v4784_v0, %s6304_s19  ;;  %s6312_s19 = smov [#allocation6]   ;;  %s6255_s7 = scalar_lea.vmem %s4932_s16, 32 }
 0xb2c   :  { %s4941_s0 = sshll.u32 %s6312_s19, 4  ;;  %p6256_p0 = scmp.ne.s32.totalorder %s4932_s16, %s6255_s7  ;;  %s4942_s0 = int_to_ptr.vmem [resolvable:$true] %s4941_s0 }
 0xb2d   :  { %p6261_p2 = scmp.lt.s32.totalorder %s6255_s7, %s6255_s7 }
 0xb2f   :  { %p6262_p3 = por %p6261_p2, %p6260_p1 }
 0xb31   :  { %p6263_p4 = pnand %p6262_p3, %p6256_p0 }
 0xb99   :  { %v4790_v24 = vpop.permute.xlu1 %4789  ;;  %v4786_v61 = vpop.permute.xlu0 %4785 }
 0xb9a   :  { %4788 = vst.msk [vmem:[#allocation2] sm:$0x3] %vm2191_vm3, %v4786_v61 }
 0xb9b   :  { %4792 = vst.msk [vmem:[#allocation2] sm:$0x3] %vm2196_vm4, %v4790_v24 }
 0xb9d   :  { %v4135_v11 = vpop.permute.xlu1 %4134  ;;  %v4794_v35 = vpop.permute.xlu0 %4793 }
 0xb9e   :  { %4137 = vst.msk [vmem:[#allocation6] sm:$0x3] %vm4131_vm9, %v4135_v11 }
 0xb9f   :  { %4796 = vst.msk [vmem:[#allocation2] sm:$0x3] %vm2201_vm5, %v4794_v35 }
 0xba6   :  { %v5380_v53 = vld [vmem:[#allocation2] ss:$0 sm:$0xff]  ;;  %v5381_v43 = vld [vmem:[#allocation2 + $0x1] ss:$0 sm:$0xff] }
 0xba7   :  { %v4802_v21 = vmul.f32 %v5380_v53, %v8366_v56  ;;  %v4803_v1 = vmul.f32 %v8362_v10, %v5380_v53  ;;  %v4804_v9 = vmul.f32 %v5380_v53, %v8374_v37  ;;  %v4805_v29 = vmul.f32 %v8372_v36, %v5380_v53 }
 0xba9   :  { %v4811_v41 = vadd.f32 %v5381_v43, %v4802_v21  ;;  %v4812_v6 = vadd.f32 %v5381_v43, %v4803_v1  ;;  %v4813_v18 = vadd.f32 %v5381_v43, %v4804_v9  ;;  %v4814_v12 = vadd.f32 %v5381_v43, %v4805_v29 }
 0xbab   :  { %v4815_v33 = vmax.f32 %v4811_v41, 0.0  ;;  %v4816_v40 = vmax.f32 %v4812_v6, 0.0  ;;  %v4817_v51 = vmax.f32 %v4813_v18, 0.0  ;;  %v4818_v57 = vmax.f32 %v4814_v12, 0.0 }
 0xbad   :  { %5525 = vmatprep.mubr.f32.mxu0 %v4815_v33 }
 0xbae   :  { %5526 = vmatmul.mubr.f32.vlgmr.msra.gmra.mrb[38].mxu0 %v4816_v40 }
 0xbaf   :  { %5528 = vmatprep.mubr.f32.mxu0 %v4817_v51 }
 0xbb2   :  { %5529 = vmatmul.mubr.f32.gmra.mrb[40].mxu0 %v4818_v57 }
 0xbb3   :  { %6266 = shalt.err (!%p6263_p4)
}
 0xbb4   :  { %s6267_s23 = scalar_lea.hbm %s8507_s13, 32 }
 0xbb5   :  { %p6268_p5 = scmp.ne.s32.totalorder %s8507_s13, %s6267_s23  ;;  %p6271_p6 = scmp.lt.u32.totalorder %s6267_s23, %s8507_s13 }
 0xbb7   :  { %p6273_p7 = pnand %p6271_p6, %p6268_p5 }
 0xbb9   :  { %6276 = shalt.err (!%p6273_p7)
}
 0xbba   :  { %4934 = dma.vmem_to_hbm [thread:$0]  %s4932_s16, 32, %s8507_s13, [#allocation5]  }
 0xbbb   :  { %s6277_s9 = scalar_lea.vmem %s4942_s0, 32  ;;  %p6282_p9 = scmp.lt.s32.totalorder %s4942_s0, %s4942_s0 }
 0xbbc   :  { %p6278_p8 = scmp.ne.s32.totalorder %s4942_s0, %s6277_s9  ;;  %p6283_p10 = scmp.lt.s32.totalorder %s6277_s9, %s6277_s9 }
 0xbbe   :  { %p6284_p11 = por %p6283_p10, %p6282_p9 }
 0xbc0   :  { %p6285_p12 = pnand %p6284_p11, %p6278_p8 }
 0xbc2   :  { %6288 = shalt.err (!%p6285_p12)
}
 0xbc3   :  { %s6289_s26 = scalar_lea.hbm %s8508_s14, 32 }
 0xbc4   :  { %p6290_p13 = scmp.ne.s32.totalorder %s8508_s14, %s6289_s26  ;;  %p6293_p0 = scmp.lt.u32.totalorder %s6289_s26, %s8508_s14 }
 0xbc6   :  { %p6295_p1 = pnand %p6293_p0, %p6290_p13 }
 0xbc8   :  { %6298 = shalt.err (!%p6295_p1)
}
 0xbc9   :  { %4944 = dma.vmem_to_hbm [thread:$0]  %s4942_s0, 32, %s8508_s14, [#allocation7]   ;;  %vm4920_vm12 = vcmask 130048  }
 0xc81   :  { %v5527_v10 = vpop.f32.mrb[38].mxu0 }
 0xc82   :  { %4922 = vst.msk [vmem:[%s8509_s15 + $0x8] sm:$0xff] %vm4920_vm12, %v5527_v10  ;;  %v4901_v56 = vpop.f32.mrb[39].mxu0 }
 0xc83   :  { %4921 = vst.msk [vmem:[%s8509_s15] sm:$0xff] %vm4920_vm12, %v4901_v56 }
 0xc85   :  { %v5530_v36 = vpop.f32.mrb[40].mxu0 }
 0xc86   :  { %4924 = vst.msk [vmem:[%s8509_s15 + $0x18] sm:$0xff] %vm4920_vm12, %v5530_v36  ;;  %v4911_v37 = vpop.f32.mrb[41].mxu0 }
 0xc87   :  { %4923 = vst.msk [vmem:[%s8509_s15 + $0x10] sm:$0xff] %vm4920_vm12, %v4911_v37 }
 0xc88   :  { %6299 = dma.done.wait [#allocation5], 32  }
 0xc89   :  { %6300 = vsyncadd [#allocation5], 4294967264 }
 0xc8a   :  { %6301 = dma.done.wait [#allocation7], 32  }
 0xc8b   :  { %6302 = vsyncadd [#allocation7], 4294967264 }
 0xc8c   :  { %4955 = vsyncpa [#allocation5], 1 }
 0xc8d   :  { %4956 = vsyncpa [#allocation7], 1 }

</bundles_post_ra>
